<compile_context>
chip_gen: v5e
topology: v5e:2x2
jax: 0.10.0
libtpu: 0.0.40
codegen_flags: <defaults>
</compile_context>

<pallas_src>
import functools

import jax
import jax.numpy as jnp
from jax.experimental import pallas as pl
from jax.experimental.pallas import tpu as pltpu

NEG_SLOPE = 0.1015625      # DPU_COMPATIBLE LeakyReLU slope
BN_EPS = 1e-5


def _leaky(x):
    return jnp.where(x >= 0, x, NEG_SLOPE * x)


def _round_up(v, m):
    return (v + m - 1) // m * m


# ---------------------------------------------------------------------------
# Pallas kernel: all repeats fused; one image per step along grid axis 0.
# grid = (N, R); the padded activation is resident in a VMEM scratch across R.
# ---------------------------------------------------------------------------
def residual_block_kernel(x_ref, w1_ref, s1_ref, b1_ref,
                          w2_ref, s2_ref, b2_ref,
                          o_ref, act_ref, y1s_ref, *, use_residual):
    _, H, W, C = x_ref.shape
    HW, Cp = act_ref.shape
    Chp = y1s_ref.shape[-1]
    r = pl.program_id(1)

    # First repeat of each image: seed the Cp-padded resident activation from
    # the native-C input and zero the 3x3 conv's H-padding rows (rows 0 and
    # H+1 are never written again, so once per image is enough).
    @pl.when(r == 0)
    def _():
        x = x_ref[0].reshape(HW, C).astype(jnp.float32)
        if Cp > C:
            x = jnp.concatenate(
                [x, jnp.zeros((HW, Cp - C), jnp.float32)], axis=1)
        act_ref[...] = x
        y1s_ref[0] = jnp.zeros((W, Chp), jnp.float32)
        y1s_ref[H + 1] = jnp.zeros((W, Chp), jnp.float32)

    # ---- CNNBlock 1: 1x1 conv = one bf16 MXU matmul + folded BN + LeakyReLU.
    xin = act_ref[...].astype(jnp.bfloat16)
    y1 = jnp.dot(xin, w1_ref[r], preferred_element_type=jnp.float32)
    y1 = _leaky(y1 * s1_ref[r] + b1_ref[r])

    # Stage y1 into the H-padded, sublane-aligned scratch rows 1..H.
    y1s_ref[1:H + 1] = y1.reshape(H, W, Chp)

    # ---- CNNBlock 2: 3x3 conv as 3 MXU matmuls (one per dy), K = 3*Chp.
    # dx = +-1 taps are built with sublane rolls (XLU slot) + (HW,1) masks.
    wcol = jax.lax.broadcasted_iota(jnp.int32, (HW, 1), 0) % W
    first_col = wcol == 0
    last_col = wcol == (W - 1)

    acc = None
    for dy in range(3):
        center = y1s_ref[dy:dy + H].reshape(HW, Chp)
        left = jnp.where(first_col, 0.0, pltpu.roll(center, 1, axis=0))
        right = jnp.where(last_col, 0.0, pltpu.roll(center, HW - 1, axis=0))
        slab = jnp.concatenate(
            [left.astype(jnp.bfloat16), center.astype(jnp.bfloat16),
             right.astype(jnp.bfloat16)], axis=1)              # (HW, 3*Chp)
        contrib = jnp.dot(slab, w2_ref[r * 3 + dy],
                          preferred_element_type=jnp.float32)
        acc = contrib if acc is None else acc + contrib

    # Epilogue: folded BN + LeakyReLU (+ residual) directly on the f32 acc.
    y2 = _leaky(acc * s2_ref[r] + b2_ref[r])
    if use_residual:
        y2 = y2 + act_ref[...]
    act_ref[...] = y2

    # Last repeat of each image: write the native-C activation back to HBM.
    @pl.when(r == pl.num_programs(1) - 1)
    def _():
        y = act_ref[...] if Cp == C else act_ref[:, :C]
        o_ref[...] = y.reshape(1, H, W, C).astype(o_ref.dtype)


# ---------------------------------------------------------------------------
# Wrapper: pack weights (bf16, channel-padded, 3x3 dx-taps fused into K).
# ---------------------------------------------------------------------------
def _pack_params(all_params, C, Ch, Cp, Chp):
    w1s, s1s, b1s, w2s, s2s, b2s = [], [], [], [], [], []
    for (w1, s1, b1, w2, s2, b2) in all_params:
        w1p = jnp.zeros((Cp, Chp), jnp.float32).at[:C, :Ch].set(w1)
        s1p = jnp.ones((1, Chp), jnp.float32).at[:, :Ch].set(s1)
        b1p = jnp.zeros((1, Chp), jnp.float32).at[:, :Ch].set(b1)
        w2p = jnp.zeros((3, 3, Chp, Cp), jnp.float32).at[:, :, :Ch, :C].set(w2)
        # Fuse the 3 dx taps of each kernel row dy into one (3*Chp, Cp) weight.
        w2r = jnp.concatenate([w2p[:, 0], w2p[:, 1], w2p[:, 2]], axis=1)
        s2p = jnp.ones((1, Cp), jnp.float32).at[:, :C].set(s2)
        b2p = jnp.zeros((1, Cp), jnp.float32).at[:, :C].set(b2)
        w1s.append(w1p.astype(jnp.bfloat16)); s1s.append(s1p); b1s.append(b1p)
        w2s.append(w2r.astype(jnp.bfloat16)); s2s.append(s2p); b2s.append(b2p)
    stacked = tuple(jnp.stack(t, axis=0) for t in (w1s, s1s, b1s, w2s, s2s, b2s))
    w1_all, s1_all, b1_all, w2_all, s2_all, b2_all = stacked
    R = len(all_params)
    w2_all = w2_all.reshape(R * 3, 3 * Chp, Cp)   # flat (r,dy) leading index
    return w1_all, s1_all, b1_all, w2_all, s2_all, b2_all


def _physical_vmem_bytes():
    try:
        info = pltpu.get_tpu_info()
        for name in ("vmem_capacity_bytes", "vmem_bytes", "vmem_size_bytes"):
            v = getattr(info, name, None)
            if v:
                return int(v)
    except Exception:
        pass
    return 64 * 2**20   # conservative: v7x per-TensorCore VMEM


def residual_block_forward(x_nhwc, all_params, use_residual=True):
    N, H, W, C = x_nhwc.shape
    assert C % 2 == 0, "channels must be even"
    assert W % 8 == 0, "W must be a multiple of 8 (sublane alignment)"
    Ch = C // 2
    R = len(all_params)
    Cp, Chp = _round_up(C, 128), _round_up(Ch, 128)
    HW = H * W

    w1_all, s1_all, b1_all, w2_all, s2_all, b2_all = _pack_params(
        all_params, C, Ch, Cp, Chp)

    kernel = functools.partial(residual_block_kernel,
                               use_residual=use_residual)

    # Advisory cost estimate (executed/padded dims; bf16 weights).
    flops = 2 * N * R * HW * Chp * Cp * 10            # 1x1 conv + 9 fused taps
    weight_bytes = int(2 * (w1_all.size + w2_all.size) +
                       4 * (s1_all.size + b1_all.size +
                            s2_all.size + b2_all.size))
    act_itemsize = x_nhwc.dtype.itemsize
    bytes_accessed = 2 * N * HW * C * act_itemsize + weight_bytes

    # VMEM demand: double-buffered native-C x/out blocks, resident weights,
    # resident activation + y1 staging scratch, matmul temporaries.
    block_bytes = (
        2 * 2 * HW * C * act_itemsize                       # x + out blocks
        + weight_bytes                                      # resident weights
        + HW * Cp * 4 + (H + 2) * W * Chp * 4               # act + y1 scratch
        + HW * (3 * Chp * 2 + 2 * Cp * 4 + Chp * 4))        # slab/acc/y1 temps
    phys = _physical_vmem_bytes()
    vmem_limit = int(min(int(0.85 * phys),
                         max(2 * block_bytes, 32 * 2**20)))

    out = pl.pallas_call(
        kernel,
        out_shape=jax.ShapeDtypeStruct((N, H, W, C), x_nhwc.dtype),
        grid_spec=pltpu.PrefetchScalarGridSpec(
            num_scalar_prefetch=0,
            grid=(N, R),
            in_specs=[
                pl.BlockSpec((1, H, W, C), lambda n, r: (n, 0, 0, 0)),        # x
                pl.BlockSpec((R, Cp, Chp), lambda n, r: (0, 0, 0)),           # w1 (resident)
                pl.BlockSpec((R, 1, Chp), lambda n, r: (0, 0, 0)),            # bn1 scale
                pl.BlockSpec((R, 1, Chp), lambda n, r: (0, 0, 0)),            # bn1 bias
                pl.BlockSpec((R * 3, 3 * Chp, Cp), lambda n, r: (0, 0, 0)),   # w2 (tap-fused)
                pl.BlockSpec((R, 1, Cp), lambda n, r: (0, 0, 0)),             # bn2 scale
                pl.BlockSpec((R, 1, Cp), lambda n, r: (0, 0, 0)),             # bn2 bias
            ],
            out_specs=pl.BlockSpec((1, H, W, C), lambda n, r: (n, 0, 0, 0)),
            scratch_shapes=[
                pltpu.VMEM((HW, Cp), jnp.float32),           # resident activation
                pltpu.VMEM((H + 2, W, Chp), jnp.float32),    # H-padded y1 staging
            ],
        ),
        compiler_params=pltpu.CompilerParams(
            dimension_semantics=("parallel", "arbitrary"),
            vmem_limit_bytes=vmem_limit),
        cost_estimate=pl.CostEstimate(flops=int(flops), transcendentals=0,
                                      bytes_accessed=int(bytes_accessed)),
    )(x_nhwc, w1_all, s1_all, b1_all, w2_all, s2_all, b2_all)
    return out


# ---------------------------------------------------------------------------
# Deterministic parameter initialization (synthetic; eval-mode BN folded)
# ---------------------------------------------------------------------------
def _fold_bn(gamma, beta, mean, var):
    scale = gamma / jnp.sqrt(var + BN_EPS)
    bias = beta - mean * scale
    return scale[None, :], bias[None, :]


def init_residual_block(key, channels, num_repeats):
    Ch = channels // 2
    params = []
    for r in range(num_repeats):
        ks = jax.random.split(jax.random.fold_in(key, r), 10)
        # conv1: torch weight (Ch, C, 1, 1) -> matmul weight (C, Ch)
        w1_t = 0.05 * jax.random.normal(ks[0], (Ch, channels), jnp.float32)
        w1 = jnp.transpose(w1_t)
        g1 = 1.0 + 0.1 * jax.random.normal(ks[1], (Ch,), jnp.float32)
        be1 = 0.1 * jax.random.normal(ks[2], (Ch,), jnp.float32)
        m1 = 0.1 * jax.random.normal(ks[3], (Ch,), jnp.float32)
        v1 = jnp.abs(jax.random.normal(ks[4], (Ch,), jnp.float32)) + 0.5
        s1, b1 = _fold_bn(g1, be1, m1, v1)

        # conv2: torch weight (C, Ch, 3, 3) -> HWIO (3, 3, Ch, C)
        w2_t = 0.05 * jax.random.normal(ks[5], (channels, Ch, 3, 3), jnp.float32)
        w2 = jnp.transpose(w2_t, (2, 3, 1, 0))
        g2 = 1.0 + 0.1 * jax.random.normal(ks[6], (channels,), jnp.float32)
        be2 = 0.1 * jax.random.normal(ks[7], (channels,), jnp.float32)
        m2 = 0.1 * jax.random.normal(ks[8], (channels,), jnp.float32)
        v2 = jnp.abs(jax.random.normal(ks[9], (channels,), jnp.float32)) + 0.5
        s2, b2 = _fold_bn(g2, be2, m2, v2)

        params.append((w1, s1, b1, w2, s2, b2))
    return params


# ---------------------------------------------------------------------------
# Pure-JAX reference (f32; the kernel uses bf16 MXU operands)
# ---------------------------------------------------------------------------
def ref_forward(x_nhwc, all_params, use_residual=True):
    y = x_nhwc
    for (w1, s1, b1, w2, s2, b2) in all_params:
        h = jax.lax.conv_general_dilated(
            y, w1[None, None], (1, 1), 'VALID',
            dimension_numbers=('NHWC', 'HWIO', 'NHWC'))
        h = _leaky(h * s1 + b1)
        h2 = jax.lax.conv_general_dilated(
            h, w2, (1, 1), ((1, 1), (1, 1)),
            dimension_numbers=('NHWC', 'HWIO', 'NHWC'))
        h2 = _leaky(h2 * s2 + b2)
        y = y + h2 if use_residual else h2
    return y


if __name__ == "__main__":
    key = jax.random.PRNGKey(0)
    N, C, H, W = 2, 16, 16, 16          # channels // 2 == 8
    num_repeats = 2
    use_residual = True

    x_nchw = jax.random.normal(jax.random.fold_in(key, 123),
                               (N, C, H, W), jnp.float32)
    x_nhwc = jnp.transpose(x_nchw, (0, 2, 3, 1))

    params = init_residual_block(jax.random.fold_in(key, 7), C, num_repeats)

    y = residual_block_forward(x_nhwc, params, use_residual=use_residual)
    y = jax.block_until_ready(y)

    y_ref = ref_forward(x_nhwc, params, use_residual=use_residual)
    # Tolerance accounts for bf16 MXU operands vs the f32 reference.
    if not jnp.allclose(y, y_ref, atol=5e-2, rtol=5e-2):
        err = float(jnp.max(jnp.abs(y - y_ref)))
        raise RuntimeError(
            f"Pallas kernel output does not match reference (max err {err})")

    print("KERNEL_OK")
</pallas_src>

<mosaic_0001>
module attributes {stable_mosaic.version = 11 : i64} {
  func.func @residual_block_kernel(%arg0: i32, %arg1: i32, %arg2: memref<1x16x16x16xf32, #tpu.memory_space<vmem>>, %arg3: memref<2x128x128xbf16, #tpu.memory_space<vmem>>, %arg4: memref<2x1x128xf32, #tpu.memory_space<vmem>>, %arg5: memref<2x1x128xf32, #tpu.memory_space<vmem>>, %arg6: memref<6x384x128xbf16, #tpu.memory_space<vmem>>, %arg7: memref<2x1x128xf32, #tpu.memory_space<vmem>>, %arg8: memref<2x1x128xf32, #tpu.memory_space<vmem>>, %arg9: memref<1x16x16x16xf32, #tpu.memory_space<vmem>>, %arg10: memref<256x128xf32, #tpu.memory_space<vmem>>, %arg11: memref<18x16x128xf32, #tpu.memory_space<vmem>>) attributes {dimension_semantics = [#tpu.dimension_semantics<parallel>, #tpu.dimension_semantics<arbitrary>], iteration_bounds = array<i64: 2, 2>, scalar_prefetch = 0 : i64, scratch_operands = 2 : i64, tpu.core_type = #tpu.core_type<tc>, window_params = [{transform_indices = @transform_0, window_bounds = array<i64: 1, 16, 16, 16>}, {pipeline_mode = #tpu.pipeline_mode<synchronous>, transform_indices = @transform_1, window_bounds = array<i64: 2, 128, 128>}, {pipeline_mode = #tpu.pipeline_mode<synchronous>, transform_indices = @transform_2, window_bounds = array<i64: 2, 1, 128>}, {pipeline_mode = #tpu.pipeline_mode<synchronous>, transform_indices = @transform_3, window_bounds = array<i64: 2, 1, 128>}, {pipeline_mode = #tpu.pipeline_mode<synchronous>, transform_indices = @transform_4, window_bounds = array<i64: 6, 384, 128>}, {pipeline_mode = #tpu.pipeline_mode<synchronous>, transform_indices = @transform_5, window_bounds = array<i64: 2, 1, 128>}, {pipeline_mode = #tpu.pipeline_mode<synchronous>, transform_indices = @transform_6, window_bounds = array<i64: 2, 1, 128>}, {transform_indices = @transform_7, window_bounds = array<i64: 1, 16, 16, 16>}]} {
    %c0_i32 = arith.constant 0 : i32
    %0 = arith.cmpi eq, %arg1, %c0_i32 : i32
    %1 = arith.extui %0 : i1 to i32
    %c0_i32_0 = arith.constant 0 : i32
    %2 = arith.cmpi ne, %1, %c0_i32_0 : i32
    scf.if %2 {
      %c0_61 = arith.constant 0 : index
      %c0_62 = arith.constant 0 : index
      %c0_63 = arith.constant 0 : index
      %c0_64 = arith.constant 0 : index
      %136 = vector.load %arg2[%c0_61, %c0_62, %c0_63, %c0_64] : memref<1x16x16x16xf32, #tpu.memory_space<vmem>>, vector<1x16x16x16xf32>
      %137 = vector.shape_cast %136 : vector<1x16x16x16xf32> to vector<16x16x16xf32>
      %138 = vector.shape_cast %137 : vector<16x16x16xf32> to vector<256x16xf32>
      %cst_65 = arith.constant 0.000000e+00 : f32
      %139 = vector.broadcast %cst_65 : f32 to vector<256x112xf32>
      %140 = tpu.concatenate %138, %139 in 1 : vector<256x16xf32>, vector<256x112xf32> -> vector<256x128xf32>
      %c0_66 = arith.constant 0 : index
      %c0_67 = arith.constant 0 : index
      %141 = vector.load %arg10[%c0_66, %c0_67] : memref<256x128xf32, #tpu.memory_space<vmem>>, vector<256x128xf32>
      tpu.vector_store %arg10[%c0_66, %c0_67], %140 {strides = array<i32>} : memref<256x128xf32, #tpu.memory_space<vmem>>, vector<256x128xf32>,
      %cst_68 = arith.constant 0.000000e+00 : f32
      %142 = vector.broadcast %cst_68 : f32 to vector<16x128xf32>
      %c0_69 = arith.constant 0 : index
      %c0_70 = arith.constant 0 : index
      %c0_71 = arith.constant 0 : index
      %143 = vector.load %arg11[%c0_69, %c0_70, %c0_71] : memref<18x16x128xf32, #tpu.memory_space<vmem>>, vector<1x16x128xf32>
      %144 = vector.shape_cast %143 : vector<1x16x128xf32> to vector<16x128xf32>
      %145 = vector.shape_cast %142 : vector<16x128xf32> to vector<1x16x128xf32>
      tpu.vector_store %arg11[%c0_69, %c0_70, %c0_71], %145 {strides = array<i32>} : memref<18x16x128xf32, #tpu.memory_space<vmem>>, vector<1x16x128xf32>,
      %cst_72 = arith.constant 0.000000e+00 : f32
      %146 = vector.broadcast %cst_72 : f32 to vector<16x128xf32>
      %c17 = arith.constant 17 : index
      %c0_73 = arith.constant 0 : index
      %c0_74 = arith.constant 0 : index
      %147 = vector.load %arg11[%c17, %c0_73, %c0_74] : memref<18x16x128xf32, #tpu.memory_space<vmem>>, vector<1x16x128xf32>
      %148 = vector.shape_cast %147 : vector<1x16x128xf32> to vector<16x128xf32>
      %149 = vector.shape_cast %146 : vector<16x128xf32> to vector<1x16x128xf32>
      tpu.vector_store %arg11[%c17, %c0_73, %c0_74], %149 {strides = array<i32>} : memref<18x16x128xf32, #tpu.memory_space<vmem>>, vector<1x16x128xf32>,
    } else {
    }
    %c0 = arith.constant 0 : index
    %c0_1 = arith.constant 0 : index
    %3 = vector.load %arg10[%c0, %c0_1] : memref<256x128xf32, #tpu.memory_space<vmem>>, vector<256x128xf32>
    %4 = arith.truncf %3 : vector<256x128xf32> to vector<256x128xbf16>
    %5 = arith.index_cast %arg1 : i32 to index
    %c0_2 = arith.constant 0 : index
    %c0_3 = arith.constant 0 : index
    %6 = vector.load %arg3[%5, %c0_2, %c0_3] : memref<2x128x128xbf16, #tpu.memory_space<vmem>>, vector<1x128x128xbf16>
    %7 = vector.shape_cast %6 : vector<1x128x128xbf16> to vector<128x128xbf16>
    %cst = arith.constant dense<0.000000e+00> : vector<256x128xf32>
    %8 = tpu.matmul %4, %7, %cst {dimension_numbers = #tpu.dot_dimension_numbers<[1], [0], [0], [1], [0, 0, 1, 1], [], []>} : vector<256x128xbf16>, vector<128x128xbf16>, vector<256x128xf32> -> vector<256x128xf32>
    %9 = arith.index_cast %arg1 : i32 to index
    %c0_4 = arith.constant 0 : index
    %c0_5 = arith.constant 0 : index
    %10 = vector.load %arg4[%9, %c0_4, %c0_5] : memref<2x1x128xf32, #tpu.memory_space<vmem>>, vector<1x1x128xf32>
    %11 = vector.shape_cast %10 : vector<1x1x128xf32> to vector<1x128xf32>
    %12 = vector.broadcast %11 : vector<1x128xf32> to vector<256x128xf32>
    %13 = arith.mulf %8, %12 : vector<256x128xf32>
    %14 = arith.index_cast %arg1 : i32 to index
    %c0_6 = arith.constant 0 : index
    %c0_7 = arith.constant 0 : index
    %15 = vector.load %arg5[%14, %c0_6, %c0_7] : memref<2x1x128xf32, #tpu.memory_space<vmem>>, vector<1x1x128xf32>
    %16 = vector.shape_cast %15 : vector<1x1x128xf32> to vector<1x128xf32>
    %17 = vector.broadcast %16 : vector<1x128xf32> to vector<256x128xf32>
    %18 = arith.addf %13, %17 : vector<256x128xf32>
    %cst_8 = arith.constant 0.000000e+00 : f32
    %19 = vector.broadcast %cst_8 : f32 to vector<256x128xf32>
    %20 = arith.cmpf oge, %18, %19 : vector<256x128xf32>
    %cst_9 = arith.constant 0.1015625 : f32
    %21 = vector.broadcast %cst_9 : f32 to vector<256x128xf32>
    %22 = arith.mulf %21, %18 : vector<256x128xf32>
    %23 = arith.select %20, %18, %22 : vector<256x128xi1>, vector<256x128xf32>
    %24 = vector.shape_cast %23 : vector<256x128xf32> to vector<16x16x128xf32>
    %c1 = arith.constant 1 : index
    %c0_10 = arith.constant 0 : index
    %c0_11 = arith.constant 0 : index
    %25 = vector.load %arg11[%c1, %c0_10, %c0_11] : memref<18x16x128xf32, #tpu.memory_space<vmem>>, vector<16x16x128xf32>
    tpu.vector_store %arg11[%c1, %c0_10, %c0_11], %24 {strides = array<i32>} : memref<18x16x128xf32, #tpu.memory_space<vmem>>, vector<16x16x128xf32>,
    %26 = tpu.iota {dimensions = array<i32: 0>} : vector<256x1xi32>
    %c16_i32 = arith.constant 16 : i32
    %c0_i32_12 = arith.constant 0 : i32
    %27 = arith.cmpi eq, %c16_i32, %c0_i32_12 : i32
    %c1_i32 = arith.constant 1 : i32
    %28 = arith.select %27, %c1_i32, %c16_i32 : i32
    %29 = vector.broadcast %28 : i32 to vector<256x1xi32>
    %30 = arith.remsi %26, %29 : vector<256x1xi32>
    %c0_i32_13 = arith.constant 0 : i32
    %31 = vector.broadcast %c0_i32_13 : i32 to vector<256x1xi32>
    %32 = arith.cmpi ne, %30, %31 : vector<256x1xi32>
    %c0_i32_14 = arith.constant 0 : i32
    %33 = vector.broadcast %c0_i32_14 : i32 to vector<256x1xi32>
    %34 = arith.cmpi slt, %30, %33 : vector<256x1xi32>
    %c0_i32_15 = arith.constant 0 : i32
    %35 = arith.cmpi slt, %28, %c0_i32_15 : i32
    %36 = vector.broadcast %35 : i1 to vector<256x1xi1>
    %37 = vector.broadcast %36 : vector<256x1xi1> to vector<256x1xi1>
    %38 = arith.xori %34, %37 : vector<256x1xi1>
    %39 = arith.andi %38, %32 : vector<256x1xi1>
    %40 = vector.broadcast %28 : i32 to vector<256x1xi32>
    %41 = arith.addi %30, %40 : vector<256x1xi32>
    %42 = arith.select %39, %41, %30 : vector<256x1xi1>, vector<256x1xi32>
    %c0_i32_16 = arith.constant 0 : i32
    %43 = vector.broadcast %c0_i32_16 : i32 to vector<256x1xi32>
    %44 = arith.cmpi eq, %42, %43 : vector<256x1xi32>
    %c15_i32 = arith.constant 15 : i32
    %45 = vector.broadcast %c15_i32 : i32 to vector<256x1xi32>
    %46 = arith.cmpi eq, %42, %45 : vector<256x1xi32>
    %c0_17 = arith.constant 0 : index
    %c0_18 = arith.constant 0 : index
    %c0_19 = arith.constant 0 : index
    %47 = vector.load %arg11[%c0_17, %c0_18, %c0_19] : memref<18x16x128xf32, #tpu.memory_space<vmem>>, vector<16x16x128xf32>
    %48 = vector.shape_cast %47 : vector<16x16x128xf32> to vector<256x128xf32>
    %c1_i32_20 = arith.constant 1 : i32
    %49 = tpu.dynamic_rotate %48 by %c1_i32_20 dim 0 : vector<256x128xf32>, i32 -> vector<256x128xf32>
    %cst_21 = arith.constant 0.000000e+00 : f32
    %50 = vector.shape_cast %44 : vector<256x1xi1> to vector<256x1xi1>
    %51 = vector.broadcast %50 : vector<256x1xi1> to vector<256x128xi1>
    %52 = vector.broadcast %cst_21 : f32 to vector<256x128xf32>
    %53 = arith.select %51, %52, %49 : vector<256x128xi1>, vector<256x128xf32>
    %c255_i32 = arith.constant 255 : i32
    %54 = tpu.dynamic_rotate %48 by %c255_i32 dim 0 : vector<256x128xf32>, i32 -> vector<256x128xf32>
    %cst_22 = arith.constant 0.000000e+00 : f32
    %55 = vector.shape_cast %46 : vector<256x1xi1> to vector<256x1xi1>
    %56 = vector.broadcast %55 : vector<256x1xi1> to vector<256x128xi1>
    %57 = vector.broadcast %cst_22 : f32 to vector<256x128xf32>
    %58 = arith.select %56, %57, %54 : vector<256x128xi1>, vector<256x128xf32>
    %59 = arith.truncf %53 : vector<256x128xf32> to vector<256x128xbf16>
    %60 = arith.truncf %48 : vector<256x128xf32> to vector<256x128xbf16>
    %61 = arith.truncf %58 : vector<256x128xf32> to vector<256x128xbf16>
    %62 = tpu.concatenate %59, %60, %61 in 1 : vector<256x128xbf16>, vector<256x128xbf16>, vector<256x128xbf16> -> vector<256x384xbf16>
    %c3_i32 = arith.constant 3 : i32
    %63 = arith.muli %arg1, %c3_i32 : i32
    %c0_i32_23 = arith.constant 0 : i32
    %64 = arith.addi %63, %c0_i32_23 : i32
    %65 = arith.index_cast %64 : i32 to index
    %c0_24 = arith.constant 0 : index
    %c0_25 = arith.constant 0 : index
    %66 = vector.load %arg6[%65, %c0_24, %c0_25] : memref<6x384x128xbf16, #tpu.memory_space<vmem>>, vector<1x384x128xbf16>
    %67 = vector.shape_cast %66 : vector<1x384x128xbf16> to vector<384x128xbf16>
    %cst_26 = arith.constant dense<0.000000e+00> : vector<256x128xf32>
    %68 = tpu.matmul %62, %67, %cst_26 {dimension_numbers = #tpu.dot_dimension_numbers<[1], [0], [0], [1], [0, 0, 1, 1], [], []>} : vector<256x384xbf16>, vector<384x128xbf16>, vector<256x128xf32> -> vector<256x128xf32>
    %c1_27 = arith.constant 1 : index
    %c0_28 = arith.constant 0 : index
    %c0_29 = arith.constant 0 : index
    %69 = vector.load %arg11[%c1_27, %c0_28, %c0_29] : memref<18x16x128xf32, #tpu.memory_space<vmem>>, vector<16x16x128xf32>
    %70 = vector.shape_cast %69 : vector<16x16x128xf32> to vector<256x128xf32>
    %c1_i32_30 = arith.constant 1 : i32
    %71 = tpu.dynamic_rotate %70 by %c1_i32_30 dim 0 : vector<256x128xf32>, i32 -> vector<256x128xf32>
    %cst_31 = arith.constant 0.000000e+00 : f32
    %72 = vector.shape_cast %44 : vector<256x1xi1> to vector<256x1xi1>
    %73 = vector.broadcast %72 : vector<256x1xi1> to vector<256x128xi1>
    %74 = vector.broadcast %cst_31 : f32 to vector<256x128xf32>
    %75 = arith.select %73, %74, %71 : vector<256x128xi1>, vector<256x128xf32>
    %c255_i32_32 = arith.constant 255 : i32
    %76 = tpu.dynamic_rotate %70 by %c255_i32_32 dim 0 : vector<256x128xf32>, i32 -> vector<256x128xf32>
    %cst_33 = arith.constant 0.000000e+00 : f32
    %77 = vector.shape_cast %46 : vector<256x1xi1> to vector<256x1xi1>
    %78 = vector.broadcast %77 : vector<256x1xi1> to vector<256x128xi1>
    %79 = vector.broadcast %cst_33 : f32 to vector<256x128xf32>
    %80 = arith.select %78, %79, %76 : vector<256x128xi1>, vector<256x128xf32>
    %81 = arith.truncf %75 : vector<256x128xf32> to vector<256x128xbf16>
    %82 = arith.truncf %70 : vector<256x128xf32> to vector<256x128xbf16>
    %83 = arith.truncf %80 : vector<256x128xf32> to vector<256x128xbf16>
    %84 = tpu.concatenate %81, %82, %83 in 1 : vector<256x128xbf16>, vector<256x128xbf16>, vector<256x128xbf16> -> vector<256x384xbf16>
    %c3_i32_34 = arith.constant 3 : i32
    %85 = arith.muli %arg1, %c3_i32_34 : i32
    %c1_i32_35 = arith.constant 1 : i32
    %86 = arith.addi %85, %c1_i32_35 : i32
    %87 = arith.index_cast %86 : i32 to index
    %c0_36 = arith.constant 0 : index
    %c0_37 = arith.constant 0 : index
    %88 = vector.load %arg6[%87, %c0_36, %c0_37] : memref<6x384x128xbf16, #tpu.memory_space<vmem>>, vector<1x384x128xbf16>
    %89 = vector.shape_cast %88 : vector<1x384x128xbf16> to vector<384x128xbf16>
    %cst_38 = arith.constant dense<0.000000e+00> : vector<256x128xf32>
    %90 = tpu.matmul %84, %89, %cst_38 {dimension_numbers = #tpu.dot_dimension_numbers<[1], [0], [0], [1], [0, 0, 1, 1], [], []>} : vector<256x384xbf16>, vector<384x128xbf16>, vector<256x128xf32> -> vector<256x128xf32>
    %91 = arith.addf %68, %90 : vector<256x128xf32>
    %c2 = arith.constant 2 : index
    %c0_39 = arith.constant 0 : index
    %c0_40 = arith.constant 0 : index
    %92 = vector.load %arg11[%c2, %c0_39, %c0_40] : memref<18x16x128xf32, #tpu.memory_space<vmem>>, vector<16x16x128xf32>
    %93 = vector.shape_cast %92 : vector<16x16x128xf32> to vector<256x128xf32>
    %c1_i32_41 = arith.constant 1 : i32
    %94 = tpu.dynamic_rotate %93 by %c1_i32_41 dim 0 : vector<256x128xf32>, i32 -> vector<256x128xf32>
    %cst_42 = arith.constant 0.000000e+00 : f32
    %95 = vector.shape_cast %44 : vector<256x1xi1> to vector<256x1xi1>
    %96 = vector.broadcast %95 : vector<256x1xi1> to vector<256x128xi1>
    %97 = vector.broadcast %cst_42 : f32 to vector<256x128xf32>
    %98 = arith.select %96, %97, %94 : vector<256x128xi1>, vector<256x128xf32>
    %c255_i32_43 = arith.constant 255 : i32
    %99 = tpu.dynamic_rotate %93 by %c255_i32_43 dim 0 : vector<256x128xf32>, i32 -> vector<256x128xf32>
    %cst_44 = arith.constant 0.000000e+00 : f32
    %100 = vector.shape_cast %46 : vector<256x1xi1> to vector<256x1xi1>
    %101 = vector.broadcast %100 : vector<256x1xi1> to vector<256x128xi1>
    %102 = vector.broadcast %cst_44 : f32 to vector<256x128xf32>
    %103 = arith.select %101, %102, %99 : vector<256x128xi1>, vector<256x128xf32>
    %104 = arith.truncf %98 : vector<256x128xf32> to vector<256x128xbf16>
    %105 = arith.truncf %93 : vector<256x128xf32> to vector<256x128xbf16>
    %106 = arith.truncf %103 : vector<256x128xf32> to vector<256x128xbf16>
    %107 = tpu.concatenate %104, %105, %106 in 1 : vector<256x128xbf16>, vector<256x128xbf16>, vector<256x128xbf16> -> vector<256x384xbf16>
    %c3_i32_45 = arith.constant 3 : i32
    %108 = arith.muli %arg1, %c3_i32_45 : i32
    %c2_i32 = arith.constant 2 : i32
    %109 = arith.addi %108, %c2_i32 : i32
    %110 = arith.index_cast %109 : i32 to index
    %c0_46 = arith.constant 0 : index
    %c0_47 = arith.constant 0 : index
    %111 = vector.load %arg6[%110, %c0_46, %c0_47] : memref<6x384x128xbf16, #tpu.memory_space<vmem>>, vector<1x384x128xbf16>
    %112 = vector.shape_cast %111 : vector<1x384x128xbf16> to vector<384x128xbf16>
    %cst_48 = arith.constant dense<0.000000e+00> : vector<256x128xf32>
    %113 = tpu.matmul %107, %112, %cst_48 {dimension_numbers = #tpu.dot_dimension_numbers<[1], [0], [0], [1], [0, 0, 1, 1], [], []>} : vector<256x384xbf16>, vector<384x128xbf16>, vector<256x128xf32> -> vector<256x128xf32>
    %114 = arith.addf %91, %113 : vector<256x128xf32>
    %115 = arith.index_cast %arg1 : i32 to index
    %c0_49 = arith.constant 0 : index
    %c0_50 = arith.constant 0 : index
    %116 = vector.load %arg7[%115, %c0_49, %c0_50] : memref<2x1x128xf32, #tpu.memory_space<vmem>>, vector<1x1x128xf32>
    %117 = vector.shape_cast %116 : vector<1x1x128xf32> to vector<1x128xf32>
    %118 = vector.broadcast %117 : vector<1x128xf32> to vector<256x128xf32>
    %119 = arith.mulf %114, %118 : vector<256x128xf32>
    %120 = arith.index_cast %arg1 : i32 to index
    %c0_51 = arith.constant 0 : index
    %c0_52 = arith.constant 0 : index
    %121 = vector.load %arg8[%120, %c0_51, %c0_52] : memref<2x1x128xf32, #tpu.memory_space<vmem>>, vector<1x1x128xf32>
    %122 = vector.shape_cast %121 : vector<1x1x128xf32> to vector<1x128xf32>
    %123 = vector.broadcast %122 : vector<1x128xf32> to vector<256x128xf32>
    %124 = arith.addf %119, %123 : vector<256x128xf32>
    %cst_53 = arith.constant 0.000000e+00 : f32
    %125 = vector.broadcast %cst_53 : f32 to vector<256x128xf32>
    %126 = arith.cmpf oge, %124, %125 : vector<256x128xf32>
    %cst_54 = arith.constant 0.1015625 : f32
    %127 = vector.broadcast %cst_54 : f32 to vector<256x128xf32>
    %128 = arith.mulf %127, %124 : vector<256x128xf32>
    %129 = arith.select %126, %124, %128 : vector<256x128xi1>, vector<256x128xf32>
    %c0_55 = arith.constant 0 : index
    %c0_56 = arith.constant 0 : index
    %130 = vector.load %arg10[%c0_55, %c0_56] : memref<256x128xf32, #tpu.memory_space<vmem>>, vector<256x128xf32>
    %131 = arith.addf %129, %130 : vector<256x128xf32>
    %c0_57 = arith.constant 0 : index
    %c0_58 = arith.constant 0 : index
    %132 = vector.load %arg10[%c0_57, %c0_58] : memref<256x128xf32, #tpu.memory_space<vmem>>, vector<256x128xf32>
    tpu.vector_store %arg10[%c0_57, %c0_58], %131 {strides = array<i32>} : memref<256x128xf32, #tpu.memory_space<vmem>>, vector<256x128xf32>,
    %c1_i32_59 = arith.constant 1 : i32
    %133 = arith.cmpi eq, %arg1, %c1_i32_59 : i32
    %134 = arith.extui %133 : i1 to i32
    %c0_i32_60 = arith.constant 0 : i32
    %135 = arith.cmpi ne, %134, %c0_i32_60 : i32
    scf.if %135 {
      %c0_61 = arith.constant 0 : index
      %c0_62 = arith.constant 0 : index
      %136 = vector.load %arg10[%c0_61, %c0_62] : memref<256x128xf32, #tpu.memory_space<vmem>>, vector<256x16xf32>
      %137 = vector.shape_cast %136 : vector<256x16xf32> to vector<1x16x16x16xf32>
      %c0_63 = arith.constant 0 : index
      %c0_64 = arith.constant 0 : index
      %c0_65 = arith.constant 0 : index
      %c0_66 = arith.constant 0 : index
      %138 = vector.load %arg9[%c0_63, %c0_64, %c0_65, %c0_66] : memref<1x16x16x16xf32, #tpu.memory_space<vmem>>, vector<1x16x16x16xf32>
      tpu.vector_store %arg9[%c0_63, %c0_64, %c0_65, %c0_66], %137 {strides = array<i32>} : memref<1x16x16x16xf32, #tpu.memory_space<vmem>>, vector<1x16x16x16xf32>,
    } else {
    }
    return
  }
  func.func @transform_0(%arg0: i32, %arg1: i32) -> (i32, i32, i32, i32) {
    %c0_i32 = arith.constant 0 : i32
    %c0_i32_0 = arith.constant 0 : i32
    %c0_i32_1 = arith.constant 0 : i32
    %c0_i32_2 = arith.constant 0 : i32
    return %arg0, %c0_i32, %c0_i32_0, %c0_i32_1 : i32, i32, i32, i32
  }
  func.func @transform_1(%arg0: i32, %arg1: i32) -> (i32, i32, i32) {
    %c0_i32 = arith.constant 0 : i32
    %c0_i32_0 = arith.constant 0 : i32
    %c0_i32_1 = arith.constant 0 : i32
    %c0_i32_2 = arith.constant 0 : i32
    return %c0_i32, %c0_i32_0, %c0_i32_1 : i32, i32, i32
  }
  func.func @transform_2(%arg0: i32, %arg1: i32) -> (i32, i32, i32) {
    %c0_i32 = arith.constant 0 : i32
    %c0_i32_0 = arith.constant 0 : i32
    %c0_i32_1 = arith.constant 0 : i32
    %c0_i32_2 = arith.constant 0 : i32
    return %c0_i32, %c0_i32_0, %c0_i32_1 : i32, i32, i32
  }
  func.func @transform_3(%arg0: i32, %arg1: i32) -> (i32, i32, i32) {
    %c0_i32 = arith.constant 0 : i32
    %c0_i32_0 = arith.constant 0 : i32
    %c0_i32_1 = arith.constant 0 : i32
    %c0_i32_2 = arith.constant 0 : i32
    return %c0_i32, %c0_i32_0, %c0_i32_1 : i32, i32, i32
  }
  func.func @transform_4(%arg0: i32, %arg1: i32) -> (i32, i32, i32) {
    %c0_i32 = arith.constant 0 : i32
    %c0_i32_0 = arith.constant 0 : i32
    %c0_i32_1 = arith.constant 0 : i32
    %c0_i32_2 = arith.constant 0 : i32
    return %c0_i32, %c0_i32_0, %c0_i32_1 : i32, i32, i32
  }
  func.func @transform_5(%arg0: i32, %arg1: i32) -> (i32, i32, i32) {
    %c0_i32 = arith.constant 0 : i32
    %c0_i32_0 = arith.constant 0 : i32
    %c0_i32_1 = arith.constant 0 : i32
    %c0_i32_2 = arith.constant 0 : i32
    return %c0_i32, %c0_i32_0, %c0_i32_1 : i32, i32, i32
  }
  func.func @transform_6(%arg0: i32, %arg1: i32) -> (i32, i32, i32) {
    %c0_i32 = arith.constant 0 : i32
    %c0_i32_0 = arith.constant 0 : i32
    %c0_i32_1 = arith.constant 0 : i32
    %c0_i32_2 = arith.constant 0 : i32
    return %c0_i32, %c0_i32_0, %c0_i32_1 : i32, i32, i32
  }
  func.func @transform_7(%arg0: i32, %arg1: i32) -> (i32, i32, i32, i32) {
    %c0_i32 = arith.constant 0 : i32
    %c0_i32_0 = arith.constant 0 : i32
    %c0_i32_1 = arith.constant 0 : i32
    %c0_i32_2 = arith.constant 0 : i32
    return %arg0, %c0_i32, %c0_i32_0, %c0_i32_1 : i32, i32, i32, i32
  }
}

</mosaic_0001>

<bundles_post_ra>
// kernel: tpu_custom_call.1
= control target key start
LH: loop header
LB: loop body
LE: loop exit
PB: predicated region body
PF: predicated region fallthrough
CT: control target
= control target key end

     0   :  { %s9701_s0 = inlined_call_operand.hbm [shape: f32[2,16,16,16], index: 0, kind: input, shape index: {}]   ;;  %s9702_s1 = inlined_call_operand.hbm [shape: bf16[2,128,128], index: 1, kind: input, shape index: {}]   ;;  %s9703_s2 = inlined_call_operand.hbm [shape: f32[2,1,128], index: 2, kind: input, shape index: {}]   ;;  %s9704_s3 = inlined_call_operand.vmem [shape: f32[2,1,128], index: 3, kind: input, shape index: {}]   ;;  %s9705_s4 = inlined_call_operand.hbm [shape: bf16[6,384,128], index: 4, kind: input, shape index: {}]   ;;  %s9706_s5 = inlined_call_operand.vmem [shape: f32[2,1,128], index: 5, kind: input, shape index: {}]   ;;  %s9707_s6 = inlined_call_operand.hbm [shape: f32[2,1,128], index: 6, kind: input, shape index: {}]   ;;  %s9708_s7 = inlined_call_operand.hbm [shape: f32[2,16,16,16], index: 7, kind: output, shape index: {}]  }
   0x1   :  { %9913 = sst [smem:[#allocation152_spill]] %s9702_s1 }
   0x2   :  { %9914 = sst [smem:[#allocation153_spill]] %s9703_s2 }
   0x3   :  { %9915 = sst [smem:[#allocation154_spill]] %s9705_s4 }
   0x4   :  { %9916 = sst [smem:[#allocation155_spill]] %s9707_s6 }
   0x5   :  { %12 = vsyncpa [#allocation5], 0 }
   0x6   :  { %14 = vsyncpa [#allocation5 + $0x1], 0 }
   0x7   :  { %15 = vsyncpa [#allocation8], 0 }
   0x8   :  { %16 = vsyncpa [#allocation11], 0 }
   0x9   :  { %17 = vsyncpa [#allocation6], 0 }
   0xa   :  { %19 = vsyncpa [#allocation6 + $0x1], 0  ;;  %s6292_s24 = smov 0   ;;  %s6294_s25 = smov 0  }
   0xb   :  { %s6296_s26 = smov 0   ;;  %s6298_s27 = smov 0  }
   0xc   :  { %s6300_s28 = smov 0   ;;  %s6302_s29 = smov 0  }
   0xd   :  { %s6304_s30 = smov 0   ;;  %s6306_s8 = smov 0  }
   0xe LB: > { %9917 = sst [smem:[#allocation18_spill]] %s6209_s24  ;;  %s5236_s9 = sadd.s32 4294967295, %s6237_s8   ;;  %s6237_s8 = sphi %s6306_s8, %s25_s8   ;;  %s6233_s30 = sphi %s6304_s30, %s10721_s30   ;;  %s6229_s29 = sphi %s6302_s29, %s10716_s29   ;;  %s6225_s28 = sphi %s6300_s28, %s10720_s28   ;;  %s6221_s27 = sphi %s6298_s27, %s10715_s27   ;;  %s6217_s26 = sphi %s6296_s26, %s10719_s26   ;;  %s6213_s25 = sphi %s6294_s25, %s10718_s25   ;;  %s6209_s24 = sphi %s6292_s24, %s10717_s24  }
   0xf   : > { %9918 = sst [smem:[#allocation19_spill]] %s6229_s29  ;;  %s5237_s10 = sadd.s32 4294967294, %s6237_s8  }
  0x10   : > { %p57_p0 = scmp.ne.s32.totalorder %s6213_s25, %s6209_s24  ;;  %p6336_p1 = scmp.eq.s32.totalorder %s5236_s9, 0 }
  0x11   : > { %p6340_p2 = scmp.eq.s32.totalorder %s5236_s9, 3  ;;  %p213_p3 = scmp.eq.s32.totalorder %s5237_s10, 3 }
  0x12   : > { %p6346_p4 = por %p6336_p1, %p57_p0  ;;  %p5238_p5 = scmp.ge.s32.totalorder %s6237_s8, 1 }
  0x13   : > { %p6351_p6 = por %p213_p3, %p57_p0  ;;  %p220_p7 = scmp.lt.s32.totalorder %s6237_s8, 5 }
  0x14   : > { %s9924_s1 = sld [smem:[#allocation152_spill]]  ;;  %s6239_s19 = smov [#allocation7]  }
  0x15   : > { %s9922_s14 = scalar_select %p6351_p6, 1, 0 }
  0x16   : > { %p6359_p8 = pnand %p5238_p5, %p220_p7  ;;  %s233_s20 = sshll.u32 %s6239_s19, 4  ;;  %s234_s20 = int_to_ptr.vmem [resolvable:$true] %s233_s20 }
  0x17   : > { %9923 = sst [smem:[#allocation20_spill]] %s9922_s14  ;;  %s6240_s10 = smov 64  }
  0x18   : > { %p5803_p9 = pneg %p6359_p8  ;;  %s9927_s4 = sld [smem:[#allocation154_spill]] }
  0x19   : > { %s6241_s15 = smov 4   ;;  %s6242_s16 = smov [#allocation10]  }
  0x1a   : > { %s231_s17 = sshll.u32 %s9924_s1, 4  ;;  %p6367_p10 = pnand %p5803_p9, %p6336_p1  ;;  %s232_s17 = int_to_ptr.hbm [resolvable:$true] %s231_s17 }
  0x1b   : > { %s264_s19 = sshll.u32 %s6242_s16, 4  ;;  %s9928_s2 = sld [smem:[#allocation153_spill]]  ;;  %s265_s19 = int_to_ptr.vmem [resolvable:$true] %s264_s19 }
  0x1c   : > { %5806 = dma.hbm_to_vmem [thread:$0]  (!%p6367_p10), %s232_s17, 2048, %s234_s20, [#allocation8], %s6240_s10, %s6240_s10, %s6241_s15  }
  0x1d   : > { %s6243_s22 = smov [#allocation9]   ;;  %s9929_s6 = sld [smem:[#allocation155_spill]] }
  0x1e   : > { %s262_s9 = sshll.u32 %s9927_s4, 4  ;;  %s247_s23 = sshll.u32 %s6243_s22, 4  ;;  %s263_s9 = int_to_ptr.hbm [resolvable:$true] %s262_s9  ;;  %s248_s23 = int_to_ptr.vmem [resolvable:$true] %s247_s23 }
  0x1f   : > { %5812 = dma.hbm_to_vmem [thread:$0]  (!%p6367_p10), %s263_s9, 18432, %s265_s19, [#allocation11], %s6240_s10, %s6240_s10, %s6241_s15  }
  0x20   : > { %s6244_s1 = smov 16   ;;  %s6245_s14 = smov 1  }
  0x21   : > { %s245_s24 = sshll.u32 %s9928_s2, 4  ;;  %s6246_s9 = smov [#allocation12]   ;;  %s246_s24 = int_to_ptr.hbm [resolvable:$true] %s245_s24 }
  0x22   : > { %5809 = dma.hbm_to_vmem [thread:$0]  (!%p6367_p10), %s246_s24, 32, %s248_s23, [#allocation8], %s6244_s1, %s6244_s1, %s6245_s14  }
  0x23   : > { %s279_s16 = sshll.u32 %s9929_s6, 4  ;;  %s281_s10 = sshll.u32 %s6246_s9, 4  ;;  %s280_s16 = int_to_ptr.hbm [resolvable:$true] %s279_s16  ;;  %s282_s10 = int_to_ptr.vmem [resolvable:$true] %s281_s10 }
  0x24   : > { %5815 = dma.hbm_to_vmem [thread:$0]  (!%p6367_p10), %s280_s16, 32, %s282_s10, [#allocation11], %s6244_s1, %s6244_s1, %s6245_s14  }
  0x25   : > { %s34_s15 = sadd.s32 1, %s6229_s29  ;;  %s37_s19 = sadd.s32 1, %s6233_s30 }
  0x26   : > { %p35_p11 = scmp.ge.s32.totalorder %s34_s15, 2  ;;  %s44_s22 = sadd.s32 1, %s6217_s26 }
  0x27   : > { %p51_p12 = scmp.ne.s32.totalorder %s6217_s26, %s6213_s25  ;;  %p52_p13 = scmp.eq.s32.totalorder %s6237_s8, 0 }
  0x28   : > { %s10723_s15 = smov (%p35_p11, %s34_s15), 0  ;;  %s10725_s19 = smov (!%p35_p11, %s37_s19), %s6233_s30 }
  0x29   : > { %9930 = sst [smem:[#allocation21_spill]] %s10723_s15  ;;  %p6397_p0 = por %p52_p13, %p51_p12 }
  0x2a   : > { %p6403_p3 = por %p6340_p2, %p51_p12  ;;  %p39_p5 = scmp.ge.s32.totalorder %s10725_s19, 2 }
  0x2b   : > { %p5828_p7 = scmp.lt.s32.totalorder %s6237_s8, 4  ;;  %s295_s21 = sand.u32 1, %s6217_s26  }
  0x2c   : > { %s5683_s17 = sshll.u32 %s6233_s30, 8  ;;  %s10727_s19 = smov (%p39_p5, %s10725_s19), 0 }
  0x2d   : > { %s5244_s20 = sshll.u32 %s295_s21, 8  ;;  %s41_s16 = ssub.s32 %s6233_s30, %s10727_s19 }
  0x2e   : > { %p42_p9 = scmp.eq.s32.totalorder %s41_s16, 0  ;;  %s304_s12 = scalar_lea.hbm %s9701_s0, %s5683_s17 }
  0x2f   : > { %s305_s9 = sshll.u32 %s304_s12, 4  ;;  %s299_s10 = scalar_lea.vmem [#allocation4], %s5244_s20  ;;  %s306_s9 = int_to_ptr.hbm [resolvable:$true] %s305_s9 }
  0x30   : > { %s307_s2 = sshll.u32 %s299_s10, 4  ;;  %p5817_p2 = pnand %p5828_p7, %p6397_p0  ;;  %s308_s2 = int_to_ptr.vmem [resolvable:$true] %s307_s2 }
  0x31   : > { %s6418_s4 = scalar_select %p42_p9, %s6217_s26, %s44_s22  }
  0x32   : > { %s296_s6 = scalar_lea.sflag [#allocation5], %s295_s21  ;;  %s6247_s15 = smov 128  }
  0x33   : > { %s6248_s29 = smov 8   ;;  %319 = sbr.rel (%p6359_p8) target bundleno = 1255 (0x4e7), region = 48 }
  0x34   : > { %5819 = dma.hbm_to_vmem [thread:$0]  (!%p5817_p2), %s306_s9, 4096, %s308_s2, %s296_s6, %s6247_s15, %s6247_s15, %s6248_s29  }
  0x38   : > { %s6427_s17 = sand.u32 1, %s6213_s25  }
  0x39   : > { %s5248_s22 = sshll.u32 %s6427_s17, 8  ;;  %s322_s20 = scalar_lea.sflag [#allocation5], %s6427_s17 }
  0x3a   : > { %s6431_s16 = scalar_lea.vmem [#allocation4], %s5248_s22 }
  0x3b   : > { %6192 = dma.done.wait (%p6346_p4), %s322_s20, 4096  }
  0x3c   : > { %6194 = vsyncadd (%p6346_p4), %s322_s20, 4294963200 }
  0x3d   : > { %6196 = dma.done.wait (%p6336_p1), [#allocation8], 2080  }
  0x3e   : > { %6198 = vsyncadd (%p6336_p1), [#allocation8], 4294965216 }
  0x3f   : > { %6200 = dma.done.wait (%p6336_p1), [#allocation11], 18464  }
  0x40   : > { %6202 = vsyncadd (%p6336_p1), [#allocation11], 4294948832  ;;  %s6445_s2 = scalar_lea.vmem [#allocation13], %s5248_s22  ;;  %p5254_p8 = scmp.ne.s32.totalorder %s6221_s27, 0 }
  0x42   : > { %380 = sbr.rel (%p5254_p8) target bundleno = 109 (0x6d), region = 72 }
  0x47   : > { %v381_v0 = vld [vmem:[%s6431_s16] sm:$0xff]  ;;  %vm413_vm0 = vcmask 130048   ;;  %v382_v1 = vld [vmem:[%s6431_s16 + $0x8] sm:$0xff]  ;;  %v383_v2 = vld [vmem:[%s6431_s16 + $0x10] sm:$0xff] }
  0x48   : > { %v414_v3 = vsel %vm413_vm0, %v381_v0, 0.0  ;;  %v415_v4 = vsel %vm413_vm0, %v382_v1, 0.0  ;;  %v416_v5 = vsel %vm413_vm0, %v383_v2, 0.0  ;;  %v384_v6 = vld [vmem:[%s6431_s16 + $0x18] sm:$0xff]  ;;  %v385_v7 = vld [vmem:[%s6431_s16 + $0x20] sm:$0xff]  ;;  %v386_v8 = vld [vmem:[%s6431_s16 + $0x28] sm:$0xff] }
  0x49   : > { %446 = vst [vmem:[#allocation2 + $0xb0] sm:$0xff] %v414_v3  ;;  %v417_v9 = vsel %vm413_vm0, %v384_v6, 0.0  ;;  %v387_v10 = vld [vmem:[%s6431_s16 + $0x30] sm:$0xff]  ;;  %v418_v11 = vsel %vm413_vm0, %v385_v7, 0.0  ;;  %v388_v12 = vld [vmem:[%s6431_s16 + $0x38] sm:$0xff]  ;;  %v419_v13 = vsel %vm413_vm0, %v386_v8, 0.0 }
  0x4a   : > { %447 = vst [vmem:[#allocation2] sm:$0xff] %v415_v4  ;;  %v389_v14 = vld [vmem:[%s6431_s16 + $0x40] sm:$0xff]  ;;  %v420_v15 = vsel %vm413_vm0, %v387_v10, 0.0  ;;  %v390_v16 = vld [vmem:[%s6431_s16 + $0x48] sm:$0xff]  ;;  %v421_v17 = vsel %vm413_vm0, %v388_v12, 0.0  ;;  %v391_v18 = vld [vmem:[%s6431_s16 + $0x50] sm:$0xff] }
  0x4b   : > { %448 = vst [vmem:[#allocation2 + $0xd8] sm:$0xff] %v416_v5  ;;  %v422_v19 = vsel %vm413_vm0, %v389_v14, 0.0  ;;  %v392_v20 = vld [vmem:[%s6431_s16 + $0x58] sm:$0xff]  ;;  %v423_v21 = vsel %vm413_vm0, %v390_v16, 0.0  ;;  %v393_v22 = vld [vmem:[%s6431_s16 + $0x60] sm:$0xff]  ;;  %v424_v23 = vsel %vm413_vm0, %v391_v18, 0.0 }
  0x4c   : > { %449 = vst [vmem:[#allocation2 + $0x18] sm:$0xff] %v417_v9  ;;  %v394_v24 = vld [vmem:[%s6431_s16 + $0x68] sm:$0xff]  ;;  %v425_v25 = vsel %vm413_vm0, %v392_v20, 0.0  ;;  %v395_v26 = vld [vmem:[%s6431_s16 + $0x70] sm:$0xff]  ;;  %v426_v27 = vsel %vm413_vm0, %v393_v22, 0.0  ;;  %v396_v28 = vld [vmem:[%s6431_s16 + $0x78] sm:$0xff] }
  0x4d   : > { %450 = vst [vmem:[#allocation2 + $0x50] sm:$0xff] %v418_v11  ;;  %v427_v29 = vsel %vm413_vm0, %v394_v24, 0.0  ;;  %v397_v30 = vld [vmem:[%s6431_s16 + $0x80] sm:$0xff]  ;;  %v428_v31 = vsel %vm413_vm0, %v395_v26, 0.0  ;;  %v398_v32 = vld [vmem:[%s6431_s16 + $0x88] sm:$0xff]  ;;  %v429_v33 = vsel %vm413_vm0, %v396_v28, 0.0 }
  0x4e   : > { %451 = vst [vmem:[#allocation2 + $0x68] sm:$0xff] %v419_v13  ;;  %v399_v34 = vld [vmem:[%s6431_s16 + $0x90] sm:$0xff]  ;;  %v430_v35 = vsel %vm413_vm0, %v397_v30, 0.0  ;;  %v400_v36 = vld [vmem:[%s6431_s16 + $0x98] sm:$0xff]  ;;  %v431_v37 = vsel %vm413_vm0, %v398_v32, 0.0  ;;  %v401_v38 = vld [vmem:[%s6431_s16 + $0xa0] sm:$0xff] }
  0x4f   : > { %452 = vst [vmem:[#allocation2 + $0x30] sm:$0xff] %v420_v15  ;;  %v432_v39 = vsel %vm413_vm0, %v399_v34, 0.0  ;;  %v402_v40 = vld [vmem:[%s6431_s16 + $0xa8] sm:$0xff]  ;;  %v433_v41 = vsel %vm413_vm0, %v400_v36, 0.0  ;;  %v403_v42 = vld [vmem:[%s6431_s16 + $0xb0] sm:$0xff]  ;;  %v434_v43 = vsel %vm413_vm0, %v401_v38, 0.0 }
  0x50   : > { %453 = vst [vmem:[#allocation2 + $0x48] sm:$0xff] %v421_v17  ;;  %v404_v44 = vld [vmem:[%s6431_s16 + $0xb8] sm:$0xff]  ;;  %v435_v45 = vsel %vm413_vm0, %v402_v40, 0.0  ;;  %v405_v46 = vld [vmem:[%s6431_s16 + $0xc0] sm:$0xff]  ;;  %v436_v47 = vsel %vm413_vm0, %v403_v42, 0.0  ;;  %v406_v48 = vld [vmem:[%s6431_s16 + $0xc8] sm:$0xff] }
  0x51   : > { %454 = vst [vmem:[#allocation2 + $0x80] sm:$0xff] %v422_v19  ;;  %v437_v49 = vsel %vm413_vm0, %v404_v44, 0.0  ;;  %v407_v50 = vld [vmem:[%s6431_s16 + $0xd0] sm:$0xff]  ;;  %v438_v51 = vsel %vm413_vm0, %v405_v46, 0.0  ;;  %v408_v52 = vld [vmem:[%s6431_s16 + $0xd8] sm:$0xff]  ;;  %v439_v53 = vsel %vm413_vm0, %v406_v48, 0.0 }
  0x52   : > { %455 = vst [vmem:[#allocation2 + $0x88] sm:$0xff] %v423_v21  ;;  %v409_v54 = vld [vmem:[%s6431_s16 + $0xe0] sm:$0xff]  ;;  %v440_v55 = vsel %vm413_vm0, %v407_v50, 0.0  ;;  %v410_v56 = vld [vmem:[%s6431_s16 + $0xe8] sm:$0xff]  ;;  %v441_v57 = vsel %vm413_vm0, %v408_v52, 0.0  ;;  %v411_v58 = vld [vmem:[%s6431_s16 + $0xf0] sm:$0xff] }
  0x53   : > { %456 = vst [vmem:[#allocation2 + $0xe8] sm:$0xff] %v424_v23  ;;  %v442_v59 = vsel %vm413_vm0, %v409_v54, 0.0  ;;  %v412_v60 = vld [vmem:[%s6431_s16 + $0xf8] sm:$0xff]  ;;  %v443_v61 = vsel %vm413_vm0, %v410_v56, 0.0  ;;  %v444_v62 = vsel %vm413_vm0, %v411_v58, 0.0  ;;  %v6249_v0 = vmov 0.0  }
  0x54   : > { %457 = vst [vmem:[#allocation2 + $0xb8] sm:$0xff] %v425_v25  ;;  %v445_v63 = vsel %vm413_vm0, %v412_v60, 0.0 }
  0x55   : > { %458 = vst [vmem:[#allocation2 + $0x60] sm:$0xff] %v426_v27 }
  0x56   : > { %459 = vst [vmem:[#allocation2 + $0xf0] sm:$0xff] %v427_v29 }
  0x57   : > { %460 = vst [vmem:[#allocation2 + $0x8] sm:$0xff] %v428_v31 }
  0x58   : > { %461 = vst [vmem:[#allocation2 + $0x78] sm:$0xff] %v429_v33 }
  0x59   : > { %462 = vst [vmem:[#allocation2 + $0x38] sm:$0xff] %v430_v35 }
  0x5a   : > { %463 = vst [vmem:[#allocation2 + $0x58] sm:$0xff] %v431_v37 }
  0x5b   : > { %464 = vst [vmem:[#allocation2 + $0x40] sm:$0xff] %v432_v39 }
  0x5c   : > { %465 = vst [vmem:[#allocation2 + $0xc8] sm:$0xff] %v433_v41 }
  0x5d   : > { %466 = vst [vmem:[#allocation2 + $0xe0] sm:$0xff] %v434_v43 }
  0x5e   : > { %467 = vst [vmem:[#allocation2 + $0x90] sm:$0xff] %v435_v45 }
  0x5f   : > { %468 = vst [vmem:[#allocation2 + $0x70] sm:$0xff] %v436_v47 }
  0x60   : > { %469 = vst [vmem:[#allocation2 + $0xc0] sm:$0xff] %v437_v49 }
  0x61   : > { %470 = vst [vmem:[#allocation2 + $0xa8] sm:$0xff] %v438_v51 }
  0x62   : > { %471 = vst [vmem:[#allocation2 + $0xd0] sm:$0xff] %v439_v53 }
  0x63   : > { %472 = vst [vmem:[#allocation2 + $0x10] sm:$0xff] %v440_v55 }
  0x64   : > { %473 = vst [vmem:[#allocation2 + $0x28] sm:$0xff] %v441_v57 }
  0x65   : > { %474 = vst [vmem:[#allocation2 + $0xa0] sm:$0xff] %v442_v59 }
  0x66   : > { %475 = vst [vmem:[#allocation2 + $0xf8] sm:$0xff] %v443_v61 }
  0x67   : > { %476 = vst [vmem:[#allocation2 + $0x20] sm:$0xff] %v444_v62 }
  0x68   : > { %477 = vst [vmem:[#allocation2 + $0x98] sm:$0xff] %v445_v63 }
  0x69   : > { %478 = vst [vmem:[#allocation3 + $0x70] sm:$0xff] %v6249_v0 }
  0x6a   : > { %479 = vst [vmem:[#allocation3 + $0xb8] sm:$0xff] %v6249_v0 }
  0x6b   : > { %481 = vst [vmem:[#allocation3 + $0xa8] sm:$0xff] %v6249_v0 }
  0x6c   : > { %482 = vst [vmem:[#allocation3 + $0x60] sm:$0xff] %v6249_v0 }
  0x6d PF: > { %s5684_s6 = sshll.u32 %s6221_s27, 6  ;;  %v483_v8 = vld [vmem:[#allocation2 + $0xb0] sm:$0xff]  ;;  %v484_v9 = vld [vmem:[#allocation2] sm:$0xff]  ;;  %v499_v11 = vld [vmem:[#allocation2 + $0x38] sm:$0xff]  ;;  %s687_s11 = scalar_lea.vmem [#allocation9], %s6221_s27 }
  0x6e   : > { %s533_s29 = scalar_lea.vmem [#allocation7], %s5684_s6  ;;  %v500_v12 = vld [vmem:[#allocation2 + $0x58] sm:$0xff]  ;;  %v515_v13 = vpack.c.bf16 %v484_v9, %v483_v8  ;;  %s724_s15 = scalar_lea.vmem %s9704_s3, %s6221_s27  ;;  %v501_v17 = vld [vmem:[#allocation2 + $0x40] sm:$0xff]  ;;  %v502_v18 = vld [vmem:[#allocation2 + $0xc8] sm:$0xff] }
  0x6f   : > { %v5692_v1 = vld [vmem:[%s533_s29 + $0x38] sm:$0xff]  ;;  %v5691_v2 = vld [vmem:[%s533_s29 + $0x30] sm:$0xff]  ;;  %v5690_v3 = vld [vmem:[%s533_s29 + $0x28] sm:$0xff]  ;;  %v523_v14 = vpack.c.bf16 %v500_v12, %v499_v11  ;;  %v524_v20 = vpack.c.bf16 %v502_v18, %v501_v17  ;;  %s5693_s24 = smul.u32 576, %s6221_s27  ;;  %s9236_s10 = scalar_lea.vmem %s9706_s5, %s6221_s27 }
  0x70   : > { %598 = vmatpush.bf16.msra.mxu0 %v5692_v1  ;;  %5767 = vmatpush.bf16.msra.mxu2 %v5692_v1  ;;  %v5689_v4 = vld [vmem:[%s533_s29 + $0x20] sm:$0xff]  ;;  %v5688_v5 = vld [vmem:[%s533_s29 + $0x18] sm:$0xff]  ;;  %v5687_v6 = vld [vmem:[%s533_s29 + $0x10] sm:$0xff]  ;;  %s4784_s22 = scalar_lea.vmem [#allocation12], %s6221_s27  ;;  %p5677_p1 = scmp.ne.s32.totalorder %s6221_s27, 1 }
  0x71   : > { %v5686_v7 = vld [vmem:[%s533_s29 + $0x8] sm:$0xff]  ;;  %v5685_v10 = vld [vmem:[%s533_s29] sm:$0xff]  ;;  %v485_v15 = vld [vmem:[#allocation2 + $0xd8] sm:$0xff]  ;;  %s6519_s21 = scalar_lea.vmem [#allocation10], %s5693_s24 }
  0x72   : > { %v486_v16 = vld [vmem:[#allocation2 + $0x18] sm:$0xff]  ;;  %v487_v21 = vld [vmem:[#allocation2 + $0x50] sm:$0xff]  ;;  %v488_v22 = vld [vmem:[#allocation2 + $0x68] sm:$0xff] }
  0x73   : > { %v516_v19 = vpack.c.bf16 %v486_v16, %v485_v15  ;;  %v503_v23 = vld [vmem:[#allocation2 + $0xe0] sm:$0xff]  ;;  %v504_v24 = vld [vmem:[#allocation2 + $0x90] sm:$0xff]  ;;  %v517_v25 = vpack.c.bf16 %v488_v22, %v487_v21  ;;  %v490_v28 = vld [vmem:[#allocation2 + $0x48] sm:$0xff] }
  0x74   : > { %599 = vmatpush.bf16.msra.mxu0 %v5691_v2  ;;  %5768 = vmatpush.bf16.msra.mxu2 %v5691_v2  ;;  %v525_v26 = vpack.c.bf16 %v504_v24, %v503_v23  ;;  %v489_v27 = vld [vmem:[#allocation2 + $0x30] sm:$0xff]  ;;  %v506_v30 = vld [vmem:[#allocation2 + $0xc0] sm:$0xff]  ;;  %v492_v34 = vld [vmem:[#allocation2 + $0x88] sm:$0xff] }
  0x75   : > { %v505_v29 = vld [vmem:[#allocation2 + $0x70] sm:$0xff]  ;;  %v518_v31 = vpack.c.bf16 %v490_v28, %v489_v27  ;;  %v491_v33 = vld [vmem:[#allocation2 + $0x80] sm:$0xff]  ;;  %v507_v35 = vld [vmem:[#allocation2 + $0xa8] sm:$0xff] }
  0x76   : > { %v526_v32 = vpack.c.bf16 %v506_v30, %v505_v29  ;;  %v508_v36 = vld [vmem:[#allocation2 + $0xd0] sm:$0xff]  ;;  %v519_v37 = vpack.c.bf16 %v492_v34, %v491_v33  ;;  %v493_v39 = vld [vmem:[#allocation2 + $0xe8] sm:$0xff]  ;;  %v494_v40 = vld [vmem:[#allocation2 + $0xb8] sm:$0xff] }
  0x77   : > { %v527_v38 = vpack.c.bf16 %v508_v36, %v507_v35  ;;  %v509_v41 = vld [vmem:[#allocation2 + $0x10] sm:$0xff]  ;;  %v510_v42 = vld [vmem:[#allocation2 + $0x28] sm:$0xff]  ;;  %v520_v43 = vpack.c.bf16 %v494_v40, %v493_v39  ;;  %v5733_v45 = vld [vmem:[%s6519_s21 + $0x138] sm:$0xff] }
  0x78   : > { %600 = vmatpush.bf16.msra.mxu0 %v5690_v3  ;;  %5769 = vmatpush.bf16.msra.mxu2 %v5690_v3  ;;  %v528_v44 = vpack.c.bf16 %v510_v42, %v509_v41  ;;  %v5732_v46 = vld [vmem:[%s6519_s21 + $0x130] sm:$0xff]  ;;  %v495_v47 = vld [vmem:[#allocation2 + $0x60] sm:$0xff]  ;;  %v512_v50 = vld [vmem:[#allocation2 + $0xf8] sm:$0xff] }
  0x79   : > { %v496_v48 = vld [vmem:[#allocation2 + $0xf0] sm:$0xff]  ;;  %v511_v49 = vld [vmem:[#allocation2 + $0xa0] sm:$0xff]  ;;  %v5731_v51 = vld [vmem:[%s6519_s21 + $0x128] sm:$0xff] }
  0x7a   : > { %v521_v52 = vpack.c.bf16 %v496_v48, %v495_v47  ;;  %v529_v53 = vpack.c.bf16 %v512_v50, %v511_v49  ;;  %v5730_v54 = vld [vmem:[%s6519_s21 + $0x120] sm:$0xff]  ;;  %v5729_v55 = vld [vmem:[%s6519_s21 + $0x118] sm:$0xff]  ;;  %v5728_v56 = vld [vmem:[%s6519_s21 + $0x110] sm:$0xff] }
  0x7b   : > { %v497_v57 = vld [vmem:[#allocation2 + $0x8] sm:$0xff]  ;;  %v498_v58 = vld [vmem:[#allocation2 + $0x78] sm:$0xff]  ;;  %v513_v59 = vld [vmem:[#allocation2 + $0x20] sm:$0xff] }
  0x7c   : > { %601 = vmatpush.bf16.msra.mxu0 %v5689_v4  ;;  %5770 = vmatpush.bf16.msra.mxu2 %v5689_v4  ;;  %v514_v60 = vld [vmem:[#allocation2 + $0x98] sm:$0xff]  ;;  %v5727_v61 = vld [vmem:[%s6519_s21 + $0x108] sm:$0xff]  ;;  %v522_v62 = vpack.c.bf16 %v498_v58, %v497_v57  ;;  %v5726_v0 = vld [vmem:[%s6519_s21 + $0x100] sm:$0xff] }
  0x7d   : > { %v530_v63 = vpack.c.bf16 %v514_v60, %v513_v59  ;;  %v6531_v1 = vld [vmem:[%s687_s11] ss:$0 sm:$0xff] }
  0x7e   : > { %v6538_v2 = vld [vmem:[%s724_s15] ss:$0 sm:$0xff] }
  0x80   : > { %602 = vmatpush.bf16.msra.mxu0 %v5688_v5  ;;  %5771 = vmatpush.bf16.msra.mxu2 %v5688_v5 }
  0x84   : > { %603 = vmatpush.bf16.msra.mxu0 %v5687_v6  ;;  %5772 = vmatpush.bf16.msra.mxu2 %v5687_v6 }
  0x88   : > { %604 = vmatpush.bf16.msra.mxu0 %v5686_v7  ;;  %5773 = vmatpush.bf16.msra.mxu2 %v5686_v7 }
  0x8c   : > { %605 = vmatpush.bf16.msra.mxu0 %v5685_v10  ;;  %5774 = vmatpush.bf16.msra.mxu2 %v5685_v10 }
  0x8f   : > { %606 = vmatmul.bf16.vlgmr.msra.gmra.mxu0 %v515_v13  ;;  %646 = vmatmul.bf16.vlgmr.msra.gmra.mxu2 %v523_v14 }
  0x90   : > { %3054 = vmatpush.bf16.msrb.mxu2 %v5733_v45 }
  0x94   : > { %3055 = vmatpush.bf16.msrb.mxu2 %v5732_v46 }
  0x98   : > { %3056 = vmatpush.bf16.msrb.mxu2 %v5731_v51 }
  0x9c   : > { %3057 = vmatpush.bf16.msrb.mxu2 %v5730_v54 }
  0x9f   : > { %611 = vmatmul.bf16.gmra.mxu0 %v516_v19  ;;  %651 = vmatmul.bf16.gmra.mxu2 %v524_v20 }
  0xa0   : > { %3058 = vmatpush.bf16.msrb.mxu2 %v5729_v55 }
  0xa4   : > { %3059 = vmatpush.bf16.msrb.mxu2 %v5728_v56 }
  0xa8   : > { %3060 = vmatpush.bf16.msrb.mxu2 %v5727_v61 }
  0xac   : > { %3061 = vmatpush.bf16.msrb.mxu2 %v5726_v0 }
  0xaf   : > { %616 = vmatmul.bf16.gmra.mxu0 %v517_v25  ;;  %656 = vmatmul.bf16.gmra.mxu2 %v525_v26 }
  0xbf   : > { %621 = vmatmul.bf16.gmra.mxu0 %v518_v31  ;;  %661 = vmatmul.bf16.gmra.mxu2 %v526_v32 }
  0xcf   : > { %626 = vmatmul.bf16.gmra.mxu0 %v519_v37  ;;  %666 = vmatmul.bf16.gmra.mxu2 %v527_v38 }
  0xdf   : > { %631 = vmatmul.bf16.gmra.mxu0 %v520_v43  ;;  %671 = vmatmul.bf16.gmra.mxu2 %v528_v44 }
  0xef   : > { %636 = vmatmul.bf16.gmra.mxu0 %v521_v52  ;;  %676 = vmatmul.bf16.gmra.mxu2 %v529_v53 }
  0xff   : > { %641 = vmatmul.bf16.gmra.mxu0 %v522_v62  ;;  %681 = vmatmul.bf16.gmra.mxu2 %v530_v63 }
 0x10c   : > { %v607_v3 = vpop.f32.mrf.mxu0 }
 0x10d   : > { %v692_v4 = vmul.f32 %v6531_v1, %v607_v3 }
 0x10f   : > { %v729_v5 = vadd.f32 %v6538_v2, %v692_v4 }
 0x111   : > { %vm761_vm1 = vcmp.ge.f32.partialorder %v729_v5, 0.0  ;;  %v793_v6 = vmul.f32 0.1015625, %v729_v5 }
 0x112   : > { %v647_v7 = vpop.f32.mrf.mxu2 }
 0x113   : > { %v6542_v8 = vsel %vm761_vm1, %v729_v5, %v793_v6  ;;  %v708_v9 = vmul.f32 %v6531_v1, %v647_v7 }
 0x114   : > { %858 = vst [vmem:[#allocation3 + $0x88] sm:$0xff] %v6542_v8  ;;  %v609_v10 = vpop.f32.mrf.mxu0  ;;  %v2417_v18 = vpack.c.bf16 %v6542_v8, %v6542_v8 }
 0x115   : > { %v745_v11 = vadd.f32 %v6538_v2, %v708_v9  ;;  %v693_v12 = vmul.f32 %v6531_v1, %v609_v10 }
 0x116   : > { %v2609_v25 = vunpack.c.l.b16 %v2417_v18 }
 0x117   : > { %vm777_vm2 = vcmp.ge.f32.partialorder %v745_v11, 0.0  ;;  %v809_v13 = vmul.f32 0.1015625, %v745_v11  ;;  %v730_v14 = vadd.f32 %v6538_v2, %v693_v12 }
 0x119   : > { %v6549_v15 = vsel %vm777_vm2, %v745_v11, %v809_v13  ;;  %vm762_vm3 = vcmp.ge.f32.partialorder %v730_v14, 0.0  ;;  %v794_v16 = vmul.f32 0.1015625, %v730_v14 }
 0x11a   : > { %874 = vst [vmem:[#allocation3 + $0xb0] sm:$0xff] %v6549_v15  ;;  %v649_v17 = vpop.f32.mrf.mxu2 }
 0x11b   : > { %v6554_v19 = vsel %vm762_vm3, %v730_v14, %v794_v16  ;;  %v709_v20 = vmul.f32 %v6531_v1, %v649_v17 }
 0x11c   : > { %859 = vst [vmem:[#allocation3 + $0x98] sm:$0xff] %v6554_v19  ;;  %v612_v21 = vpop.f32.mrf.mxu0  ;;  %v2418_v22 = vpack.c.bf16 %v6554_v19, %v6554_v19 }
 0x11d   : > { %v746_v23 = vadd.f32 %v6538_v2, %v709_v20  ;;  %v694_v24 = vmul.f32 %v6531_v1, %v612_v21 }
 0x11e   : > { %v2610_v26 = vunpack.c.l.b16 %v2418_v22 }
 0x11f   : > { %vm778_vm4 = vcmp.ge.f32.partialorder %v746_v23, 0.0  ;;  %v810_v27 = vmul.f32 0.1015625, %v746_v23  ;;  %v731_v28 = vadd.f32 %v6538_v2, %v694_v24 }
 0x120   : > { %v2641_v29 = vpack.c.b16 %v2610_v26, %v2609_v25 }
 0x121   : > { %v6563_v30 = vsel %vm778_vm4, %v746_v23, %v810_v27  ;;  %vm763_vm5 = vcmp.ge.f32.partialorder %v731_v28, 0.0  ;;  %v795_v31 = vmul.f32 0.1015625, %v731_v28 }
 0x122   : > { %875 = vst [vmem:[#allocation3 + $0x18] sm:$0xff] %v6563_v30  ;;  %v652_v32 = vpop.f32.mrf.mxu2  ;;  %3062 = vmatmul.bf16.vlgmr.msrb.gmra.mxu2 %v2641_v29 }
 0x123   : > { %v6566_v33 = vsel %vm763_vm5, %v731_v28, %v795_v31  ;;  %v710_v34 = vmul.f32 %v6531_v1, %v652_v32 }
 0x124   : > { %860 = vst [vmem:[#allocation3 + $0x8] sm:$0xff] %v6566_v33  ;;  %v614_v35 = vpop.f32.mrf.mxu0  ;;  %v2419_v43 = vpack.c.bf16 %v6566_v33, %v6566_v33 }
 0x125   : > { %v747_v36 = vadd.f32 %v6538_v2, %v710_v34  ;;  %v695_v37 = vmul.f32 %v6531_v1, %v614_v35 }
 0x126   : > { %v2611_v50 = vunpack.c.l.b16 %v2419_v43 }
 0x127   : > { %vm779_vm6 = vcmp.ge.f32.partialorder %v747_v36, 0.0  ;;  %v811_v38 = vmul.f32 0.1015625, %v747_v36  ;;  %v732_v39 = vadd.f32 %v6538_v2, %v695_v37 }
 0x129   : > { %v6573_v40 = vsel %vm779_vm6, %v747_v36, %v811_v38  ;;  %vm764_vm7 = vcmp.ge.f32.partialorder %v732_v39, 0.0  ;;  %v796_v41 = vmul.f32 0.1015625, %v732_v39 }
 0x12a   : > { %876 = vst [vmem:[#allocation3 + $0x108] sm:$0xff] %v6573_v40  ;;  %v654_v42 = vpop.f32.mrf.mxu2 }
 0x12b   : > { %v6578_v44 = vsel %vm764_vm7, %v732_v39, %v796_v41  ;;  %v711_v45 = vmul.f32 %v6531_v1, %v654_v42  ;;  %v5701_v39 = vld [vmem:[%s6519_s21 + $0x38] sm:$0xff] }
 0x12c   : > { %861 = vst [vmem:[#allocation3 + $0xd8] sm:$0xff] %v6578_v44  ;;  %v617_v46 = vpop.f32.mrf.mxu0  ;;  %v2420_v47 = vpack.c.bf16 %v6578_v44, %v6578_v44  ;;  %3376 = vmatpush.bf16.msrb.mxu0 %v5701_v39 }
 0x12d   : > { %v748_v48 = vadd.f32 %v6538_v2, %v711_v45  ;;  %v696_v49 = vmul.f32 %v6531_v1, %v617_v46 }
 0x12e   : > { %v2612_v51 = vunpack.c.l.b16 %v2420_v47 }
 0x12f   : > { %vm780_vm8 = vcmp.ge.f32.partialorder %v748_v48, 0.0  ;;  %v812_v52 = vmul.f32 0.1015625, %v748_v48  ;;  %v733_v53 = vadd.f32 %v6538_v2, %v696_v49 }
 0x130   : > { %v2642_v54 = vpack.c.b16 %v2612_v51, %v2611_v50  ;;  %v5700_v50 = vld [vmem:[%s6519_s21 + $0x30] sm:$0xff] }
 0x131   : > { %v6587_v55 = vsel %vm780_vm8, %v748_v48, %v812_v52  ;;  %vm765_vm9 = vcmp.ge.f32.partialorder %v733_v53, 0.0  ;;  %v797_v56 = vmul.f32 0.1015625, %v733_v53  ;;  %3377 = vmatpush.bf16.msrb.mxu0 %v5700_v50 }
 0x132   : > { %877 = vst [vmem:[#allocation3 + $0xf0] sm:$0xff] %v6587_v55  ;;  %v657_v57 = vpop.f32.mrf.mxu2  ;;  %3067 = vmatmul.bf16.gmra.mxu2 %v2642_v54 }
 0x133   : > { %v6590_v58 = vsel %vm765_vm9, %v733_v53, %v797_v56  ;;  %v712_v59 = vmul.f32 %v6531_v1, %v657_v57 }
 0x134   : > { %862 = vst [vmem:[#allocation3 + $0xe8] sm:$0xff] %v6590_v58  ;;  %v619_v60 = vpop.f32.mrf.mxu0  ;;  %v2421_v6 = vpack.c.bf16 %v6590_v58, %v6590_v58 }
 0x135   : > { %v749_v61 = vadd.f32 %v6538_v2, %v712_v59  ;;  %v697_v62 = vmul.f32 %v6531_v1, %v619_v60  ;;  %v5699_v59 = vld [vmem:[%s6519_s21 + $0x28] sm:$0xff] }
 0x136   : > { %v2613_v14 = vunpack.c.l.b16 %v2421_v6  ;;  %3378 = vmatpush.bf16.msrb.mxu0 %v5699_v59 }
 0x137   : > { %vm781_vm10 = vcmp.ge.f32.partialorder %v749_v61, 0.0  ;;  %v813_v63 = vmul.f32 0.1015625, %v749_v61  ;;  %v734_v0 = vadd.f32 %v6538_v2, %v697_v62 }
 0x139   : > { %v6597_v3 = vsel %vm781_vm10, %v749_v61, %v813_v63  ;;  %vm766_vm11 = vcmp.ge.f32.partialorder %v734_v0, 0.0  ;;  %v798_v4 = vmul.f32 0.1015625, %v734_v0  ;;  %v5725_v63 = vld [vmem:[%s6519_s21 + $0xf8] sm:$0xff] }
 0x13a   : > { %878 = vst [vmem:[#allocation3 + $0xf8] sm:$0xff] %v6597_v3  ;;  %v659_v5 = vpop.f32.mrf.mxu2  ;;  %5775 = vmatpush.bf16.msra.mxu3 %v5725_v63  ;;  %2965 = vmatpush.bf16.msra.mxu1 %v5725_v63 }
 0x13b   : > { %v6602_v7 = vsel %vm766_vm11, %v734_v0, %v798_v4  ;;  %v713_v9 = vmul.f32 %v6531_v1, %v659_v5  ;;  %v5698_v5 = vld [vmem:[%s6519_s21 + $0x20] sm:$0xff] }
 0x13c   : > { %9933 = vst [vmem:[#allocation22_spill] sm:$0xff] %v6602_v7  ;;  %v622_v10 = vpop.f32.mrf.mxu0  ;;  %v2422_v11 = vpack.c.bf16 %v6602_v7, %v6602_v7  ;;  %3379 = vmatpush.bf16.msrb.mxu0 %v5698_v5 }
 0x13d   : > { %863 = vst [vmem:[#allocation3 + $0xe0] sm:$0xff] %v6602_v7  ;;  %v750_v12 = vadd.f32 %v6538_v2, %v713_v9  ;;  %v698_v13 = vmul.f32 %v6531_v1, %v622_v10  ;;  %v5724_v10 = vld [vmem:[%s6519_s21 + $0xf0] sm:$0xff] }
 0x13e   : > { %v2614_v16 = vunpack.c.l.b16 %v2422_v11  ;;  %5776 = vmatpush.bf16.msra.mxu3 %v5724_v10  ;;  %2966 = vmatpush.bf16.msra.mxu1 %v5724_v10 }
 0x13f   : > { %vm782_vm12 = vcmp.ge.f32.partialorder %v750_v12, 0.0  ;;  %v814_v17 = vmul.f32 0.1015625, %v750_v12  ;;  %v735_v18 = vadd.f32 %v6538_v2, %v698_v13 }
 0x140   : > { %v2643_v20 = vpack.c.b16 %v2614_v16, %v2613_v14  ;;  %v5697_v16 = vld [vmem:[%s6519_s21 + $0x18] sm:$0xff] }
 0x141   : > { %v6611_v21 = vsel %vm782_vm12, %v750_v12, %v814_v17  ;;  %vm767_vm13 = vcmp.ge.f32.partialorder %v735_v18, 0.0  ;;  %v799_v22 = vmul.f32 0.1015625, %v735_v18  ;;  %3380 = vmatpush.bf16.msrb.mxu0 %v5697_v16  ;;  %v5719_v16 = vld [vmem:[%s6519_s21 + $0xc8] sm:$0xff] }
 0x142   : > { %879 = vst [vmem:[#allocation3 + $0x118] sm:$0xff] %v6611_v21  ;;  %v662_v23 = vpop.f32.mrf.mxu2  ;;  %3072 = vmatmul.bf16.gmra.mxu2 %v2643_v20 }
 0x143   : > { %v6614_v24 = vsel %vm767_vm13, %v735_v18, %v799_v22  ;;  %v714_v25 = vmul.f32 %v6531_v1, %v662_v23  ;;  %v5723_v23 = vld [vmem:[%s6519_s21 + $0xe8] sm:$0xff] }
 0x144   : > { %864 = vst [vmem:[#allocation3 + $0x20] sm:$0xff] %v6614_v24  ;;  %v624_v26 = vpop.f32.mrf.mxu0  ;;  %v2423_v36 = vpack.c.bf16 %v6614_v24, %v6614_v24  ;;  %5777 = vmatpush.bf16.msra.mxu3 %v5723_v23  ;;  %2967 = vmatpush.bf16.msra.mxu1 %v5723_v23 }
 0x145   : > { %v751_v27 = vadd.f32 %v6538_v2, %v714_v25  ;;  %v699_v28 = vmul.f32 %v6531_v1, %v624_v26 }
 0x146   : > { %v2615_v46 = vunpack.c.l.b16 %v2423_v36 }
 0x147   : > { %vm783_vm14 = vcmp.ge.f32.partialorder %v751_v27, 0.0  ;;  %v815_v29 = vmul.f32 0.1015625, %v751_v27  ;;  %v736_v31 = vadd.f32 %v6538_v2, %v699_v28 }
 0x149   : > { %v6621_v32 = vsel %vm783_vm14, %v751_v27, %v815_v29  ;;  %vm768_vm15 = vcmp.ge.f32.partialorder %v736_v31, 0.0  ;;  %v800_v34 = vmul.f32 0.1015625, %v736_v31  ;;  %v5696_v29 = vld [vmem:[%s6519_s21 + $0x10] sm:$0xff] }
 0x14a   : > { %880 = vst [vmem:[#allocation3 + $0x80] sm:$0xff] %v6621_v32  ;;  %v664_v35 = vpop.f32.mrf.mxu2  ;;  %3381 = vmatpush.bf16.msrb.mxu0 %v5696_v29 }
 0x14b   : > { %v6626_v37 = vsel %vm768_vm15, %v736_v31, %v800_v34  ;;  %v715_v38 = vmul.f32 %v6531_v1, %v664_v35  ;;  %v890_v34 = vlaneseq }
 0x14c   : > { %865 = vst [vmem:[#allocation3 + $0x50] sm:$0xff] %v6626_v37  ;;  %v627_v41 = vpop.f32.mrf.mxu0  ;;  %v2424_v42 = vpack.c.bf16 %v6626_v37, %v6626_v37 }
 0x14d   : > { %v752_v43 = vadd.f32 %v6538_v2, %v715_v38  ;;  %v700_v45 = vmul.f32 %v6531_v1, %v627_v41  ;;  %v5722_v38 = vld [vmem:[%s6519_s21 + $0xe0] sm:$0xff] }
 0x14e   : > { %v2616_v47 = vunpack.c.l.b16 %v2424_v42  ;;  %5778 = vmatpush.bf16.msra.mxu3 %v5722_v38  ;;  %2968 = vmatpush.bf16.msra.mxu1 %v5722_v38  ;;  %v5718_v38 = vld [vmem:[%s6519_s21 + $0xc0] sm:$0xff] }
 0x14f   : > { %vm784_vm0 = vcmp.ge.f32.partialorder %v752_v43, 0.0  ;;  %v816_v48 = vmul.f32 0.1015625, %v752_v43  ;;  %v737_v49 = vadd.f32 %v6538_v2, %v700_v45 }
 0x150   : > { %v2644_v51 = vpack.c.b16 %v2616_v47, %v2615_v46  ;;  %v6677_v46 = vshrl.u32 %v890_v34, 7 }
 0x151   : > { %v6637_v52 = vsel %vm784_vm0, %v752_v43, %v816_v48  ;;  %vm769_vm1 = vcmp.ge.f32.partialorder %v737_v49, 0.0  ;;  %v801_v53 = vmul.f32 0.1015625, %v737_v49  ;;  %v5695_v43 = vld [vmem:[%s6519_s21 + $0x8] sm:$0xff] }
 0x152   : > { %881 = vst [vmem:[#allocation3 + $0x90] sm:$0xff] %v6637_v52  ;;  %v667_v54 = vpop.f32.mrf.mxu2  ;;  %3077 = vmatmul.bf16.gmra.mxu2 %v2644_v51  ;;  %3382 = vmatpush.bf16.msrb.mxu0 %v5695_v43  ;;  %v901_v50 = vadd.s32 80, %v6677_v46  ;;  %vm9749_vm8 = vcmp.lt.s32.totalorder %v6677_v46, 1 }
 0x153   : > { %v6640_v56 = vsel %vm769_vm1, %v737_v49, %v801_v53  ;;  %v716_v57 = vmul.f32 %v6531_v1, %v667_v54  ;;  %v5721_v49 = vld [vmem:[%s6519_s21 + $0xd8] sm:$0xff]  ;;  %v5694_v54 = vld [vmem:[%s6519_s21] sm:$0xff] }
 0x154   : > { %866 = vst [vmem:[#allocation3 + $0x40] sm:$0xff] %v6640_v56  ;;  %v629_v60 = vpop.f32.mrf.mxu0  ;;  %v2425_v12 = vpack.c.bf16 %v6640_v56, %v6640_v56  ;;  %5779 = vmatpush.bf16.msra.mxu3 %v5721_v49  ;;  %2969 = vmatpush.bf16.msra.mxu1 %v5721_v49  ;;  %v997_v63 = vand.u32 15, %v901_v50 }
 0x155   : > { %v753_v61 = vadd.f32 %v6538_v2, %v716_v57  ;;  %v701_v62 = vmul.f32 %v6531_v1, %v629_v60  ;;  %v5720_v60 = vld [vmem:[%s6519_s21 + $0xd0] sm:$0xff] }
 0x156   : > { %v2617_v25 = vunpack.c.l.b16 %v2425_v12  ;;  %3383 = vmatpush.bf16.msrb.mxu0 %v5694_v54  ;;  %vm6704_vm9 = vcmp.eq.s32.totalorder %v997_v63, 0 }
 0x157   : > { %vm785_vm2 = vcmp.ge.f32.partialorder %v753_v61, 0.0  ;;  %v817_v0 = vmul.f32 0.1015625, %v753_v61  ;;  %v738_v4 = vadd.f32 %v6538_v2, %v701_v62 }
 0x158   : > { %5780 = vmatpush.bf16.msra.mxu3 %v5720_v60  ;;  %2970 = vmatpush.bf16.msra.mxu1 %v5720_v60 }
 0x159   : > { %v6650_v6 = vsel %vm785_vm2, %v753_v61, %v817_v0  ;;  %vm770_vm3 = vcmp.ge.f32.partialorder %v738_v4, 0.0  ;;  %v802_v9 = vmul.f32 0.1015625, %v738_v4 }
 0x15a   : > { %882 = vst [vmem:[#allocation3 + $0xc8] sm:$0xff] %v6650_v6  ;;  %v669_v11 = vpop.f32.mrf.mxu2 }
 0x15b   : > { %v6656_v13 = vsel %vm770_vm3, %v738_v4, %v802_v9  ;;  %v717_v14 = vmul.f32 %v6531_v1, %v669_v11 }
 0x15c   : > { %867 = vst [vmem:[#allocation3] sm:$0xff] %v6656_v13  ;;  %v632_v17 = vpop.f32.mrf.mxu0  ;;  %v2426_v18 = vpack.c.bf16 %v6656_v13, %v6656_v13  ;;  %v9712_v11 = vrot.slane %v6656_v13, 7  ;;  %5781 = vmatpush.bf16.msra.mxu3 %v5719_v16  ;;  %2971 = vmatpush.bf16.msra.mxu1 %v5719_v16 }
 0x15d   : > { %v754_v20 = vadd.f32 %v6538_v2, %v717_v14  ;;  %v702_v22 = vmul.f32 %v6531_v1, %v632_v17 }
 0x15e   : > { %v2618_v26 = vunpack.c.l.b16 %v2426_v18 }
 0x15f   : > { %vm786_vm4 = vcmp.ge.f32.partialorder %v754_v20, 0.0  ;;  %v818_v27 = vmul.f32 0.1015625, %v754_v20  ;;  %v739_v28 = vadd.f32 %v6538_v2, %v702_v22  ;;  %v9934_v22 = vmov 0 }
 0x160   : > { %v2645_v31 = vpack.c.b16 %v2618_v26, %v2617_v25  ;;  %v9935_v22 = vsel %vm6704_vm9, 4294967295, %v9934_v22  ;;  %5782 = vmatpush.bf16.msra.mxu3 %v5718_v38  ;;  %2972 = vmatpush.bf16.msra.mxu1 %v5718_v38 }
 0x161   : > { %v6668_v35 = vsel %vm786_vm4, %v754_v20, %v818_v27  ;;  %vm771_vm5 = vcmp.ge.f32.partialorder %v739_v28, 0.0  ;;  %v803_v36 = vmul.f32 0.1015625, %v739_v28  ;;  %9936 = vst [vmem:[#allocation23_spill] sm:$0xff] %v9935_v22 }
 0x162   : > { %883 = vst [vmem:[#allocation3 + $0x38] sm:$0xff] %v6668_v35  ;;  %v672_v39 = vpop.f32.mrf.mxu2  ;;  %3082 = vmatmul.bf16.gmra.mxu2 %v2645_v31 }
 0x163   : > { %v6672_v41 = vsel %vm771_vm5, %v739_v28, %v803_v36  ;;  %v718_v42 = vmul.f32 %v6531_v1, %v672_v39 }
 0x164   : > { %868 = vst [vmem:[#allocation3 + $0x30] sm:$0xff] %v6672_v41  ;;  %v634_v45 = vpop.f32.mrf.mxu0  ;;  %v2427_v62 = vpack.c.bf16 %v6672_v41, %v6672_v41  ;;  %v2203_v0 = vrot.slane %v6672_v41, 7 }
 0x165   : > { %v755_v47 = vadd.f32 %v6538_v2, %v718_v42  ;;  %v703_v48 = vmul.f32 %v6531_v1, %v634_v45  ;;  %v903_v45 = vadd.s32 96, %v6677_v46 }
 0x166   : > { %v2619_v18 = vunpack.c.l.b16 %v2427_v62  ;;  %v2246_v23 = vsel %vm9749_vm8, %v9712_v11, %v2203_v0 }
 0x167   : > { %vm787_vm6 = vcmp.ge.f32.partialorder %v755_v47, 0.0  ;;  %v819_v51 = vmul.f32 0.1015625, %v755_v47  ;;  %v740_v53 = vadd.f32 %v6538_v2, %v703_v48  ;;  %v2267_v29 = vsel %vm6704_vm9, 0.0, %v2246_v23 }
 0x168   : > { %v2395_v39 = vpack.c.bf16 %v2267_v29, %v2267_v29  ;;  %v1011_v60 = vand.u32 15, %v903_v45 }
 0x169   : > { %v6685_v57 = vsel %vm787_vm6, %v755_v47, %v819_v51  ;;  %vm772_vm7 = vcmp.ge.f32.partialorder %v740_v53, 0.0  ;;  %v804_v59 = vmul.f32 0.1015625, %v740_v53 }
 0x16a   : > { %884 = vst [vmem:[#allocation3 + $0x48] sm:$0xff] %v6685_v57  ;;  %v674_v61 = vpop.f32.mrf.mxu2  ;;  %v6727_v49 = vunpack.c.l.b16 %v2395_v39  ;;  %vm6744_vm14 = vcmp.eq.s32.totalorder %v1011_v60, 0 }
 0x16b   : > { %v6692_v4 = vsel %vm772_vm7, %v740_v53, %v804_v59  ;;  %v719_v5 = vmul.f32 %v6531_v1, %v674_v61  ;;  %v5741_v59 = vld [vmem:[%s6519_s21 + $0x178] sm:$0xff] }
 0x16c   : > { %869 = vst [vmem:[#allocation3 + $0xa0] sm:$0xff] %v6692_v4  ;;  %v637_v9 = vpop.f32.mrf.mxu0  ;;  %v2428_v10 = vpack.c.bf16 %v6692_v4, %v6692_v4  ;;  %v2204_v17 = vrot.slane %v6692_v4, 7  ;;  %3143 = vmatpush.bf16.msrb.mxu3 %v5741_v59 }
 0x16d   : > { %v756_v12 = vadd.f32 %v6538_v2, %v719_v5  ;;  %v704_v14 = vmul.f32 %v6531_v1, %v637_v9  ;;  %v6737_v9 = vld [vmem:[#allocation3 + $0x70] sm:$0xff] }
 0x16e   : > { %v2620_v20 = vunpack.c.l.b16 %v2428_v10  ;;  %v2245_v27 = vsel %vm9749_vm8, %v2203_v0, %v2204_v17  ;;  %9937 = vst [vmem:[#allocation24_spill] sm:$0xff] %v6737_v9  ;;  %v6739_v10 = vld [vmem:[#allocation3 + $0xb8] sm:$0xff]  ;;  %v1403_v16 = vrot.slane %v6737_v9, 7 }
 0x16f   : > { %vm788_vm10 = vcmp.ge.f32.partialorder %v756_v12, 0.0  ;;  %v820_v25 = vmul.f32 0.1015625, %v756_v12  ;;  %v741_v26 = vadd.f32 %v6538_v2, %v704_v14  ;;  %v2396_v31 = vpack.c.bf16 %v2245_v27, %v2245_v27 }
 0x170   : > { %v2646_v28 = vpack.c.b16 %v2620_v20, %v2619_v18  ;;  %v9938_v18 = vmov 0  ;;  %v1404_v29 = vrot.slane %v6739_v10, 7 }
 0x171   : > { %v6717_v34 = vsel %vm788_vm10, %v756_v12, %v820_v25  ;;  %vm773_vm11 = vcmp.ge.f32.partialorder %v741_v26, 0.0  ;;  %v805_v36 = vmul.f32 0.1015625, %v741_v26  ;;  %v6721_v43 = vunpack.c.l.b16 %v2396_v31  ;;  %v5709_v31 = vld [vmem:[%s6519_s21 + $0x78] sm:$0xff] }
 0x172   : > { %885 = vst [vmem:[#allocation3 + $0x68] sm:$0xff] %v6717_v34  ;;  %v677_v42 = vpop.f32.mrf.mxu2  ;;  %3087 = vmatmul.bf16.gmra.mxu2 %v2646_v28  ;;  %v9939_v18 = vsel %vm6744_vm14, 4294967295, %v9938_v18  ;;  %3465 = vmatpush.bf16.msrb.mxu1 %v5709_v31 }
 0x173   : > { %v6724_v47 = vsel %vm773_vm11, %v741_v26, %v805_v36  ;;  %v720_v48 = vmul.f32 %v6531_v1, %v677_v42  ;;  %9940 = vst [vmem:[#allocation25_spill] sm:$0xff] %v9939_v18 }
 0x174   : > { %870 = vst [vmem:[#allocation3 + $0x28] sm:$0xff] %v6724_v47  ;;  %v639_v50 = vpop.f32.mrf.mxu0  ;;  %v2205_v63 = vrot.slane %v6724_v47, 7  ;;  %v2429_v14 = vpack.c.bf16 %v6724_v47, %v6724_v47 }
 0x175   : > { %v757_v51 = vadd.f32 %v6538_v2, %v720_v48  ;;  %v705_v53 = vmul.f32 %v6531_v1, %v639_v50  ;;  %v1466_v48 = vsel %vm9749_vm8, %v1403_v16, %v1404_v29 }
 0x176   : > { %v2244_v20 = vsel %vm9749_vm8, %v2204_v17, %v2205_v63  ;;  %v2621_v42 = vunpack.c.l.b16 %v2429_v14 }
 0x177   : > { %vm789_vm12 = vcmp.ge.f32.partialorder %v757_v51, 0.0  ;;  %v821_v61 = vmul.f32 0.1015625, %v757_v51  ;;  %v742_v62 = vadd.f32 %v6538_v2, %v705_v53  ;;  %v2269_v26 = vsel %vm6744_vm14, 0.0, %v2244_v20 }
 0x178   : > { %v2397_v39 = vpack.c.bf16 %v2269_v26, %v2269_v26 }
 0x179   : > { %v853_v0 = vsel %vm789_vm12, %v757_v51, %v821_v61  ;;  %vm774_vm13 = vcmp.ge.f32.partialorder %v742_v62, 0.0  ;;  %v806_v5 = vmul.f32 0.1015625, %v742_v62  ;;  %v927_v61 = vand.u32 15, %v6677_v46 }
 0x17a   : > { %886 = vst [vmem:[#allocation3 + $0x58] sm:$0xff] %v853_v0  ;;  %v679_v12 = vpop.f32.mrf.mxu2  ;;  %v6774_v0 = vunpack.c.l.b16 %v2397_v39  ;;  %v907_v39 = vadd.s32 128, %v6677_v46  ;;  %vm9744_vm12 = vcmp.lt.s32.totalorder %v6677_v46, 7 }
 0x17b   : > { %v6750_v23 = vsel %vm774_vm13, %v742_v62, %v806_v5  ;;  %v721_v25 = vmul.f32 %v6531_v1, %v679_v12  ;;  %v893_v62 = vadd.s32 16, %v6677_v46  ;;  %vm6790_vm1 = vcmp.eq.s32.totalorder %v927_v61, 0  ;;  %v5740_v61 = vld [vmem:[%s6519_s21 + $0x170] sm:$0xff] }
 0x17c   : > { %871 = vst [vmem:[#allocation3 + $0xd0] sm:$0xff] %v6750_v23  ;;  %v642_v27 = vpop.f32.mrf.mxu0  ;;  %v2430_v28 = vpack.c.bf16 %v6750_v23, %v6750_v23  ;;  %v9714_v36 = vrot.slane %v6750_v23, 7  ;;  %3144 = vmatpush.bf16.msrb.mxu3 %v5740_v61 }
 0x17d   : > { %v758_v17 = vadd.f32 %v6538_v2, %v721_v25  ;;  %v706_v38 = vmul.f32 %v6531_v1, %v642_v27  ;;  %9941 = vst [vmem:[#allocation26_spill] sm:$0xff] %v6774_v0  ;;  %v1726_v25 = vpack.c.bf16 %v1466_v48, %v1466_v48 }
 0x17e   : > { %v2622_v45 = vunpack.c.l.b16 %v2430_v28  ;;  %v2243_v50 = vsel %vm9749_vm8, %v2205_v63, %v9714_v36  ;;  %v1039_v28 = vand.u32 15, %v907_v39 }
 0x17f   : > { %vm790_vm15 = vcmp.ge.f32.partialorder %v758_v17, 0.0  ;;  %v822_v51 = vmul.f32 0.1015625, %v758_v17  ;;  %v743_v53 = vadd.f32 %v6538_v2, %v706_v38  ;;  %v2398_v59 = vpack.c.bf16 %v2243_v50, %v2243_v50 }
 0x180   : > { %v2647_v60 = vpack.c.b16 %v2622_v45, %v2621_v42  ;;  %v941_v50 = vand.u32 15, %v893_v62  ;;  %vm6829_vm5 = vcmp.eq.s32.totalorder %v1039_v28, 0 }
 0x181   : > { %v6776_v5 = vsel %vm790_vm15, %v758_v17, %v822_v51  ;;  %vm775_vm0 = vcmp.ge.f32.partialorder %v743_v53, 0.0  ;;  %v807_v12 = vmul.f32 0.1015625, %v743_v53  ;;  %v6778_v14 = vunpack.c.l.b16 %v2398_v59 }
 0x182   : > { %887 = vst [vmem:[#allocation3 + $0x100] sm:$0xff] %v6776_v5  ;;  %v682_v63 = vpop.f32.mrf.mxu2  ;;  %3092 = vmatmul.bf16.gmra.mxu2 %v2647_v60  ;;  %v6782_v20 = vrot.slane %v6776_v5, 7  ;;  %v9944_v17 = vmov 0  ;;  %v9713_v59 = vrot.slane %v6563_v30, 7  ;;  %v2193_v60 = vrot.slane %v6542_v8, 7 }
 0x183   : > { %9942 = vst [vmem:[#allocation27_spill] sm:$0xff] %v6778_v14  ;;  %v6784_v26 = vsel %vm775_vm0, %v743_v53, %v807_v12  ;;  %v722_v27 = vmul.f32 %v6531_v1, %v682_v63  ;;  %v9945_v17 = vsel %vm6790_vm1, 4294967295, %v9944_v17  ;;  %v1854_v53 = vunpack.c.l.b16 %v1726_v25 }
 0x184   : > { %9943 = vst [vmem:[#allocation28_spill] sm:$0xff] %v6782_v20  ;;  %v644_v31 = vpop.f32.mrf.mxu0  ;;  %v1467_v38 = vsel %vm9749_vm8, %v6782_v20, %v1403_v16  ;;  %v905_v63 = vadd.s32 112, %v6677_v46  ;;  %v9715_v25 = vrot.slane %v6554_v19, 7  ;;  %v2431_v11 = vpack.c.bf16 %v6784_v26, %v6784_v26 }
 0x185   : > { %872 = vst [vmem:[#allocation3 + $0x110] sm:$0xff] %v6784_v26  ;;  %v759_v42 = vadd.f32 %v6538_v2, %v722_v27  ;;  %v707_v45 = vmul.f32 %v6531_v1, %v644_v31  ;;  %v1532_v48 = vsel %vm6790_vm1, 0.0, %v1467_v38  ;;  %v2209_v31 = vrot.slane %v6549_v15, 7 }
 0x186   : > { %9946 = vst [vmem:[#allocation29_spill] sm:$0xff] %v9945_v17  ;;  %v1725_v51 = vpack.c.bf16 %v1532_v48, %v1532_v48  ;;  %vm6811_vm4 = vcmp.eq.s32.totalorder %v941_v50, 0  ;;  %v1465_v39 = vsel %vm9749_vm8, %v1404_v29, %v2193_v60  ;;  %v1025_v61 = vand.u32 15, %v905_v63 }
 0x187   : > { %vm791_vm2 = vcmp.ge.f32.partialorder %v759_v42, 0.0  ;;  %v823_v12 = vmul.f32 0.1015625, %v759_v42  ;;  %v744_v16 = vadd.f32 %v6538_v2, %v707_v45  ;;  %v9947_v45 = vmov 0 }
 0x188   : > { %v1853_v27 = vunpack.c.l.b16 %v1725_v51  ;;  %v9948_v45 = vsel %vm6811_vm4, 4294967295, %v9947_v45  ;;  %v2255_v63 = vsel %vm9749_vm8, %v2193_v60, %v9715_v25  ;;  %v2207_v28 = vrot.slane %v6784_v26, 7 }
 0x189   : > { %v855_v38 = vsel %vm791_vm2, %v759_v42, %v823_v12  ;;  %vm776_vm3 = vcmp.ge.f32.partialorder %v744_v16, 0.0  ;;  %v808_v62 = vmul.f32 0.1015625, %v744_v16  ;;  %9949 = vst [vmem:[#allocation30_spill] sm:$0xff] %v9948_v45  ;;  %vm6848_vm7 = vcmp.eq.s32.totalorder %v1025_v61, 0 }
 0x18a   : > { %888 = vst [vmem:[#allocation3 + $0x78] sm:$0xff] %v855_v38  ;;  %v684_v48 = vpop.f32.mrf.mxu2  ;;  %v1885_v54 = vpack.c.b16 %v1854_v53, %v1853_v27  ;;  %v2239_v53 = vsel %vm9749_vm8, %v2209_v31, %v9713_v59  ;;  %v5708_v27 = vld [vmem:[%s6519_s21 + $0x70] sm:$0xff]  ;;  %v2623_v38 = vunpack.c.l.b16 %v2431_v11  ;;  %v2386_v0 = vpack.c.bf16 %v2255_v63, %v2255_v63 }
 0x18b   : > { %v6819_v42 = vsel %vm776_vm3, %v744_v16, %v808_v62  ;;  %v723_v51 = vmul.f32 %v6531_v1, %v684_v48  ;;  %v909_v1 = vadd.s32 144, %v6677_v46  ;;  %v2402_v59 = vpack.c.bf16 %v2239_v53, %v2239_v53  ;;  %3466 = vmatpush.bf16.msrb.mxu1 %v5708_v27 }
 0x18c   : > { %873 = vst [vmem:[#allocation3 + $0xc0] sm:$0xff] %v6819_v42  ;;  %3384 = vmatmul.bf16.vlgmr.msrb.gmra.mxu0 %v1885_v54  ;;  %v2432_v50 = vpack.c.bf16 %v6819_v42, %v6819_v42  ;;  %v2208_v29 = vrot.slane %v6819_v42, 7  ;;  %v1534_v54 = vsel %vm6811_vm4, 0.0, %v1465_v39  ;;  %v2211_v63 = vrot.slane %v6573_v40, 7 }
 0x18d   : > { %v760_v16 = vadd.f32 %v6538_v2, %v723_v51  ;;  %v9952_v51 = vmov 0 }
 0x18e   : > { %v2624_v62 = vunpack.c.l.b16 %v2432_v50  ;;  %v2240_v48 = vsel %vm9749_vm8, %v2208_v29, %v2209_v31  ;;  %v9953_v51 = vsel %vm6848_vm7, 4294967295, %v9952_v51  ;;  %v2241_v11 = vsel %vm9749_vm8, %v2207_v28, %v2208_v29 }
 0x18f   : > { %vm792_vm6 = vcmp.ge.f32.partialorder %v760_v16, 0.0  ;;  %v824_v36 = vmul.f32 0.1015625, %v760_v16  ;;  %v2273_v2 = vsel %vm6829_vm5, 0.0, %v2240_v48  ;;  %9954 = vst [vmem:[#allocation31_spill] sm:$0xff] %v9953_v51  ;;  %v9955_v50 = vrot.slane %v6750_v23, 7 }
 0x190   : > { %v2648_v39 = vpack.c.b16 %v2624_v62, %v2623_v38  ;;  %v2401_v25 = vpack.c.bf16 %v2273_v2, %v2273_v2  ;;  %v2400_v61 = vpack.c.bf16 %v2241_v11, %v2241_v11  ;;  %v2530_v62 = vunpack.c.l.b16 %v2402_v59 }
 0x191   : > { %v2242_v31 = vsel %vm9749_vm8, %v9955_v50, %v2207_v28  ;;  %v6858_v53 = vsel %vm792_vm6, %v760_v16, %v824_v36  ;;  %v1053_v2 = vand.u32 15, %v909_v1  ;;  %v1727_v16 = vpack.c.bf16 %v1534_v54, %v1534_v54 }
 0x192   : > { %v2271_v27 = vsel %vm6848_vm7, 0.0, %v2242_v31  ;;  %889 = vst [vmem:[#allocation3 + $0x10] sm:$0xff] %v6858_v53  ;;  %3097 = vmatmul.bf16.gmra.mxu2 %v2648_v39  ;;  %v2529_v38 = vunpack.c.l.b16 %v2401_v25  ;;  %v9718_v29 = vrot.slane %v6858_v53, 7  ;;  %v6864_v14 = vunpack.c.l.b16 %v2400_v61  ;;  %v5739_v31 = vld [vmem:[%s6519_s21 + $0x168] sm:$0xff] }
 0x193   : > { %v2399_v48 = vpack.c.bf16 %v2271_v27, %v2271_v27  ;;  %v9720_v59 = vrot.slane %v6587_v55, 7  ;;  %v895_v39 = vadd.s32 32, %v6677_v46  ;;  %v2514_v50 = vunpack.c.l.b16 %v2386_v0  ;;  %3145 = vmatpush.bf16.msrb.mxu3 %v5739_v31 }
 0x194   : > { %9956 = vst [vmem:[#allocation32_spill] sm:$0xff] %v6864_v14  ;;  %v2553_v28 = vpack.c.b16 %v2530_v62, %v2529_v38  ;;  %v2256_v36 = vsel %vm9749_vm8, %v9718_v29, %v2193_v60  ;;  %vm6878_vm10 = vcmp.eq.s32.totalorder %v1053_v2, 0  ;;  %v9958_v27 = vmov 0  ;;  %v5707_v60 = vld [vmem:[%s6519_s21 + $0x68] sm:$0xff] }
 0x195   : > { %v2257_v25 = vsel %vm6790_vm1, 0.0, %v2256_v36  ;;  %v6875_v11 = vunpack.c.l.b16 %v2399_v48  ;;  %v9959_v27 = vsel %vm6878_vm10, 4294967295, %v9958_v27  ;;  %v1855_v61 = vunpack.c.l.b16 %v1727_v16  ;;  %3467 = vmatpush.bf16.msrb.mxu1 %v5707_v60 }
 0x196   : > { %3013 = vmatmul.bf16.vlgmr.msra.gmra.mxu3 %v2553_v28  ;;  %v2385_v1 = vpack.c.bf16 %v2257_v25, %v2257_v25  ;;  %9960 = vst [vmem:[#allocation34_spill] sm:$0xff] %v9959_v27  ;;  %v2434_v38 = vpack.c.bf16 %v6563_v30, %v6563_v30  ;;  %v9961_v62 = vrot.slane %v6563_v30, 7  ;;  %v2237_v0 = vsel %vm9749_vm8, %v2211_v63, %v9720_v59 }
 0x197   : > { %9957 = vst [vmem:[#allocation33_spill] sm:$0xff] %v6875_v11  ;;  %v955_v2 = vand.u32 15, %v895_v39  ;;  %v6895_v28 = vrot.slane %v6566_v33, 7  ;;  %v1886_v16 = vpack.c.b16 %v2514_v50, %v1855_v61  ;;  %v2433_v25 = vpack.c.bf16 %v6549_v15, %v6549_v15 }
 0x198   : > { %v2513_v54 = vunpack.c.l.b16 %v2385_v1  ;;  %v2238_v48 = vsel %vm9749_vm8, %v9961_v62, %v2211_v63  ;;  %v9719_v30 = vrot.slane %v6578_v44, 7  ;;  %v2626_v31 = vunpack.c.l.b16 %v2434_v38 }
 0x199   : > { %9962 = vst [vmem:[#allocation35_spill] sm:$0xff] %v6895_v28  ;;  %v2275_v1 = vsel %vm6878_vm10, 0.0, %v2238_v48  ;;  %v2404_v62 = vpack.c.bf16 %v2237_v0, %v2237_v0  ;;  %v892_v63 = vadd.s32 8, %v6677_v46  ;;  %v2625_v39 = vunpack.c.l.b16 %v2433_v25 }
 0x19a   : > { %v2545_v36 = vpack.c.b16 %v2514_v50, %v2513_v54  ;;  %v2403_v29 = vpack.c.bf16 %v2275_v1, %v2275_v1  ;;  %v9963_v50 = vrot.slane %v6554_v19, 7  ;;  %vm6909_vm11 = vcmp.eq.s32.totalorder %v955_v2, 0 }
 0x19b   : > { %v9964_v54 = vmov 0  ;;  %v2253_v61 = vsel %vm9749_vm8, %v6895_v28, %v9719_v30  ;;  %v9724_v38 = vrot.slane %v6739_v10, 1  ;;  %v2649_v48 = vpack.c.b16 %v2626_v31, %v2625_v39 }
 0x19c   : > { %2973 = vmatmul.bf16.vlgmr.msra.gmra.mxu1 %v2545_v36  ;;  %3389 = vmatmul.bf16.gmra.mxu0 %v1886_v16  ;;  %v2254_v15 = vsel %vm9749_vm8, %v9963_v50, %v6895_v28  ;;  %v9965_v54 = vsel %vm6909_vm11, 4294967295, %v9964_v54  ;;  %v2532_v0 = vunpack.c.l.b16 %v2404_v62  ;;  %v6920_v36 = vrot.slane %v6542_v8, 1 }
 0x19d   : > { %9966 = vst [vmem:[#allocation36_spill] sm:$0xff] %v9965_v54  ;;  %v2259_v2 = vsel %vm6811_vm4, 0.0, %v2254_v15  ;;  %v1536_v16 = vsel %vm6909_vm11, 0.0, %v2254_v15  ;;  %v934_v25 = vand.u32 15, %v892_v63  ;;  %v2531_v1 = vunpack.c.l.b16 %v2403_v29 }
 0x19e   : > { %9967 = vst [vmem:[#allocation37_spill] sm:$0xff] %v6920_v36  ;;  %v2388_v50 = vpack.c.bf16 %v2253_v61, %v2253_v61  ;;  %v911_v60 = vadd.s32 160, %v6677_v46  ;;  %v897_v31 = vadd.s32 48, %v6677_v46  ;;  %v2387_v8 = vpack.c.bf16 %v2259_v2, %v2259_v2 }
 0x19f   : > { %v2554_v62 = vpack.c.b16 %v2532_v0, %v2531_v1  ;;  %v1729_v39 = vpack.c.bf16 %v1536_v16, %v1536_v16  ;;  %v2213_v30 = vrot.slane %v6597_v3, 7  ;;  %vm6933_vm13 = vcmp.eq.s32.totalorder %v934_v25, 15  ;;  %v5738_v0 = vld [vmem:[%s6519_s21 + $0x160] sm:$0xff] }
 0x1a0   : > { %v9969_v63 = vmov 0  ;;  %v1626_v29 = vsel %vm9744_vm12, %v9724_v38, %v6920_v36  ;;  %v2516_v61 = vunpack.c.l.b16 %v2388_v50  ;;  %v2436_v2 = vpack.c.bf16 %v6587_v55, %v6587_v55  ;;  %3146 = vmatpush.bf16.msrb.mxu3 %v5738_v0 }
 0x1a1   : > { %v9970_v63 = vsel %vm6933_vm13, 4294967295, %v9969_v63  ;;  %v969_v16 = vand.u32 15, %v897_v31  ;;  %v2515_v1 = vunpack.c.l.b16 %v2387_v8  ;;  %v1857_v15 = vunpack.c.l.b16 %v1729_v39 }
 0x1a2   : > { %3102 = vmatmul.bf16.gmra.mxu2 %v2649_v48  ;;  %9971 = vst [vmem:[#allocation39_spill] sm:$0xff] %v9970_v63  ;;  %v1067_v48 = vand.u32 15, %v911_v60  ;;  %v9972_v25 = vrot.slane %v6587_v55, 7  ;;  %v1694_v28 = vsel %vm6933_vm13, 0.0, %v1626_v29  ;;  %v2197_v50 = vrot.slane %v6590_v58, 7 }
 0x1a3   : > { %v2435_v60 = vpack.c.bf16 %v6573_v40, %v6573_v40  ;;  %v9973_v31 = vrot.slane %v6611_v21, 7  ;;  %v2198_v8 = vrot.slane %v6602_v7, 7  ;;  %v2546_v39 = vpack.c.b16 %v2516_v61, %v2515_v1 }
 0x1a4   : > { %v2236_v17 = vsel %vm9749_vm8, %v9972_v25, %v2213_v30  ;;  %v1887_v0 = vpack.c.b16 %v2516_v61, %v1857_v15  ;;  %vm6960_vm15 = vcmp.eq.s32.totalorder %v1067_v48, 0  ;;  %v9974_v25 = vmov 0  ;;  %v5706_v48 = vld [vmem:[%s6519_s21 + $0x60] sm:$0xff] }
 0x1a5   : > { %v6930_v59 = vpop.f32.mrf.mxu2  ;;  %v2235_v55 = vsel %vm9749_vm8, %v2213_v30, %v9973_v31  ;;  %v9975_v25 = vsel %vm6960_vm15, 4294967295, %v9974_v25  ;;  %v2277_v29 = vsel %vm6960_vm15, 0.0, %v2236_v17  ;;  %v1790_v38 = vpack.c.bf16 %v1694_v28, %v1694_v28  ;;  %3468 = vmatpush.bf16.msrb.mxu1 %v5706_v48 }
 0x1a6   : > { %9968 = vst [vmem:[#allocation38_spill] sm:$0xff] %v6930_v59  ;;  %3018 = vmatmul.bf16.gmra.mxu3 %v2554_v62  ;;  %v2290_v62 = vrot.slane %v6554_v19, 1  ;;  %v2628_v19 = vunpack.c.l.b16 %v2436_v2  ;;  %v2406_v40 = vpack.c.bf16 %v2235_v55, %v2235_v55  ;;  %v2627_v45 = vunpack.c.l.b16 %v2435_v60 }
 0x1a7   : > { %9976 = vst [vmem:[#allocation40_spill] sm:$0xff] %v9975_v25  ;;  %v9978_v30 = vrot.slane %v6578_v44, 7  ;;  %vm6972_vm0 = vcmp.eq.s32.totalorder %v969_v16, 0  ;;  %v9979_v61 = vmov 0  ;;  %v2405_v28 = vpack.c.bf16 %v2277_v29, %v2277_v29 }
 0x1a8   : > { %v9980_v61 = vsel %vm6972_vm0, 4294967295, %v9979_v61  ;;  %v6980_v17 = vsel %vm9744_vm12, %v6920_v36, %v2290_v62  ;;  %v2251_v2 = vsel %vm9749_vm8, %v2197_v50, %v2198_v8  ;;  %v913_v1 = vadd.s32 176, %v6677_v46  ;;  %v5705_v36 = vld [vmem:[%s6519_s21 + $0x58] sm:$0xff] }
 0x1a9   : > { %v2252_v15 = vsel %vm9749_vm8, %v9978_v30, %v2197_v50  ;;  %9981 = vst [vmem:[#allocation42_spill] sm:$0xff] %v9980_v61  ;;  %v899_v60 = vadd.s32 64, %v6677_v46  ;;  %v2650_v16 = vpack.c.b16 %v2628_v19, %v2627_v45  ;;  %v6987_v55 = vunpack.c.l.b16 %v1790_v38  ;;  %3469 = vmatpush.bf16.msrb.mxu1 %v5705_v36  ;;  %v7099_v36 = vld [vmem:[#allocation3 + $0x18] sm:$0xff] }
 0x1aa   : > { %v2261_v30 = vsel %vm6909_vm11, 0.0, %v2252_v15  ;;  %v1538_v29 = vsel %vm6972_vm0, 0.0, %v2252_v15  ;;  %v915_v11 = vadd.s32 192, %v6677_v46  ;;  %v2533_v19 = vunpack.c.l.b16 %v2405_v28 }
 0x1ab   : > { %v1081_v48 = vand.u32 15, %v913_v1  ;;  %v2389_v31 = vpack.c.bf16 %v2261_v30, %v2261_v30  ;;  %v1731_v54 = vpack.c.bf16 %v1538_v29, %v1538_v29  ;;  %v2437_v14 = vpack.c.bf16 %v6597_v3, %v6597_v3 }
 0x1ac   : > { %2978 = vmatmul.bf16.gmra.mxu1 %v2546_v39  ;;  %3394 = vmatmul.bf16.gmra.mxu0 %v1887_v0  ;;  %v2199_v39 = vrot.slane %v6614_v24, 7  ;;  %v2534_v0 = vunpack.c.l.b16 %v2406_v40  ;;  %v983_v40 = vand.u32 15, %v899_v60  ;;  %v2215_v15 = vrot.slane %v6621_v32, 7 }
 0x1ad   : > { %v6966_v59 = vpop.f32.mrf.mxu2  ;;  %v2438_v45 = vpack.c.bf16 %v6611_v21, %v6611_v21  ;;  %v1095_v30 = vand.u32 15, %v915_v11  ;;  %v9983_v3 = vrot.slane %v6566_v33, 1  ;;  %vm7018_vm2 = vcmp.eq.s32.totalorder %v1081_v48, 0 }
 0x1ae   : > { %9977 = vst [vmem:[#allocation41_spill] sm:$0xff] %v6966_v59  ;;  %v2390_v59 = vpack.c.bf16 %v2251_v2, %v2251_v2  ;;  %v7003_v2 = vrot.slane %v6626_v37, 7  ;;  %v2555_v50 = vpack.c.b16 %v2534_v0, %v2533_v19  ;;  %v2250_v28 = vsel %vm9749_vm8, %v2198_v8, %v2199_v39 }
 0x1af   : > { %v2350_v29 = vsel %vm9744_vm12, %v2290_v62, %v9983_v3  ;;  %v9984_v19 = vmov 0  ;;  %vm7022_vm3 = vcmp.eq.s32.totalorder %v983_v40, 0  ;;  %v9987_v8 = vmov 0 }
 0x1b0   : > { %v2518_v60 = vunpack.c.l.b16 %v2390_v59  ;;  %v9985_v19 = vsel %vm7018_vm2, 4294967295, %v9984_v19  ;;  %v9988_v8 = vsel %vm7022_vm3, 4294967295, %v9987_v8  ;;  %v5737_v59 = vld [vmem:[%s6519_s21 + $0x158] sm:$0xff]  ;;  %v2517_v11 = vunpack.c.l.b16 %v2389_v31 }
 0x1b1   : > { %9986 = vst [vmem:[#allocation44_spill] sm:$0xff] %v9985_v19  ;;  %v9990_v27 = vrot.slane %v6611_v21, 7  ;;  %v2263_v3 = vsel %vm6972_vm0, 0.0, %v2250_v28  ;;  %v2630_v48 = vunpack.c.l.b16 %v2438_v45  ;;  %v2249_v40 = vsel %vm9749_vm8, %v2199_v39, %v7003_v2  ;;  %3147 = vmatpush.bf16.msrb.mxu3 %v5737_v59  ;;  %v7038_v31 = vld [vmem:[#allocation3 + $0xd8] sm:$0xff] }
 0x1b2   : > { %3107 = vmatmul.bf16.gmra.mxu2 %v2650_v16  ;;  %v2216_v16 = vrot.slane %v6637_v52, 7  ;;  %9989 = vst [vmem:[#allocation45_spill] sm:$0xff] %v9988_v8  ;;  %v2354_v0 = vsel %vm6933_vm13, 0.0, %v2350_v29  ;;  %v2547_v21 = vpack.c.b16 %v2518_v60, %v2517_v11  ;;  %vm7046_vm6 = vcmp.eq.s32.totalorder %v1095_v30, 0 }
 0x1b3   : > { %v2234_v62 = vsel %vm9749_vm8, %v9990_v27, %v2215_v15  ;;  %9991 = vst [vmem:[#allocation46_spill] sm:$0xff] %v7038_v31  ;;  %v9993_v45 = vmov 0  ;;  %v2391_v29 = vpack.c.bf16 %v2263_v3, %v2263_v3  ;;  %v2201_v59 = vrot.slane %v6640_v56, 7 }
 0x1b4   : > { %v2233_v27 = vsel %vm9749_vm8, %v2215_v15, %v2216_v16  ;;  %v9994_v45 = vsel %vm7046_vm6, 4294967295, %v9993_v45  ;;  %v2279_v39 = vsel %vm7018_vm2, 0.0, %v2234_v62  ;;  %v917_v11 = vadd.s32 208, %v6677_v46 }
 0x1b5   : > { %v7009_v1 = vpop.f32.mrf.mxu2  ;;  %9995 = vst [vmem:[#allocation48_spill] sm:$0xff] %v9994_v45  ;;  %v9742_v15 = vrot.slane %v7038_v31, 1  ;;  %v2408_v63 = vpack.c.bf16 %v2233_v27, %v2233_v27  ;;  %v2407_v19 = vpack.c.bf16 %v2279_v39, %v2279_v39  ;;  %v2440_v7 = vpack.c.bf16 %v6637_v52, %v6637_v52 }
 0x1b6   : > { %9982 = vst [vmem:[#allocation43_spill] sm:$0xff] %v7009_v1  ;;  %3023 = vmatmul.bf16.gmra.mxu3 %v2555_v50  ;;  %v1859_v1 = vunpack.c.l.b16 %v1731_v54  ;;  %v2629_v50 = vunpack.c.l.b16 %v2437_v14  ;;  %v7040_v54 = vld [vmem:[#allocation3 + $0xe8] sm:$0xff]  ;;  %v1540_v14 = vsel %vm7022_vm3, 0.0, %v2250_v28  ;;  %v2450_v25 = vpack.c.bf16 %v2354_v0, %v2354_v0 }
 0x1b7   : > { %9992 = vst [vmem:[#allocation47_spill] sm:$0xff] %v7040_v54  ;;  %v9741_v28 = vrot.slane %v7040_v54, 1  ;;  %v1733_v62 = vpack.c.bf16 %v1540_v14, %v1540_v14  ;;  %v2248_v52 = vsel %vm9749_vm8, %v7003_v2, %v2201_v59  ;;  %v7079_v27 = vunpack.c.l.b16 %v2391_v29 }
 0x1b8   : > { %v1888_v38 = vpack.c.b16 %v2518_v60, %v1859_v1  ;;  %v2392_v1 = vpack.c.bf16 %v2249_v40, %v2249_v40  ;;  %v2217_v60 = vrot.slane %v6650_v6, 7  ;;  %v2651_v61 = vpack.c.b16 %v2630_v48, %v2629_v50  ;;  %v7062_v40 = vld [vmem:[#allocation3 + $0x40] sm:$0xff] }
 0x1b9   : > { %v2439_v48 = vpack.c.bf16 %v6621_v32, %v6621_v32  ;;  %v2218_v14 = vrot.slane %v6668_v35, 7  ;;  %v1861_v50 = vunpack.c.l.b16 %v1733_v62  ;;  %v9998_v32 = vrot.slane %v6656_v13, 7  ;;  %v1382_v62 = vld [vmem:[#allocation3] sm:$0xff] }
 0x1ba   : > { %v7081_v0 = vunpack.c.l.b16 %v2392_v1  ;;  %v2232_v39 = vsel %vm9749_vm8, %v2216_v16, %v2217_v60  ;;  %v1413_v29 = vrot.slane %v7062_v40, 7  ;;  %v7093_v1 = vunpack.c.l.b16 %v2440_v7  ;;  %v7134_v7 = vld [vmem:[#allocation3 + $0xa0] sm:$0xff] }
 0x1bb   : > { %v2247_v30 = vsel %vm9749_vm8, %v2201_v59, %v9998_v32  ;;  %v7097_v54 = vunpack.c.l.b16 %v2450_v25  ;;  %v2281_v16 = vsel %vm7046_vm6, 0.0, %v2232_v39  ;;  %v9999_v59 = vpack.c.bf16 %v6980_v17, %v6980_v17 }
 0x1bc   : > { %2983 = vmatmul.bf16.gmra.mxu1 %v2547_v21  ;;  %3399 = vmatmul.bf16.gmra.mxu0 %v1888_v38  ;;  %v7071_v38 = vsel %vm9744_vm12, %v9742_v15, %v9741_v28  ;;  %v1109_v21 = vand.u32 15, %v917_v11  ;;  %v7086_v28 = vld [vmem:[#allocation3 + $0xb0] sm:$0xff]  ;;  %v2536_v15 = vunpack.c.l.b16 %v2408_v63  ;;  %v2535_v11 = vunpack.c.l.b16 %v2407_v19 }
 0x1bd   : > { %v7058_v3 = vpop.f32.mrf.mxu2  ;;  %9997 = vst [vmem:[#allocation50_spill] sm:$0xff] %v7071_v38  ;;  %v7101_v63 = vunpack.c.l.b16 %v2439_v48  ;;  %v7108_v19 = vunpack.c.l.b16 %v9999_v59  ;;  %v2548_v25 = vpack.c.b16 %v7081_v0, %v7079_v27  ;;  %v1889_v40 = vpack.c.b16 %v7081_v0, %v1861_v50  ;;  %v1383_v0 = vld [vmem:[#allocation3 + $0x30] sm:$0xff] }
 0x1be   : > { %9996 = vst [vmem:[#allocation49_spill] sm:$0xff] %v7058_v3  ;;  %v2265_v3 = vsel %vm7022_vm3, 0.0, %v2248_v52  ;;  %v2394_v48 = vpack.c.bf16 %v2247_v30, %v2247_v30  ;;  %v2556_v52 = vpack.c.b16 %v2536_v15, %v2535_v11  ;;  %v1457_v17 = vsel %vm9749_vm8, %v7003_v2, %v1413_v29  ;;  %v5736_v11 = vld [vmem:[%s6519_s21 + $0x150] sm:$0xff] }
 0x1bf   : > { %10000 = vst [vmem:[#allocation51_spill] sm:$0xff] %v7108_v19  ;;  %v2393_v39 = vpack.c.bf16 %v2265_v3, %v2265_v3  ;;  %vm7119_vm12 = vcmp.eq.s32.totalorder %v1109_v21, 0  ;;  %v10001_v32 = vmov 0  ;;  %v1414_v30 = vrot.slane %v1382_v62, 7  ;;  %3148 = vmatpush.bf16.msrb.mxu3 %v5736_v11 }
 0x1c0   : > { %v10002_v32 = vsel %vm7119_vm12, 4294967295, %v10001_v32  ;;  %v2441_v2 = vpack.c.bf16 %v6650_v6, %v6650_v6  ;;  %v2219_v21 = vrot.slane %v6685_v57, 7  ;;  %v919_v59 = vadd.s32 224, %v6677_v46 }
 0x1c1   : > { %10003 = vst [vmem:[#allocation52_spill] sm:$0xff] %v10002_v32  ;;  %v7144_v15 = vunpack.c.l.b16 %v2393_v39  ;;  %v1415_v6 = vrot.slane %v1383_v0, 7  ;;  %v10005_v50 = vrot.slane %v7099_v36, 7  ;;  %v10006_v8 = vrot.slane %v7086_v28, 7 }
 0x1c2   : > { %3112 = vmatmul.bf16.gmra.mxu2 %v2651_v61  ;;  %v2231_v61 = vsel %vm9749_vm8, %v2217_v60, %v2218_v14  ;;  %v2409_v60 = vpack.c.bf16 %v2281_v16, %v2281_v16  ;;  %v1542_v16 = vsel %vm6704_vm9, 0.0, %v1457_v17  ;;  %v1456_v17 = vsel %vm9749_vm8, %v1413_v29, %v1414_v30 }
 0x1c3   : > { %v2410_v3 = vpack.c.bf16 %v2231_v61, %v2231_v61  ;;  %v2298_v61 = vrot.slane %v6656_v13, 1  ;;  %v2442_v62 = vpack.c.bf16 %v6668_v35, %v6668_v35  ;;  %v1416_v13 = vrot.slane %v7134_v7, 7 }
 0x1c4   : > { %v2537_v22 = vunpack.c.l.b16 %v2409_v60  ;;  %v1735_v11 = vpack.c.bf16 %v1542_v16, %v1542_v16  ;;  %v2230_v0 = vsel %vm9749_vm8, %v2218_v14, %v2219_v21  ;;  %v9748_v38 = vrot.slane %v6640_v56, 1 }
 0x1c5   : > { %v7124_v27 = vpop.f32.mrf.mxu2  ;;  %v2538_v39 = vunpack.c.l.b16 %v2410_v3  ;;  %v10007_v29 = vrot.slane %v6717_v34, 7  ;;  %v1736_v7 = vpack.c.bf16 %v1456_v17, %v1456_v17  ;;  %v7169_v3 = vunpack.c.l.b16 %v2441_v2 }
 0x1c6   : > { %10004 = vst [vmem:[#allocation53_spill] sm:$0xff] %v7124_v27  ;;  %3028 = vmatmul.bf16.gmra.mxu3 %v2556_v52  ;;  %v7137_v27 = vunpack.c.l.b16 %v2394_v48  ;;  %v900_v52 = vadd.s32 72, %v6677_v46  ;;  %v7152_v48 = vsel %vm9749_vm8, %v10006_v8, %v10005_v50  ;;  %v1455_v14 = vsel %vm9749_vm8, %v1414_v30, %v1415_v6 }
 0x1c7   : > { %v2229_v35 = vsel %vm9749_vm8, %v2219_v21, %v10007_v29  ;;  %vm10008_vm1 = vcmp.lt.s32.totalorder %v6677_v46, 7  ;;  %v7179_v8 = vunpack.c.l.b16 %v2442_v62  ;;  %v2283_v21 = vsel %vm7119_vm12, 0.0, %v2230_v0 }
 0x1c8   : > { %v990_v60 = vand.u32 15, %v900_v52  ;;  %v2343_v16 = vsel %vm10008_vm1, %v9748_v38, %v2298_v61  ;;  %v1123_v2 = vand.u32 15, %v919_v59  ;;  %v2557_v52 = vpack.c.b16 %v2538_v39, %v2537_v22  ;;  %v7190_v38 = vld [vmem:[#allocation3 + $0x28] sm:$0xff] }
 0x1c9   : > { %v7186_v17 = vunpack.c.l.b16 %v1735_v11  ;;  %v2412_v30 = vpack.c.bf16 %v2229_v35, %v2229_v35  ;;  %v2444_v29 = vpack.c.bf16 %v6717_v34, %v6717_v34  ;;  %v1544_v62 = vsel %vm6744_vm14, 0.0, %v1455_v14  ;;  %v7255_v14 = vld [vmem:[#allocation3 + $0x108] sm:$0xff] }
 0x1ca   : > { %vm7196_vm1 = vcmp.eq.s32.totalorder %v990_v60, 15  ;;  %v10010_v0 = vmov 0  ;;  %v10013_v22 = vrot.slane %v6672_v41, 1  ;;  %v1864_v39 = vunpack.c.l.b16 %v1736_v7  ;;  %10025 = vst [vmem:[#allocation60_spill] sm:$0xff] %v7255_v14 }
 0x1cb   : > { %v10011_v0 = vsel %vm7196_vm1, 4294967295, %v10010_v0  ;;  %v2411_v11 = vpack.c.bf16 %v2283_v21, %v2283_v21  ;;  %v2443_v60 = vpack.c.bf16 %v6685_v57, %v6685_v57  ;;  %v10015_v45 = vpack.c.b16 %v7093_v1, %v7101_v63 }
 0x1cc   : > { %2988 = vmatmul.bf16.gmra.mxu1 %v2548_v25  ;;  %3404 = vmatmul.bf16.gmra.mxu0 %v1889_v40  ;;  %v1454_v25 = vsel %vm9749_vm8, %v1415_v6, %v1416_v13  ;;  %v5704_v40 = vld [vmem:[%s6519_s21 + $0x50] sm:$0xff]  ;;  %10012 = vst [vmem:[#allocation55_spill] sm:$0xff] %v10011_v0  ;;  %vm10014_vm8 = vcmp.lt.s32.totalorder %v6677_v46, 7  ;;  %v2457_v6 = vpack.c.bf16 %v2343_v16, %v2343_v16  ;;  %v10016_v16 = vmov 0 }
 0x1cd   : > { %v7177_v50 = vpop.f32.mrf.mxu2  ;;  %3470 = vmatpush.bf16.msrb.mxu1 %v5704_v40  ;;  %v2342_v59 = vsel %vm10014_vm8, %v2298_v61, %v10013_v22  ;;  %v1738_v35 = vpack.c.bf16 %v1454_v25, %v1454_v25  ;;  %v9757_v40 = vrot.slane %v7190_v38, 7  ;;  %v7214_v61 = vunpack.c.l.b16 %v2412_v30 }
 0x1ce   : > { %10009 = vst [vmem:[#allocation54_spill] sm:$0xff] %v7177_v50  ;;  %v7194_v50 = vld [vmem:[#allocation3 + $0x58] sm:$0xff]  ;;  %v2362_v18 = vsel %vm7196_vm1, 0.0, %v2342_v59  ;;  %v1737_v7 = vpack.c.bf16 %v1544_v62, %v1544_v62  ;;  %vm7216_vm8 = vcmp.eq.s32.totalorder %v1123_v2, 0  ;;  %v9759_v25 = vrot.slane %v6692_v4, 1 }
 0x1cf   : > { %v2458_v32 = vpack.c.bf16 %v2362_v18, %v2362_v18  ;;  %v10017_v16 = vsel %vm7216_vm8, 4294967295, %v10016_v16  ;;  %v2221_v21 = vrot.slane %v7194_v50, 7  ;;  %v7222_v22 = vunpack.c.l.b16 %v2444_v29 }
 0x1d0   : > { %10018 = vst [vmem:[#allocation56_spill] sm:$0xff] %v10017_v16  ;;  %v7224_v57 = vunpack.c.l.b16 %v2457_v6  ;;  %v7229_v1 = vunpack.c.l.b16 %v2411_v11  ;;  %v7231_v63 = vunpack.c.l.b16 %v1738_v35  ;;  %v921_v2 = vadd.s32 240, %v6677_v46 }
 0x1d1   : > { %v7226_v18 = vunpack.c.l.b16 %v2458_v32  ;;  %v7236_v62 = vunpack.c.l.b16 %v2443_v60  ;;  %vm10022_vm14 = vcmp.lt.s32.totalorder %v6677_v46, 1  ;;  %v10023_v11 = vrot.slane %v6717_v34, 7  ;;  %v5735_v60 = vld [vmem:[%s6519_s21 + $0x148] sm:$0xff] }
 0x1d2   : > { %3117 = vmatmul.bf16.gmra.mxu2 %v10015_v45  ;;  %10019 = vst [vmem:[#allocation57_spill] sm:$0xff] %v7224_v57  ;;  %v1890_v45 = vpack.c.b16 %v1864_v39, %v7186_v17  ;;  %v1453_v29 = vsel %vm10022_vm14, %v1416_v13, %v9757_v40  ;;  %v912_v17 = vadd.s32 168, %v6677_v46  ;;  %v7248_v39 = vunpack.c.l.b16 %v1737_v7  ;;  %vm10024_vm9 = vmmov %vm10022_vm14  ;;  %v1386_v13 = vld [vmem:[#allocation3 + $0xd0] sm:$0xff]  ;;  %3149 = vmatpush.bf16.msrb.mxu3 %v5735_v60 }
 0x1d3   : > { %10020 = vst [vmem:[#allocation58_spill] sm:$0xff] %v7226_v18  ;;  %v2228_v35 = vsel %vm10024_vm9, %v10023_v11, %v2221_v21  ;;  %v7262_v40 = vld [vmem:[#allocation3 + $0xf0] sm:$0xff]  ;;  %v902_v7 = vadd.s32 88, %v6677_v46  ;;  %v10026_v34 = vrot.slane %v6672_v41, 1  ;;  %vm10027_vm9 = vcmp.lt.s32.totalorder %v6677_v46, 7 }
 0x1d4   : > { %v7276_v59 = vsel %vm10022_vm14, %v2221_v21, %v6782_v20  ;;  %v7280_v32 = vsel %vm6848_vm7, 0.0, %v1453_v29  ;;  %v7282_v57 = vld [vmem:[#allocation3 + $0x110] sm:$0xff]  ;;  %v2285_v41 = vsel %vm7216_vm8, 0.0, %v2228_v35  ;;  %v1074_v6 = vand.u32 15, %v912_v17 }
 0x1d5   : > { %v7234_v30 = vpop.f32.mrf.mxu2  ;;  %v2341_v11 = vsel %vm10027_vm9, %v10026_v34, %v9759_v25  ;;  %v1418_v34 = vrot.slane %v1386_v13, 7  ;;  %v7286_v25 = vld [vmem:[#allocation3 + $0xf8] sm:$0xff]  ;;  %v1777_v18 = vpack.c.bf16 %v7255_v14, %v7255_v14  ;;  %v1778_v29 = vpack.c.bf16 %v7262_v40, %v7262_v40 }
 0x1d6   : > { %10021 = vst [vmem:[#allocation59_spill] sm:$0xff] %v7234_v30  ;;  %3033 = vmatmul.bf16.gmra.mxu3 %v2557_v52  ;;  %v7260_v52 = vld [vmem:[#allocation3 + $0x78] sm:$0xff]  ;;  %v1137_v30 = vand.u32 15, %v921_v2  ;;  %v1585_v2 = vrot.slane %v7262_v40, 1  ;;  %v1739_v35 = vpack.c.bf16 %v7280_v32, %v7280_v32  ;;  %v2445_v13 = vpack.c.bf16 %v7194_v50, %v7194_v50 }
 0x1d7   : > { %v2223_v21 = vrot.slane %v7260_v52, 7  ;;  %v1419_v17 = vrot.slane %v7282_v57, 7  ;;  %v1004_v51 = vand.u32 15, %v902_v7  ;;  %v10028_v16 = vpack.c.b16 %v7137_v27, %v7144_v15  ;;  %v5703_v15 = vld [vmem:[%s6519_s21 + $0x48] sm:$0xff] }
 0x1d8   : > { %v7303_v60 = vunpack.c.l.b16 %v1777_v18  ;;  %v7305_v0 = vunpack.c.l.b16 %v1778_v29  ;;  %v9774_v31 = vrot.slane %v7286_v25, 1  ;;  %v10031_v19 = vrot.slane %v7255_v14, 1  ;;  %3471 = vmatpush.bf16.msrb.mxu1 %v5703_v15 }
 0x1d9   : > { %v2413_v7 = vpack.c.bf16 %v2285_v41, %v2285_v41  ;;  %v2414_v27 = vpack.c.bf16 %v7276_v59, %v7276_v59  ;;  %vm7318_vm14 = vcmp.eq.s32.totalorder %v1074_v6, 15  ;;  %v10035_v18 = vrot.slane %v7190_v38, 7  ;;  %v7335_v6 = vld [vmem:[#allocation3 + $0xc0] sm:$0xff] }
 0x1da   : > { %10029 = vst [vmem:[#allocation61_spill] sm:$0xff] %v7303_v60  ;;  %v1607_v32 = vsel %vm10027_vm9, %v10031_v19, %v1585_v2  ;;  %vm10036_vm7 = vcmp.lt.s32.totalorder %v6677_v46, 1  ;;  %vm10038_vm8 = vcmp.lt.s32.totalorder %v6677_v46, 7  ;;  %v10040_v29 = vmov 0 }
 0x1db   : > { %10030 = vst [vmem:[#allocation62_spill] sm:$0xff] %v7305_v0  ;;  %vm10037_vm9 = vmmov %vm10036_vm7  ;;  %v1606_v59 = vsel %vm10038_vm8, %v1585_v2, %v9774_v31  ;;  %v10044_v41 = vrot.slane %v6692_v4, 1  ;;  %v10046_v2 = vmov 0  ;;  %v10049_v31 = vrot.slane %v6858_v53, 7 }
 0x1dc   : > { %2993 = vmatmul.bf16.gmra.mxu1 %v10028_v16  ;;  %3409 = vmatmul.bf16.gmra.mxu0 %v1890_v45  ;;  %v10033_v16 = vmov 0  ;;  %v1452_v45 = vsel %vm10036_vm7, %v10035_v18, %v1418_v34  ;;  %v2226_v19 = vsel %vm10037_vm9, %v6782_v20, %v2223_v21  ;;  %vm10039_vm12 = vmmov %vm10036_vm7  ;;  %vm7339_vm7 = vcmp.eq.s32.totalorder %v1004_v51, 15 }
 0x1dd   : > { %v7313_v57 = vpop.f32.mrf.mxu2  ;;  %v10034_v16 = vsel %vm7318_vm14, 4294967295, %v10033_v16  ;;  %v1451_v38 = vsel %vm10039_vm12, %v1418_v34, %v1419_v17  ;;  %v10041_v29 = vsel %vm7339_vm7, 4294967295, %v10040_v29  ;;  %v10043_v18 = vrot.slane %v6724_v47, 1  ;;  %vm10045_vm9 = vmmov %vm10038_vm8 }
 0x1de   : > { %10032 = vst [vmem:[#allocation63_spill] sm:$0xff] %v7313_v57  ;;  %v2459_v57 = vpack.c.bf16 %v2341_v11, %v2341_v11  ;;  %vm7349_vm8 = vcmp.eq.s32.totalorder %v1137_v30, 0  ;;  %v1714_v51 = vsel %vm7318_vm14, 0.0, %v1606_v59  ;;  %v1809_v34 = vpack.c.bf16 %v1607_v32, %v1607_v32  ;;  %v5717_v59 = vld [vmem:[%s6519_s21 + $0xb8] sm:$0xff] }
 0x1df   : > { %10042 = vst [vmem:[#allocation64_spill] sm:$0xff] %v10041_v29  ;;  %v2340_v50 = vsel %vm10045_vm9, %v10044_v41, %v10043_v18  ;;  %v10047_v2 = vsel %vm7349_vm8, 4294967295, %v10046_v2  ;;  %v2225_v4 = vsel %vm10039_vm12, %v2223_v21, %v10049_v31  ;;  %v2287_v41 = vsel %vm7349_vm8, 0.0, %v2226_v19  ;;  %3554 = vmatpush.bf16.msra.mxu2 %v5717_v59  ;;  %vm10057_vm9 = vmmov %vm10039_vm12 }
 0x1e0   : > { %10048 = vst [vmem:[#allocation65_spill] sm:$0xff] %v10047_v2  ;;  %v2364_v15 = vsel %vm7339_vm7, 0.0, %v2340_v50  ;;  %v1810_v30 = vpack.c.bf16 %v1714_v51, %v1714_v51  ;;  %v10050_v18 = vpack.c.b16 %v7179_v8, %v7169_v3  ;;  %v1740_v60 = vpack.c.bf16 %v1452_v45, %v1452_v45 }
 0x1e1   : > { %v2460_v11 = vpack.c.bf16 %v2364_v15, %v2364_v15  ;;  %v2446_v50 = vpack.c.bf16 %v6776_v5, %v6776_v5  ;;  %v9777_v32 = vrot.slane %v7335_v6, 7  ;;  %v1548_v0 = vsel %vm6829_vm5, 0.0, %v1451_v38 }
 0x1e2   : > { %3122 = vmatmul.bf16.gmra.mxu2 %v10050_v18  ;;  %v2447_v31 = vpack.c.bf16 %v7260_v52, %v7260_v52  ;;  %v7374_v21 = vunpack.c.l.b16 %v2459_v57  ;;  %v7378_v8 = vunpack.c.l.b16 %v1810_v30  ;;  %v2415_v3 = vpack.c.bf16 %v2287_v41, %v2287_v41 }
 0x1e3   : > { %v7376_v19 = vunpack.c.l.b16 %v2460_v11  ;;  %v2416_v5 = vpack.c.bf16 %v2225_v4, %v2225_v4  ;;  %v2448_v45 = vpack.c.bf16 %v6858_v53, %v6858_v53  ;;  %v7382_v15 = vunpack.c.l.b16 %v1809_v34  ;;  %v5734_v53 = vld [vmem:[%s6519_s21 + $0x140] sm:$0xff]  ;;  %v5716_v34 = vld [vmem:[%s6519_s21 + $0xb0] sm:$0xff] }
 0x1e4   : > { %10051 = vst [vmem:[#allocation66_spill] sm:$0xff] %v7374_v21  ;;  %v7386_v51 = vunpack.c.l.b16 %v2413_v7  ;;  %v7388_v52 = vunpack.c.l.b16 %v2414_v27  ;;  %v7390_v57 = vunpack.c.l.b16 %v1739_v35  ;;  %v10056_v41 = vpack.c.b16 %v7214_v61, %v7229_v1  ;;  %3150 = vmatpush.bf16.msrb.mxu3 %v5734_v53  ;;  %3555 = vmatpush.bf16.msra.mxu2 %v5716_v34  ;;  %v5715_v27 = vld [vmem:[%s6519_s21 + $0xa8] sm:$0xff]  ;;  %v5757_v21 = vld [vmem:[%s6519_s21 + $0x1f8] sm:$0xff] }
 0x1e5   : > { %10052 = vst [vmem:[#allocation67_spill] sm:$0xff] %v7376_v19  ;;  %v7384_v38 = vpop.f32.mrf.mxu2  ;;  %v7397_v4 = vunpack.c.l.b16 %v2445_v13  ;;  %v1450_v7 = vsel %vm10057_vm9, %v1419_v17, %v9777_v32  ;;  %v904_v35 = vadd.s32 104, %v6677_v46  ;;  %v7408_v30 = vunpack.c.l.b16 %v1740_v60  ;;  %4537 = vmatpush.bf16.msra.mxu0 %v5757_v21 }
 0x1e6   : > { %10053 = vst [vmem:[#allocation68_spill] sm:$0xff] %v7378_v8  ;;  %3038 = vmatmul.bf16.gmra.mxu3 %v10056_v41  ;;  %v7410_v18 = vunpack.c.l.b16 %v2446_v50  ;;  %v1741_v61 = vpack.c.bf16 %v1548_v0, %v1548_v0  ;;  %v10058_v1 = vrot.slane %v6750_v23, 1  ;;  %v10059_v13 = vrot.slane %v6724_v47, 1  ;;  %v7426_v50 = vld [vmem:[#allocation3 + $0x118] sm:$0xff]  ;;  %v5755_v8 = vld [vmem:[%s6519_s21 + $0x1e8] sm:$0xff] }
 0x1e7   : > { %10054 = vst [vmem:[#allocation69_spill] sm:$0xff] %v7382_v15  ;;  %vm10060_vm12 = vcmp.lt.s32.totalorder %v6677_v46, 7  ;;  %v7418_v41 = vunpack.c.l.b16 %v2415_v3  ;;  %v7420_v17 = vunpack.c.l.b16 %v2416_v5  ;;  %v7422_v11 = vunpack.c.l.b16 %v2447_v31  ;;  %v5712_v15 = vld [vmem:[%s6519_s21 + $0x90] sm:$0xff] }
 0x1e8   : > { %10055 = vst [vmem:[#allocation70_spill] sm:$0xff] %v7384_v38  ;;  %v2339_v59 = vsel %vm10060_vm12, %v10059_v13, %v10058_v1  ;;  %v7424_v60 = vunpack.c.l.b16 %v2448_v45  ;;  %v1742_v47 = vpack.c.bf16 %v1450_v7, %v1450_v7  ;;  %v1744_v1 = vpack.c.bf16 %v7152_v48, %v7152_v48  ;;  %vm10063_vm9 = vmmov %vm10060_vm12  ;;  %3556 = vmatpush.bf16.msra.mxu2 %v5715_v27 }
 0x1e9   : > { %v10061_v3 = vrot.slane %v6739_v10, 1  ;;  %v10062_v5 = vrot.slane %v6737_v9, 1  ;;  %v894_v53 = vadd.s32 24, %v6677_v46  ;;  %v1018_v34 = vand.u32 15, %v904_v35  ;;  %vm10069_vm12 = vmmov %vm10063_vm9 }
 0x1ea   : > { %v914_v13 = vadd.s32 184, %v6677_v46  ;;  %v1779_v48 = vpack.c.bf16 %v7286_v25, %v7286_v25  ;;  %v10065_v35 = vpack.c.b16 %v7231_v63, %v7248_v39  ;;  %v7458_v32 = vunpack.c.l.b16 %v1741_v61 }
 0x1eb   : > { %v1627_v31 = vsel %vm10063_vm9, %v10062_v5, %v10061_v3  ;;  %v1780_v3 = vpack.c.bf16 %v7426_v50, %v7426_v50  ;;  %v10064_v5 = vpack.c.b16 %v6721_v43, %v6727_v49  ;;  %v7464_v9 = vunpack.c.l.b16 %v1742_v47  ;;  %v5702_v43 = vld [vmem:[%s6519_s21 + $0x40] sm:$0xff] }
 0x1ec   : > { %3414 = vmatmul.bf16.gmra.mxu0 %v10065_v35  ;;  %v1789_v7 = vpack.c.bf16 %v1627_v31, %v1627_v31  ;;  %v5714_v49 = vld [vmem:[%s6519_s21 + $0xa0] sm:$0xff]  ;;  %v10067_v63 = vrot.slane %v6590_v58, 1  ;;  %v10068_v39 = vrot.slane %v6578_v44, 1  ;;  %v10071_v31 = vrot.slane %v6566_v33, 1  ;;  %3472 = vmatpush.bf16.msrb.mxu1 %v5702_v43 }
 0x1ed   : > { %2998 = vmatmul.bf16.gmra.mxu1 %v10064_v5  ;;  %v7462_v0 = vpop.f32.mrf.mxu2  ;;  %v7468_v5 = vunpack.c.l.b16 %v1744_v1  ;;  %v948_v47 = vand.u32 15, %v894_v53  ;;  %v1423_v10 = vrot.slane %v7255_v14, 7  ;;  %vm7483_vm8 = vcmp.eq.s32.totalorder %v1018_v34, 15  ;;  %3557 = vmatpush.bf16.msra.mxu2 %v5714_v49  ;;  %v7560_v14 = vld [vmem:[#allocation3 + $0xc8] sm:$0xff] }
 0x1ee   : > { %10066 = vst [vmem:[#allocation71_spill] sm:$0xff] %v7462_v0  ;;  %v2348_v61 = vsel %vm10069_vm12, %v10068_v39, %v10067_v63  ;;  %v10070_v35 = vmov %v10068_v39  ;;  %v10072_v1 = vmov 0  ;;  %v1088_v45 = vand.u32 15, %v914_v13  ;;  %v7487_v0 = vld [vmem:[#allocation3 + $0x80] sm:$0xff]  ;;  %vm10077_vm12 = vmmov %vm10063_vm9 }
 0x1ef   : > { %v2349_v27 = vsel %vm10063_vm9, %v10071_v31, %v10070_v35  ;;  %v10073_v1 = vsel %vm7483_vm8, 4294967295, %v10072_v1  ;;  %v10075_v63 = vrot.slane %v6784_v26, 1  ;;  %v10076_v44 = vrot.slane %v6750_v23, 1 }
 0x1f0   : > { %10074 = vst [vmem:[#allocation72_spill] sm:$0xff] %v10073_v1  ;;  %v2461_v39 = vpack.c.bf16 %v2339_v59, %v2339_v59  ;;  %v7495_v53 = vunpack.c.l.b16 %v1779_v48  ;;  %v7497_v35 = vunpack.c.l.b16 %v1780_v3  ;;  %v7499_v34 = vunpack.c.l.b16 %v1789_v7  ;;  %v5713_v48 = vld [vmem:[%s6519_s21 + $0x98] sm:$0xff] }
 0x1f1   : > { %v2338_v33 = vsel %vm10077_vm12, %v10076_v44, %v10075_v63  ;;  %v9786_v13 = vrot.slane %v7262_v40, 7  ;;  %v1587_v31 = vrot.slane %v7426_v50, 1  ;;  %v2451_v38 = vpack.c.bf16 %v2349_v27, %v2349_v27  ;;  %v5916_v59 = vld [vmem:[#allocation3 + $0x98] sm:$0xff]  ;;  %3558 = vmatpush.bf16.msra.mxu2 %v5713_v48 }
 0x1f2   : > { %10078 = vst [vmem:[#allocation73_spill] sm:$0xff] %v7495_v53  ;;  %v2366_v43 = vsel %vm7483_vm8, 0.0, %v2338_v33  ;;  %v10080_v7 = vpack.c.b16 %v7222_v22, %v7236_v62  ;;  %vm7513_vm9 = vcmp.eq.s32.totalorder %v948_v47, 15  ;;  %v10083_v44 = vrot.slane %v7099_v36, 7 }
 0x1f3   : > { %10079 = vst [vmem:[#allocation74_spill] sm:$0xff] %v7497_v35  ;;  %v2462_v63 = vpack.c.bf16 %v2366_v43, %v2366_v43  ;;  %vm10084_vm12 = vcmp.lt.s32.totalorder %v6677_v46, 1  ;;  %v1588_v49 = vrot.slane %v7487_v0, 1  ;;  %v10085_v27 = vrot.slane %v7286_v25, 1  ;;  %v5749_v35 = vld [vmem:[%s6519_s21 + $0x1b8] sm:$0xff] }
 0x1f4   : > { %3127 = vmatmul.bf16.gmra.mxu2 %v10080_v7  ;;  %v1447_v33 = vsel %vm10084_vm12, %v10083_v44, %v1423_v10  ;;  %vm10086_vm8 = vcmp.lt.s32.totalorder %v6677_v46, 7  ;;  %v2356_v22 = vsel %vm7513_vm9, 0.0, %v2348_v61  ;;  %v7528_v62 = vunpack.c.l.b16 %v2461_v39  ;;  %v5915_v44 = vld [vmem:[#allocation3 + $0x88] sm:$0xff]  ;;  %4448 = vmatpush.bf16.msra.mxu3 %v5749_v35 }
 0x1f5   : > { %v1605_v43 = vsel %vm10086_vm8, %v10085_v27, %v1587_v31  ;;  %v7530_v47 = vunpack.c.l.b16 %v2462_v63  ;;  %vm7532_vm7 = vcmp.eq.s32.totalorder %v1088_v45, 15  ;;  %v10089_v36 = vmov 0  ;;  %v7541_v39 = vpop.f32.mrf.mxu2  ;;  %v7545_v63 = vld [vmem:[#allocation3 + $0x90] sm:$0xff]  ;;  %3559 = vmatpush.bf16.msra.mxu2 %v5712_v15  ;;  %v5711_v35 = vld [vmem:[%s6519_s21 + $0x88] sm:$0xff] }
 0x1f6   : > { %10087 = vst [vmem:[#allocation75_spill] sm:$0xff] %v7528_v62  ;;  %v10090_v36 = vsel %vm7532_vm7, 4294967295, %v10089_v36  ;;  %v1446_v7 = vsel %vm10084_vm12, %v1423_v10, %v9786_v13  ;;  %v1759_v27 = vpack.c.bf16 %v5915_v44, %v5915_v44  ;;  %v1760_v23 = vpack.c.bf16 %v5916_v59, %v5916_v59  ;;  %v5917_v62 = vld [vmem:[#allocation3 + $0x8] sm:$0xff]  ;;  %vm10097_vm12 = vmmov %vm10086_vm8 }
 0x1f7   : > { %10088 = vst [vmem:[#allocation76_spill] sm:$0xff] %v7530_v47  ;;  %v916_v61 = vadd.s32 200, %v6677_v46  ;;  %v1604_v10 = vsel %vm10086_vm8, %v1587_v31, %v1588_v49  ;;  %v1811_v13 = vpack.c.bf16 %v1605_v43, %v1605_v43  ;;  %v10093_v44 = vpack.c.b16 %v7388_v52, %v7386_v51 }
 0x1f8   : > { %10091 = vst [vmem:[#allocation77_spill] sm:$0xff] %v10090_v36  ;;  %v7556_v48 = vunpack.c.l.b16 %v2451_v38  ;;  %v1552_v45 = vsel %vm6960_vm15, 0.0, %v1447_v33  ;;  %v1716_v53 = vsel %vm7532_vm7, 0.0, %v1604_v10  ;;  %v1746_v31 = vpack.c.bf16 %v1446_v7, %v1446_v7  ;;  %vm10099_vm7 = vmmov %vm10086_vm8 }
 0x1f9   : > { %10092 = vst [vmem:[#allocation78_spill] sm:$0xff] %v7541_v39  ;;  %3043 = vmatmul.bf16.gmra.mxu3 %v10093_v44  ;;  %v2452_v39 = vpack.c.bf16 %v2356_v22, %v2356_v22  ;;  %v1567_v43 = vrot.slane %v5916_v59, 1  ;;  %v7564_v47 = vrot.slane %v5917_v62, 1  ;;  %v1812_v51 = vpack.c.bf16 %v1716_v53, %v1716_v53  ;;  %3560 = vmatpush.bf16.msra.mxu2 %v5711_v35 }
 0x1fa   : > { %v896_v52 = vadd.s32 40, %v6677_v46  ;;  %v1102_v38 = vand.u32 15, %v916_v61  ;;  %v1782_v22 = vpack.c.bf16 %v7545_v63, %v7545_v63  ;;  %v1589_v33 = vrot.slane %v7545_v63, 1 }
 0x1fb   : > { %v7570_v44 = vunpack.c.l.b16 %v1811_v13  ;;  %v7572_v10 = vunpack.c.l.b16 %v1812_v51  ;;  %v1781_v59 = vpack.c.bf16 %v7487_v0, %v7487_v0  ;;  %v9805_v53 = vrot.slane %v7560_v14, 1 }
 0x1fc   : > { %v1745_v7 = vpack.c.bf16 %v1552_v45, %v1552_v45  ;;  %v7578_v2 = vunpack.c.l.b16 %v1759_v27  ;;  %v7580_v61 = vunpack.c.l.b16 %v1760_v23  ;;  %v1603_v15 = vsel %vm10097_vm12, %v1588_v49, %v1589_v33  ;;  %v10100_v23 = vld [vmem:[#allocation27_spill] sm:$0xff]  ;;  %v10101_v45 = vld [vmem:[#allocation26_spill] sm:$0xff]  ;;  %vm10105_vm12 = vmmov %vm10099_vm7 }
 0x1fd   : > { %10095 = vst [vmem:[#allocation40_spill] sm:$0xff] %v7570_v44  ;;  %v1624_v13 = vsel %vm10086_vm8, %v1567_v43, %v7564_v47  ;;  %v7589_v1 = vunpack.c.l.b16 %v1782_v22  ;;  %v1602_v27 = vsel %vm10099_vm7, %v1589_v33, %v9805_v53  ;;  %v10102_v20 = vpack.c.b16 %v10100_v23, %v10101_v45  ;;  %v10104_v22 = vld [vmem:[#allocation37_spill] sm:$0xff]  ;;  %v7613_v33 = vpop.f32.mrf.mxu2 }
 0x1fe   : > { %10096 = vst [vmem:[#allocation79_spill] sm:$0xff] %v7572_v10  ;;  %v10103_v49 = vpack.c.b16 %v7408_v30, %v7390_v57  ;;  %v7602_v19 = vunpack.c.l.b16 %v2452_v39  ;;  %v7604_v36 = vunpack.c.l.b16 %v1746_v31  ;;  %v1625_v51 = vsel %vm10105_vm12, %v10104_v22, %v1567_v43  ;;  %v5710_v23 = vld [vmem:[%s6519_s21 + $0x80] sm:$0xff]  ;;  %v7617_v45 = vld [vmem:[#allocation3 + $0xd8] sm:$0xff] }
 0x1ff   : > { %10098 = vst [vmem:[#allocation80_spill] sm:$0xff] %v7589_v1  ;;  %3003 = vmatmul.bf16.gmra.mxu1 %v10102_v20  ;;  %vm7609_vm8 = vcmp.eq.s32.totalorder %v1102_v38, 15  ;;  %v10106_v44 = vmov 0  ;;  %v5765_v20 = vld [vmem:[%s6519_s21 + $0x238] sm:$0xff]  ;;  %v962_v57 = vand.u32 15, %v896_v52  ;;  %v1761_v30 = vpack.c.bf16 %v5917_v62, %v5917_v62  ;;  %3561 = vmatpush.bf16.msra.mxu2 %v5710_v23 }
 0x200   : > { %3419 = vmatmul.bf16.gmra.mxu0 %v10103_v49  ;;  %v10107_v44 = vsel %vm7609_vm8, 4294967295, %v10106_v44  ;;  %10109 = vst [vmem:[#allocation26_spill] sm:$0xff] %v7613_v33  ;;  %v1762_v39 = vpack.c.bf16 %v7617_v45, %v7617_v45  ;;  %v7621_v31 = vunpack.c.l.b16 %v1781_v59  ;;  %v7623_v43 = vunpack.c.l.b16 %v1745_v7  ;;  %4626 = vmatpush.bf16.msra.mxu1 %v5765_v20  ;;  %v7665_v7 = vld [vmem:[#allocation3 + $0x48] sm:$0xff] }
 0x201   : > { %10108 = vst [vmem:[#allocation27_spill] sm:$0xff] %v10107_v44  ;;  %v7629_v35 = vsel %vm7513_vm9, 0.0, %v1624_v13  ;;  %v906_v52 = vadd.s32 120, %v6677_v46  ;;  %v1791_v62 = vpack.c.bf16 %v1625_v51, %v1625_v51  ;;  %v1718_v59 = vsel %vm7609_vm8, 0.0, %v1602_v27  ;;  %v7651_v27 = vld [vmem:[#allocation3 + $0x38] sm:$0xff] }
 0x202   : > { %10110 = vst [vmem:[#allocation81_spill] sm:$0xff] %v7621_v31  ;;  %v1813_v21 = vpack.c.bf16 %v1603_v15, %v1603_v15  ;;  %v1814_v53 = vpack.c.bf16 %v1718_v59, %v1718_v59  ;;  %v918_v13 = vadd.s32 216, %v6677_v46  ;;  %v1792_v51 = vpack.c.bf16 %v7629_v35, %v7629_v35  ;;  %v7662_v35 = vld [vmem:[#allocation3 + $0xe8] sm:$0xff] }
 0x203   : > { %vm7643_vm7 = vcmp.eq.s32.totalorder %v962_v57, 15  ;;  %v7647_v49 = vunpack.c.l.b16 %v1761_v30  ;;  %v7649_v15 = vunpack.c.l.b16 %v1762_v39  ;;  %10113 = vst [vmem:[#allocation82_spill] sm:$0xff] %v7651_v27  ;;  %v10114_v38 = vpack.c.b16 %v7410_v18, %v7397_v4 }
 0x204   : > { %v10115_v59 = vrot.slane %v7086_v28, 7  ;;  %v10116_v23 = vrot.slane %v7335_v6, 7  ;;  %vm10117_vm12 = vcmp.lt.s32.totalorder %v6677_v46, 1  ;;  %10118 = vst [vmem:[#allocation83_spill] sm:$0xff] %v7665_v7  ;;  %v1032_v39 = vand.u32 15, %v906_v52  ;;  %v7675_v6 = vld [vmem:[#allocation3 + $0xb0] sm:$0xff] }
 0x205   : > { %3132 = vmatmul.bf16.gmra.mxu2 %v10114_v38  ;;  %v7667_v22 = vunpack.c.l.b16 %v1814_v53  ;;  %v7669_v33 = vunpack.c.l.b16 %v1791_v62  ;;  %v1569_v4 = vrot.slane %v7617_v45, 1  ;;  %v898_v28 = vadd.s32 56, %v6677_v46  ;;  %10121 = vst [vmem:[#allocation86_spill] sm:$0xff] %v7675_v6  ;;  %v7682_v52 = vpop.f32.mrf.mxu2 }
 0x206   : > { %v1449_v57 = vsel %vm10117_vm12, %v10116_v23, %v10115_v59  ;;  %v7673_v18 = vunpack.c.l.b16 %v1813_v21  ;;  %v1116_v59 = vand.u32 15, %v918_v13  ;;  %v1783_v23 = vpack.c.bf16 %v7560_v14, %v7560_v14  ;;  %10122 = vst [vmem:[#allocation87_spill] sm:$0xff] %v7682_v52 }
 0x207   : > { %10119 = vst [vmem:[#allocation84_spill] sm:$0xff] %v7667_v22  ;;  %v1784_v53 = vpack.c.bf16 %v7651_v27, %v7651_v27  ;;  %v7686_v45 = vsel %vm6878_vm10, 0.0, %v1449_v57  ;;  %v1591_v30 = vrot.slane %v7651_v27, 1  ;;  %v10124_v13 = vpack.c.b16 %v7420_v17, %v7418_v41 }
 0x208   : > { %10120 = vst [vmem:[#allocation85_spill] sm:$0xff] %v7673_v18  ;;  %v10125_v31 = vrot.slane %v7662_v35, 1  ;;  %vm10126_vm12 = vcmp.lt.s32.totalorder %v6677_v46, 7  ;;  %vm7699_vm8 = vcmp.eq.s32.totalorder %v1032_v39, 15  ;;  %v10127_v1 = vmov 0  ;;  %v5922_v39 = vld [vmem:[#allocation3 + $0xe0] sm:$0xff] }
 0x209   : > { %3048 = vmatmul.bf16.gmra.mxu3 %v10124_v13  ;;  %v10128_v1 = vsel %vm7699_vm8, 4294967295, %v10127_v1  ;;  %v10130_v57 = vrot.slane %v7675_v6, 1  ;;  %v10131_v21 = vrot.slane %v6819_v42, 1  ;;  %vm10132_vm3 = vmmov %vm10126_vm12  ;;  %v10134_v41 = vrot.slane %v6784_v26, 1 }
 0x20a   : > { %v1622_v52 = vsel %vm10126_vm12, %v1569_v4, %v10125_v31  ;;  %10129 = vst [vmem:[#allocation34_spill] sm:$0xff] %v10128_v1  ;;  %vm10135_vm1 = vmmov %vm10132_vm3  ;;  %v976_v13 = vand.u32 15, %v898_v28  ;;  %v7715_v31 = vld [vmem:[#allocation3 + $0x20] sm:$0xff]  ;;  %vm7720_vm12 = vcmp.eq.s32.totalorder %v1116_v59, 15  ;;  %v10136_v44 = vmov 0 }
 0x20b   : > { %v2336_v38 = vsel %vm10132_vm3, %v10131_v21, %v10130_v57  ;;  %v10133_v18 = vmov %v10131_v21  ;;  %v10137_v44 = vsel %vm7720_vm12, 4294967295, %v10136_v44  ;;  %v7724_v42 = vunpack.c.l.b16 %v1783_v23  ;;  %v7728_v21 = vpop.f32.mrf.mxu0  ;;  %v10142_v28 = vld [vmem:[#allocation22_spill] sm:$0xff]  ;;  %vm10145_vm3 = vmmov %vm10135_vm1 }
 0x20c   : > { %v2337_v17 = vsel %vm10135_vm1, %v10134_v41, %v10133_v18  ;;  %v2368_v22 = vsel %vm7699_vm8, 0.0, %v2336_v38  ;;  %10138 = vst [vmem:[#allocation88_spill] sm:$0xff] %v10137_v44  ;;  %v7726_v26 = vunpack.c.l.b16 %v1784_v53  ;;  %v10143_v18 = vrot.slane %v10142_v28, 1  ;;  %vm10149_vm14 = vmmov %vm10135_vm1 }
 0x20d   : > { %v2463_v10 = vpack.c.bf16 %v2337_v17, %v2337_v17  ;;  %v2464_v6 = vpack.c.bf16 %v2368_v22, %v2368_v22  ;;  %10139 = vst [vmem:[#allocation89_spill] sm:$0xff] %v7724_v42  ;;  %v10144_v57 = vrot.slane %v6590_v58, 1  ;;  %v10147_v22 = vrot.slane %v7665_v7, 1 }
 0x20e   : > { %10140 = vst [vmem:[#allocation90_spill] sm:$0xff] %v7726_v26  ;;  %v10148_v23 = vrot.slane %v7560_v14, 1  ;;  %v1698_v17 = vsel %vm7643_vm7, 0.0, %v1622_v52  ;;  %v1571_v58 = vrot.slane %v5922_v39, 1  ;;  %v1425_v7 = vrot.slane %v7286_v25, 7  ;;  %v10155_v52 = vld [vmem:[#allocation32_spill] sm:$0xff] }
 0x20f   : > { %10141 = vst [vmem:[#allocation91_spill] sm:$0xff] %v7728_v21  ;;  %v2347_v41 = vsel %vm10145_vm3, %v10144_v57, %v10143_v18  ;;  %v7736_v38 = vunpack.c.l.b16 %v2463_v10  ;;  %v1600_v59 = vsel %vm10135_vm1, %v1591_v30, %v10147_v22  ;;  %v7748_v21 = vunpack.c.l.b16 %v2464_v6  ;;  %vm10153_vm3 = vmmov %vm10135_vm1 }
 0x210   : > { %v1601_v53 = vsel %vm10149_vm14, %v10148_v23, %v1591_v30  ;;  %v10151_v18 = vrot.slane %v6614_v24, 1  ;;  %v10152_v57 = vrot.slane %v10142_v28, 1  ;;  %vm10154_vm14 = vmmov %vm10135_vm1  ;;  %v1720_v6 = vsel %vm7720_vm12, 0.0, %v1600_v59  ;;  %v10156_v23 = vld [vmem:[#allocation33_spill] sm:$0xff] }
 0x211   : > { %10146 = vst [vmem:[#allocation22_spill] sm:$0xff] %v7736_v38  ;;  %v1623_v30 = vsel %vm10154_vm14, %v7564_v47, %v1569_v4  ;;  %v10157_v29 = vpack.c.b16 %v10155_v52, %v10156_v23  ;;  %v10158_v10 = vpack.c.b16 %v7464_v9, %v7458_v32  ;;  %vm7770_vm1 = vcmp.eq.s32.totalorder %v976_v13, 15  ;;  %v7925_v38 = vld [vmem:[#allocation3 + $0x18] sm:$0xff] }
 0x212   : > { %10150 = vst [vmem:[#allocation92_spill] sm:$0xff] %v7748_v21  ;;  %v2346_v22 = vsel %vm10153_vm3, %v10152_v57, %v10151_v18  ;;  %v10159_v28 = vmov 0  ;;  %v10162_v25 = vrot.slane %v7715_v31, 1  ;;  %v1815_v18 = vpack.c.bf16 %v1601_v53, %v1601_v53  ;;  %v7780_v57 = vpop.f32.mrf.mxu2 }
 0x213   : > { %3008 = vmatmul.bf16.gmra.mxu1 %v10157_v29  ;;  %3424 = vmatmul.bf16.gmra.mxu0 %v10158_v10  ;;  %v10160_v28 = vsel %vm7770_vm1, 4294967295, %v10159_v28  ;;  %10163 = vst [vmem:[#allocation33_spill] sm:$0xff] %v7780_v57  ;;  %v7782_v29 = vunpack.c.l.b16 %v1792_v51  ;;  %v2453_v52 = vpack.c.bf16 %v2347_v41, %v2347_v41  ;;  %v1794_v32 = vpack.c.bf16 %v1698_v17, %v1698_v17  ;;  %v5923_v17 = vld [vmem:[#allocation3 + $0x70] sm:$0xff] }
 0x214   : > { %10161 = vst [vmem:[#allocation32_spill] sm:$0xff] %v10160_v28  ;;  %v1620_v4 = vsel %vm10153_vm3, %v1571_v58, %v10162_v25  ;;  %v1426_v13 = vrot.slane %v7426_v50, 7  ;;  %v1793_v10 = vpack.c.bf16 %v1623_v30, %v1623_v30  ;;  %v1763_v23 = vpack.c.bf16 %v7662_v35, %v7662_v35  ;;  %v5924_v50 = vld [vmem:[#allocation3 + $0xb8] sm:$0xff] }
 0x215   : > { %v1816_v25 = vpack.c.bf16 %v1720_v6, %v1720_v6  ;;  %v2358_v59 = vsel %vm7643_vm7, 0.0, %v2346_v22  ;;  %v10164_v53 = vrot.slane %v7262_v40, 7  ;;  %vm10165_vm14 = vcmp.lt.s32.totalorder %v6677_v46, 1  ;;  %v7801_v6 = vpop.f32.mrf.mxu0 }
 0x216   : > { %v1764_v41 = vpack.c.bf16 %v5922_v39, %v5922_v39  ;;  %v1700_v9 = vsel %vm7770_vm1, 0.0, %v1620_v4  ;;  %v1757_v57 = vpack.c.bf16 %v5923_v17, %v5923_v17  ;;  %v1758_v30 = vpack.c.bf16 %v5924_v50, %v5924_v50  ;;  %10168 = vst [vmem:[#allocation95_spill] sm:$0xff] %v7801_v6  ;;  %vm10170_vm3 = vmmov %vm10165_vm14  ;;  %v10311_v50 = vld [vmem:[#allocation55_spill] sm:$0xff] }
 0x217   : > { %v1445_v51 = vsel %vm10165_vm14, %v10164_v53, %v1425_v7  ;;  %v7797_v42 = vunpack.c.l.b16 %v1815_v18  ;;  %v7799_v26 = vunpack.c.l.b16 %v1816_v25  ;;  %v1743_v40 = vpack.c.bf16 %v7686_v45, %v7686_v45 }
 0x218   : > { %v7807_v39 = vunpack.c.l.b16 %v2453_v52  ;;  %v7809_v53 = vunpack.c.l.b16 %v1794_v32  ;;  %v10169_v4 = vpack.c.b16 %v7424_v60, %v7422_v11  ;;  %v1444_v18 = vsel %vm10170_vm3, %v1425_v7, %v1426_v13 }
 0x219   : > { %10166 = vst [vmem:[#allocation93_spill] sm:$0xff] %v7797_v42  ;;  %v7816_v25 = vunpack.c.l.b16 %v1793_v10  ;;  %v10171_v17 = vrot.slane %v7662_v35, 1  ;;  %vm10172_vm14 = vcmp.lt.s32.totalorder %v6677_v46, 7  ;;  %v2454_v32 = vpack.c.bf16 %v2358_v59, %v2358_v59 }
 0x21a   : > { %10167 = vst [vmem:[#allocation94_spill] sm:$0xff] %v7799_v26  ;;  %3137 = vmatmul.bf16.gmra.mxu2 %v10169_v4  ;;  %v1554_v22 = vsel %vm7018_vm2, 0.0, %v1445_v51  ;;  %v7826_v11 = vunpack.c.l.b16 %v1764_v41  ;;  %v1796_v60 = vpack.c.bf16 %v1700_v9, %v1700_v9  ;;  %v1949_v4 = vunpack.c.l.b16 %v1757_v57  ;;  %v7831_v35 = vpop.f32.mrf.mxu2  ;;  %vm10179_vm3 = vmmov %vm10172_vm14  ;;  %v10180_v57 = vld [vmem:[#allocation51_spill] sm:$0xff] }
 0x21b   : > { %v1621_v45 = vsel %vm10172_vm14, %v10171_v17, %v1571_v58  ;;  %v1950_v7 = vunpack.c.l.b16 %v1758_v30  ;;  %v7829_v6 = vunpack.c.l.b16 %v1763_v23  ;;  %10176 = vst [vmem:[#allocation97_spill] sm:$0xff] %v7831_v35  ;;  %v1748_v58 = vpack.c.bf16 %v1444_v18, %v1444_v18  ;;  %v5748_v30 = vld [vmem:[%s6519_s21 + $0x1b0] sm:$0xff]  ;;  %vm10184_vm14 = vmmov %vm10179_vm3 }
 0x21c   : > { %10174 = vst [vmem:[#allocation44_spill] sm:$0xff] %v7826_v11  ;;  %v10177_v59 = vrot.slane %v6640_v56, 1  ;;  %v10178_v52 = vrot.slane %v6626_v37, 1  ;;  %v1795_v9 = vpack.c.bf16 %v1621_v45, %v1621_v45  ;;  %v10181_v41 = vpack.c.b16 %v7097_v54, %v10180_v57  ;;  %4449 = vmatpush.bf16.msra.mxu3 %v5748_v30 }
 0x21d   : > { %10175 = vst [vmem:[#allocation96_spill] sm:$0xff] %v7829_v6  ;;  %v1871_v23 = vunpack.c.l.b16 %v1743_v40  ;;  %v1747_v10 = vpack.c.bf16 %v1554_v22, %v1554_v22  ;;  %v10183_v35 = vrot.slane %v6614_v24, 1  ;;  %v1765_v17 = vpack.c.bf16 %v7715_v31, %v7715_v31  ;;  %v10212_v6 = vld [vmem:[#allocation47_spill] sm:$0xff] }
 0x21e   : > { %v2344_v51 = vsel %vm10179_vm3, %v10178_v52, %v10177_v59  ;;  %3151 = vmatmul.bf16.vlgmr.msrb.gmra.mxu3 %v10181_v41  ;;  %v10182_v18 = vmov %v10178_v52  ;;  %v7853_v42 = vunpack.c.l.b16 %v2454_v32  ;;  %v7857_v54 = vunpack.c.l.b16 %v1796_v60  ;;  %v7868_v32 = vld [vmem:[#allocation3 + $0x50] sm:$0xff]  ;;  %v7872_v60 = vpop.f32.mrf.mxu1  ;;  %v7874_v59 = vpop.f32.mrf.mxu3 }
 0x21f   : > { %v2345_v56 = vsel %vm10184_vm14, %v10183_v35, %v10182_v18  ;;  %v7860_v40 = vadd.s32 136, %v6677_v46  ;;  %v1981_v22 = vpack.c.b16 %v1950_v7, %v1949_v4  ;;  %v2360_v24 = vsel %vm7770_vm1, 0.0, %v2344_v51  ;;  %10188 = vst [vmem:[#allocation98_spill] sm:$0xff] %v7872_v60  ;;  %v7881_v41 = vpop.f32.mrf.mxu0  ;;  %v7946_v60 = vld [vmem:[#allocation3 + $0x108] sm:$0xff] }
 0x220   : > { %10185 = vst [vmem:[#allocation51_spill] sm:$0xff] %v7857_v54  ;;  %v10186_v37 = vrot.slane %v7487_v0, 7  ;;  %vm10187_vm3 = vcmp.lt.s32.totalorder %v6677_v46, 1  ;;  %v1766_v35 = vpack.c.bf16 %v7868_v32, %v7868_v32  ;;  %v7876_v57 = vunpack.c.l.b16 %v1748_v58 }
 0x221   : > { %v2455_v4 = vpack.c.bf16 %v2345_v56, %v2345_v56  ;;  %v7878_v7 = vunpack.c.l.b16 %v1795_v9  ;;  %10190 = vst [vmem:[#allocation100_spill] sm:$0xff] %v7881_v41  ;;  %v7884_v30 = vunpack.c.l.b16 %v1747_v10  ;;  %v7886_v18 = vunpack.c.l.b16 %v1765_v17  ;;  %v7894_v9 = vld [vmem:[#allocation3 + $0xe0] sm:$0xff]  ;;  %v5756_v10 = vld [vmem:[%s6519_s21 + $0x1f0] sm:$0xff] }
 0x222   : > { %v1443_v52 = vsel %vm10187_vm3, %v1426_v13, %v10186_v37  ;;  %v1894_v13 = vpack.c.b16 %v7468_v5, %v1871_v23  ;;  %v10192_v37 = vld [vmem:[#allocation46_spill] sm:$0xff]  ;;  %v2456_v26 = vpack.c.bf16 %v2360_v24, %v2360_v24  ;;  %v7897_v51 = vadd.s32 152, %v6677_v46  ;;  %v7909_v45 = vpop.f32.mrf.mxu2  ;;  %4538 = vmatpush.bf16.msra.mxu0 %v5756_v10 }
 0x223   : > { %10189 = vst [vmem:[#allocation99_spill] sm:$0xff] %v7878_v7  ;;  %v7892_v56 = vsel %vm7046_vm6, 0.0, %v1443_v52  ;;  %3473 = vmatmul.bf16.vlgmr.msrb.gmra.mxu1 %v1981_v22  ;;  %v7904_v23 = vunpack.c.l.b16 %v1766_v35  ;;  %v1046_v24 = vand.u32 15, %v7860_v40  ;;  %v7907_v52 = vld [vmem:[#allocation3 + $0x20] sm:$0xff]  ;;  %v7913_v22 = vunpack.c.l.b16 %v2455_v4  ;;  %v5926_v35 = vld [vmem:[#allocation3 + $0xe8] sm:$0xff]  ;;  %v7923_v40 = vld [vmem:[#allocation3 + $0x50] sm:$0xff] }
 0x224   : > { %10191 = vst [vmem:[#allocation101_spill] sm:$0xff] %v7886_v18  ;;  %3429 = vmatmul.bf16.gmra.mxu0 %v1894_v13  ;;  %v10196_v58 = vrot.slane %v7868_v32, 1  ;;  %v10197_v5 = vrot.slane %v7715_v31, 1  ;;  %v3678_v41 = vrot.slane %v5926_v35, 7  ;;  %v3679_v13 = vrot.slane %v7894_v9, 7  ;;  %v7932_v31 = vld [vmem:[#allocation3 + $0xb0] sm:$0xff] }
 0x225   : > { %10194 = vst [vmem:[#allocation102_spill] sm:$0xff] %v7904_v23  ;;  %v3775_v21 = vrot.slane %v7894_v9, 1  ;;  %v7934_v44 = vunpack.c.l.b16 %v2456_v26  ;;  %v3691_v23 = vrot.slane %v7925_v38, 7  ;;  %v10201_v18 = vrot.slane %v10192_v37, 1  ;;  %v10203_v4 = vld [vmem:[#allocation50_spill] sm:$0xff] }
 0x226   : > { %10195 = vst [vmem:[#allocation103_spill] sm:$0xff] %v7909_v45  ;;  %v7921_v17 = vsel %vm10184_vm14, %v10197_v5, %v10196_v58  ;;  %v5764_v45 = vld [vmem:[%s6519_s21 + $0x230] sm:$0xff]  ;;  %v10199_v58 = vrot.slane %v7545_v63, 7  ;;  %v10200_v5 = vrot.slane %v7487_v0, 7  ;;  %v3837_v26 = vsel %vm6933_vm13, 0.0, %v10203_v4  ;;  %vm10209_vm13 = vmmov %vm10187_vm3  ;;  %4539 = vmatpush.bf16.msra.mxu0 %v5755_v8 }
 0x227   : > { %10198 = vst [vmem:[#allocation104_spill] sm:$0xff] %v7921_v17  ;;  %4627 = vmatpush.bf16.msra.mxu1 %v5764_v45  ;;  %v3834_v0 = vsel %vm10184_vm14, %v7564_v47, %v10201_v18  ;;  %v7965_v54 = vpop.f32.mrf.mxu0  ;;  %v10206_v17 = vpack.c.b16 %v6987_v55, %v7499_v34  ;;  %v3787_v18 = vrot.slane %v7925_v38, 1  ;;  %v3933_v10 = vpack.c.bf16 %v3837_v26, %v3837_v26 }
 0x228   : > { %v7942_v35 = vsel %vm10187_vm3, %v10200_v5, %v10199_v58  ;;  %v7956_v58 = vpop.f32.mrf.mxu1  ;;  %v7958_v5 = vpop.f32.mrf.mxu3  ;;  %v3932_v7 = vpack.c.bf16 %v3834_v0, %v3834_v0  ;;  %10205 = vst [vmem:[#allocation50_spill] sm:$0xff] %v7965_v54  ;;  %v3736_v45 = vsel %vm10187_vm3, %v3678_v41, %v3679_v13  ;;  %v3692_v9 = vrot.slane %v7946_v60, 7 }
 0x229   : > { %10202 = vst [vmem:[#allocation105_spill] sm:$0xff] %v7956_v58  ;;  %v7971_v58 = vld [vmem:[#allocation3 + $0xf0] sm:$0xff]  ;;  %v10208_v0 = vrot.slane %v10192_v37, 7  ;;  %v3871_v34 = vpack.c.bf16 %v3736_v45, %v3736_v45  ;;  %v7985_v38 = vunpack.c.l.b16 %v3933_v10  ;;  %v10213_v11 = vrot.slane %v10212_v6, 1 }
 0x22a   : > { %3562 = vmatmul.bf16.vlgmr.msra.gmra.mxu2 %v10206_v17  ;;  %v7977_v4 = vunpack.c.l.b16 %v3932_v7  ;;  %v7983_v17 = vld [vmem:[#allocation3 + $0xf8] sm:$0xff]  ;;  %v10214_v7 = vrot.slane %v7932_v31, 7  ;;  %v3693_v45 = vrot.slane %v7971_v58, 7  ;;  %v3789_v10 = vrot.slane %v7971_v58, 1 }
 0x22b   : > { %v3737_v55 = vsel %vm10209_vm13, %v10208_v0, %v3678_v41  ;;  %10210 = vst [vmem:[#allocation106_spill] sm:$0xff] %v7985_v38  ;;  %v3832_v27 = vsel %vm10184_vm14, %v10213_v11, %v3775_v21  ;;  %v3103_v41 = vpop.f32.mrf.mxu2  ;;  %v8001_v28 = vunpack.c.l.b16 %v3871_v34  ;;  %v10217_v6 = vpack.c.b16 %v7602_v19, %v7556_v48  ;;  %vm10221_vm13 = vmmov %vm10184_vm14 }
 0x22c   : > { %10207 = vst [vmem:[#allocation39_spill] sm:$0xff] %v7977_v4  ;;  %v3742_v26 = vsel %vm6811_vm4, 0.0, %v3737_v55  ;;  %v7997_v37 = vsel %vm10187_vm3, %v10214_v7, %v3691_v23  ;;  %v8004_v54 = vadd.f32 %v3103_v41, %v7874_v59  ;;  %vm8009_vm4 = vcmp.eq.s32.totalorder %v1046_v24, 15  ;;  %vm10223_vm14 = vmmov %vm10221_vm13 }
 0x22d   : > { %v3870_v0 = vpack.c.bf16 %v3742_v26, %v3742_v26  ;;  %10215 = vst [vmem:[#allocation30_spill] sm:$0xff] %v8001_v28  ;;  %v10220_v7 = vrot.slane %v7946_v60, 1  ;;  %v10222_v34 = vrot.slane %v7932_v31, 1  ;;  %v8023_v26 = vld [vmem:[#allocation3 + $0x118] sm:$0xff]  ;;  %v3934_v24 = vpack.c.bf16 %v3832_v27, %v3832_v27  ;;  %vm10226_vm3 = vmmov %vm10221_vm13  ;;  %v8042_v27 = vld [vmem:[#allocation3 + $0x40] sm:$0xff] }
 0x22e   : > { %10216 = vst [vmem:[#allocation47_spill] sm:$0xff] %v8004_v54  ;;  %3156 = vmatmul.bf16.gmra.mxu3 %v10217_v6  ;;  %v10225_v6 = vrot.slane %v7907_v52, 1  ;;  %v10227_v55 = vrot.slane %v7907_v52, 7  ;;  %v10290_v8 = vpack.c.bf16 %v7892_v56, %v7892_v56  ;;  %v8613_v28 = vld [vmem:[#allocation3 + $0x28] sm:$0xff] }
 0x22f   : > { %v3819_v58 = vsel %vm10221_vm13, %v3787_v18, %v10220_v7  ;;  %v3820_v59 = vsel %vm10223_vm14, %v10222_v34, %v3787_v18  ;;  %v8026_v48 = vunpack.c.l.b16 %v3870_v0  ;;  %vm10228_vm13 = vcmp.lt.s32.totalorder %v6677_v46, 1 }
 0x230   : > { %v3851_v41 = vsel %vm7699_vm8, 0.0, %v3819_v58  ;;  %v3831_v7 = vsel %vm10226_vm3, %v3775_v21, %v10225_v6  ;;  %v3735_v18 = vsel %vm10228_vm13, %v3679_v13, %v10227_v55  ;;  %v3946_v34 = vpack.c.bf16 %v3820_v59, %v3820_v59  ;;  %v8038_v38 = vpop.f32.mrf.mxu1  ;;  %v8040_v0 = vpop.f32.mrf.mxu3  ;;  %vm10230_vm14 = vmmov %vm10228_vm13 }
 0x231   : > { %10224 = vst [vmem:[#allocation107_spill] sm:$0xff] %v8026_v48  ;;  %v3947_v4 = vpack.c.bf16 %v3851_v41, %v3851_v41  ;;  %v3694_v58 = vrot.slane %v7983_v17, 7  ;;  %v3839_v21 = vsel %vm7513_vm9, 0.0, %v3831_v7  ;;  %v3722_v6 = vsel %vm10230_vm14, %v3692_v9, %v3693_v45  ;;  %v8051_v13 = vpop.f32.mrf.mxu0  ;;  %vm10234_vm3 = vmmov %vm10228_vm13 }
 0x232   : > { %10229 = vst [vmem:[#allocation108_spill] sm:$0xff] %v8038_v38  ;;  %v3935_v59 = vpack.c.bf16 %v3839_v21, %v3839_v21  ;;  %v3744_v54 = vsel %vm6909_vm11, 0.0, %v3735_v18  ;;  %v8056_v38 = vunpack.c.l.b16 %v3946_v34  ;;  %v3723_v19 = vsel %vm10234_vm3, %v3691_v23, %v3692_v9  ;;  %vm10250_vm14 = vmmov %vm10234_vm3 }
 0x233   : > { %v8058_v1 = vunpack.c.l.b16 %v3947_v4  ;;  %v3885_v3 = vpack.c.bf16 %v3722_v6, %v3722_v6  ;;  %v10235_v7 = vrot.slane %v7983_v17, 1  ;;  %vm10236_vm9 = vcmp.lt.s32.totalorder %v6677_v46, 7  ;;  %v3105_v9 = vpop.f32.mrf.mxu2 }
 0x234   : > { %10232 = vst [vmem:[#allocation36_spill] sm:$0xff] %v8056_v38  ;;  %v10237_v55 = vpack.c.b16 %v7604_v36, %v7623_v43  ;;  %v10238_v18 = vpack.c.b16 %v7580_v61, %v7578_v2  ;;  %v3777_v4 = vrot.slane %v7923_v40, 1  ;;  %v8074_v21 = vunpack.c.l.b16 %v3934_v24  ;;  %vm10247_vm13 = vmmov %vm10236_vm9  ;;  %v8143_v38 = vld [vmem:[#allocation3 + $0x90] sm:$0xff] }
 0x235   : > { %10233 = vst [vmem:[#allocation109_spill] sm:$0xff] %v8058_v1  ;;  %v3817_v48 = vsel %vm10236_vm9, %v3789_v10, %v10235_v7  ;;  %v8076_v23 = vunpack.c.l.b16 %v3935_v59  ;;  %v10241_v6 = vand.u32 15, %v7897_v51  ;;  %v3872_v43 = vpack.c.bf16 %v3744_v54, %v3744_v54 }
 0x236   : > { %3434 = vmatmul.bf16.gmra.mxu0 %v10237_v55  ;;  %3478 = vmatmul.bf16.gmra.mxu1 %v10238_v18  ;;  %10239 = vst [vmem:[#allocation110_spill] sm:$0xff] %v8074_v21  ;;  %v3756_v61 = vsel %vm6829_vm5, 0.0, %v3723_v19  ;;  %v8090_v24 = vadd.f32 %v3105_v9, %v7958_v5  ;;  %v8092_v55 = vld [vmem:[#allocation3 + $0x80] sm:$0xff]  ;;  %v8096_v7 = vunpack.c.l.b16 %v3885_v3  ;;  %v10246_v18 = vrot.slane %v7946_v60, 1  ;;  %vm10249_vm5 = vmmov %vm10234_vm3 }
 0x237   : > { %10240 = vst [vmem:[#allocation111_spill] sm:$0xff] %v8076_v23  ;;  %vm8080_vm11 = vcmp.eq.s32.totalorder %v10241_v6, 15  ;;  %v3884_v59 = vpack.c.bf16 %v3756_v61, %v3756_v61  ;;  %v3853_v12 = vsel %vm8009_vm4, 0.0, %v3817_v48  ;;  %v10248_v19 = vrot.slane %v8023_v26, 7 }
 0x238   : > { %10244 = vst [vmem:[#allocation112_spill] sm:$0xff] %v8090_v24  ;;  %v3818_v54 = vsel %vm10247_vm13, %v10246_v18, %v3789_v10  ;;  %v3721_v9 = vsel %vm10250_vm14, %v3693_v45, %v3694_v58  ;;  %v10251_v6 = vrot.slane %v7923_v40, 7  ;;  %v10252_v3 = vrot.slane %v7907_v52, 7  ;;  %v8126_v2 = vpop.f32.mrf.mxu3  ;;  %v8128_v45 = vld [vmem:[#allocation3] sm:$0xff]  ;;  %vm10266_vm13 = vmmov %vm10236_vm9 }
 0x239   : > { %10245 = vst [vmem:[#allocation113_spill] sm:$0xff] %v8096_v7  ;;  %v3720_v5 = vsel %vm10249_vm5, %v3694_v58, %v10248_v19  ;;  %v10253_v10 = vrot.slane %v7907_v52, 1  ;;  %v8122_v61 = vunpack.c.l.b16 %v3884_v59  ;;  %v3948_v18 = vpack.c.bf16 %v3818_v54, %v3818_v54  ;;  %v8124_v19 = vpop.f32.mrf.mxu1  ;;  %vm10268_vm5 = vmmov %vm10234_vm3 }
 0x23a   : > { %v3734_v60 = vsel %vm10234_vm3, %v10252_v3, %v10251_v6  ;;  %v3792_v58 = vrot.slane %v8092_v55, 1  ;;  %v3949_v34 = vpack.c.bf16 %v3853_v12, %v3853_v12  ;;  %v3758_v52 = vsel %vm6878_vm10, 0.0, %v3721_v9  ;;  %v8133_v6 = vpop.f32.mrf.mxu0  ;;  %vm10262_vm10 = vmmov %vm10236_vm9 }
 0x23b   : > { %v8120_v48 = vsel %vm10236_vm9, %v10253_v10, %v3777_v4  ;;  %10254 = vst [vmem:[#allocation114_spill] sm:$0xff] %v8122_v61  ;;  %v3873_v51 = vpack.c.bf16 %v3734_v60, %v3734_v60  ;;  %v10255_v59 = vpack.c.b16 %v7782_v29, %v7669_v33  ;;  %v3791_v54 = vrot.slane %v8023_v26, 1  ;;  %v3108_v10 = vpop.f32.mrf.mxu2  ;;  %vm10270_vm14 = vmmov %vm10236_vm9  ;;  %v10325_v61 = vld [vmem:[#allocation82_spill] sm:$0xff] }
 0x23c   : > { %v8139_v3 = vunpack.c.l.b16 %v3872_v43  ;;  %v3886_v36 = vpack.c.bf16 %v3758_v52, %v3758_v52  ;;  %v8147_v62 = vunpack.c.l.b16 %v3948_v18  ;;  %v8149_v9 = vunpack.c.l.b16 %v3949_v34  ;;  %vm10274_vm9 = vmmov %vm10234_vm3 }
 0x23d   : > { %3567 = vmatmul.bf16.gmra.mxu2 %v10255_v59  ;;  %v8145_v12 = vunpack.c.l.b16 %v3873_v51  ;;  %v3887_v60 = vpack.c.bf16 %v3720_v5, %v3720_v5  ;;  %v3696_v29 = vrot.slane %v8092_v55, 7  ;;  %v3815_v34 = vsel %vm10262_vm10, %v3791_v54, %v3792_v58 }
 0x23e   : > { %10256 = vst [vmem:[#allocation115_spill] sm:$0xff] %v8139_v3  ;;  %v8154_v59 = vunpack.c.l.b16 %v3886_v36  ;;  %v8165_v5 = vadd.f32 %v3108_v10, %v8040_v0  ;;  %v10264_v55 = vpack.c.b16 %v7853_v42, %v7807_v39  ;;  %v5747_v36 = vld [vmem:[%s6519_s21 + $0x1a8] sm:$0xff]  ;;  %v3793_v33 = vrot.slane %v8143_v38, 1 }
 0x23f   : > { %10257 = vst [vmem:[#allocation116_spill] sm:$0xff] %v8145_v12  ;;  %v8160_v18 = vunpack.c.l.b16 %v3887_v60  ;;  %v10265_v52 = vrot.slane %v7983_v17, 1  ;;  %v3855_v60 = vsel %vm8080_vm11, 0.0, %v3815_v34  ;;  %4450 = vmatpush.bf16.msra.mxu3 %v5747_v36  ;;  %v10269_v39 = vrot.slane %v8042_v27, 1  ;;  %v8458_v12 = vld [vmem:[#allocation3 + $0x68] sm:$0xff] }
 0x240   : > { %10258 = vst [vmem:[#allocation117_spill] sm:$0xff] %v8147_v62  ;;  %3161 = vmatmul.bf16.gmra.mxu3 %v10264_v55  ;;  %v3951_v10 = vpack.c.bf16 %v3855_v60, %v3855_v60  ;;  %v10267_v62 = vrot.slane %v8143_v38, 7  ;;  %v10272_v34 = vrot.slane %v7923_v40, 7  ;;  %v10273_v55 = vrot.slane %v8023_v26, 7  ;;  %v8202_v60 = vpop.f32.mrf.mxu3 }
 0x241   : > { %10259 = vst [vmem:[#allocation118_spill] sm:$0xff] %v8149_v9  ;;  %v3816_v51 = vsel %vm10266_vm13, %v10265_v52, %v3791_v54  ;;  %v3829_v17 = vsel %vm10270_vm14, %v3777_v4, %v10269_v39  ;;  %v3936_v54 = vpack.c.bf16 %v8120_v48, %v8120_v48  ;;  %v10271_v52 = vrot.slane %v8042_v27, 7  ;;  %v8200_v36 = vpop.f32.mrf.mxu1  ;;  %v8218_v4 = vld [vmem:[#allocation3 + $0xc8] sm:$0xff] }
 0x242   : > { %10260 = vst [vmem:[#allocation119_spill] sm:$0xff] %v8154_v59  ;;  %v3950_v0 = vpack.c.bf16 %v3816_v51, %v3816_v51  ;;  %v3718_v42 = vsel %vm10268_vm5, %v3696_v29, %v10267_v62  ;;  %v3719_v62 = vsel %vm10274_vm9, %v10273_v55, %v3696_v29  ;;  %v3841_v48 = vsel %vm7643_vm7, 0.0, %v3829_v17  ;;  %vm10278_vm7 = vmmov %vm10262_vm10 }
 0x243   : > { %10261 = vst [vmem:[#allocation120_spill] sm:$0xff] %v8160_v18  ;;  %v3733_v51 = vsel %vm10234_vm3, %v10272_v34, %v10271_v52  ;;  %v8209_v40 = vunpack.c.l.b16 %v3951_v10  ;;  %v8211_v52 = vpop.f32.mrf.mxu0  ;;  %v922_v26 = vadd.s32 248, %v6677_v46  ;;  %v3937_v34 = vpack.c.bf16 %v3841_v48, %v3841_v48  ;;  %vm10296_vm13 = vmmov %vm10278_vm7 }
 0x244   : > { %10263 = vst [vmem:[#allocation121_spill] sm:$0xff] %v8165_v5  ;;  %v8207_v39 = vunpack.c.l.b16 %v3950_v0  ;;  %v3746_v55 = vsel %vm6972_vm0, 0.0, %v3733_v51  ;;  %v3760_v43 = vsel %vm6960_vm15, 0.0, %v3719_v62  ;;  %v3889_v17 = vpack.c.bf16 %v3718_v42, %v3718_v42  ;;  %v3110_v42 = vpop.f32.mrf.mxu2  ;;  %vm10287_vm15 = vmmov %vm10278_vm7 }
 0x245   : > { %10276 = vst [vmem:[#allocation123_spill] sm:$0xff] %v8209_v40  ;;  %v3888_v0 = vpack.c.bf16 %v3760_v43, %v3760_v43  ;;  %v3814_v10 = vsel %vm10278_vm7, %v3792_v58, %v3793_v33  ;;  %v10279_v59 = vpack.c.b16 %v7876_v57, %v7884_v30  ;;  %v10280_v51 = vpack.c.b16 %v7649_v15, %v7647_v49  ;;  %v8239_v57 = vld [vmem:[#allocation3 + $0x40] sm:$0xff]  ;;  %vm10289_vm0 = vmmov %vm10234_vm3 }
 0x246   : > { %10275 = vst [vmem:[#allocation122_spill] sm:$0xff] %v8207_v39  ;;  %v3698_v62 = vrot.slane %v8218_v4, 7  ;;  %v3794_v48 = vrot.slane %v8218_v4, 1  ;;  %v8233_v29 = vunpack.c.l.b16 %v3936_v54  ;;  %v8235_v43 = vunpack.c.l.b16 %v3937_v34  ;;  %v5763_v54 = vld [vmem:[%s6519_s21 + $0x228] sm:$0xff]  ;;  %v8252_v39 = vld [vmem:[#allocation3 + $0x60] sm:$0xff]  ;;  %vm10293_vm10 = vmmov %vm10289_vm0 }
 0x247   : > { %3439 = vmatmul.bf16.gmra.mxu0 %v10279_v59  ;;  %3483 = vmatmul.bf16.gmra.mxu1 %v10280_v51  ;;  %v1750_v58 = vpack.c.bf16 %v7942_v35, %v7942_v35  ;;  %v8242_v59 = vunpack.c.l.b16 %v3888_v0  ;;  %v8244_v15 = vunpack.c.l.b16 %v3889_v17  ;;  %v8247_v51 = vadd.f32 %v3110_v42, %v8126_v2  ;;  %10286 = vst [vmem:[#allocation128_spill] sm:$0xff] %v8252_v39  ;;  %v8254_v35 = vld [vmem:[#allocation3 + $0x30] sm:$0xff]  ;;  %vm10300_vm14 = vmmov %vm10278_vm7 }
 0x248   : > { %10281 = vst [vmem:[#allocation42_spill] sm:$0xff] %v8233_v29  ;;  %v1144_v4 = vand.u32 15, %v922_v26  ;;  %v3874_v20 = vpack.c.bf16 %v3746_v55, %v3746_v55  ;;  %v3813_v17 = vsel %vm10287_vm15, %v3793_v33, %v3794_v48  ;;  %v3952_v30 = vpack.c.bf16 %v3814_v10, %v3814_v10  ;;  %4628 = vmatpush.bf16.msra.mxu1 %v5763_v54  ;;  %v8285_v54 = vpop.f32.mrf.mxu3  ;;  %vm10309_vm9 = vmmov %vm10278_vm7 }
 0x249   : > { %10282 = vst [vmem:[#allocation124_spill] sm:$0xff] %v8235_v43  ;;  %v10288_v2 = vrot.slane %v8143_v38, 7  ;;  %v8267_v55 = vunpack.c.l.b16 %v10290_v8  ;;  %v10291_v42 = vrot.slane %v8128_v45, 7  ;;  %v10292_v34 = vrot.slane %v8042_v27, 7  ;;  %vm10314_vm7 = vmmov %vm10289_vm0 }
 0x24a   : > { %10283 = vst [vmem:[#allocation125_spill] sm:$0xff] %v8242_v59  ;;  %v10294_v33 = vrot.slane %v8128_v45, 1  ;;  %v10295_v38 = vrot.slane %v8042_v27, 1  ;;  %vm10297_vm5 = vnez %v10034_v16  ;;  %v2740_v8 = vpack.c.b16 %v7934_v44, %v7913_v22  ;;  %v8306_v22 = vld [vmem:[#allocation3 + $0x38] sm:$0xff]  ;;  %vm10315_vm15 = vmmov %vm10309_vm9 }
 0x24b   : > { %10284 = vst [vmem:[#allocation126_spill] sm:$0xff] %v8244_v15  ;;  %v3717_v26 = vsel %vm10289_vm0, %v10288_v2, %v3698_v62  ;;  %v3732_v0 = vsel %vm10293_vm10, %v10292_v34, %v10291_v42  ;;  %v3857_v56 = vsel %vm10297_vm5, 0.0, %v3813_v17  ;;  %v8283_v2 = vpop.f32.mrf.mxu1  ;;  %v10298_v59 = vrot.slane %v8239_v57, 1  ;;  %vm10318_vm0 = vmmov %vm10309_vm9 }
 0x24c   : > { %10285 = vst [vmem:[#allocation127_spill] sm:$0xff] %v8247_v51  ;;  %v3828_v10 = vsel %vm10296_vm13, %v10295_v38, %v10294_v33  ;;  %v10299_v34 = vrot.slane %v7868_v32, 1  ;;  %v3875_v42 = vpack.c.bf16 %v3732_v0, %v3732_v0  ;;  %v3953_v15 = vpack.c.bf16 %v3857_v56, %v3857_v56  ;;  %v8295_v33 = vpop.f32.mrf.mxu0  ;;  %vm10321_vm10 = vmmov %vm10314_vm7 }
 0x24d   : > { %v10301_v17 = vpack.c.b16 %v7809_v53, %v7816_v25  ;;  %v1878_v38 = vunpack.c.l.b16 %v1750_v58  ;;  %vm8301_vm3 = vcmp.eq.s32.totalorder %v1144_v4, 15  ;;  %v10302_v44 = vmov 0  ;;  %vm10323_vm13 = vmmov %vm10314_vm7 }
 0x24e   : > { %v1618_v27 = vsel %vm10300_vm14, %v10299_v34, %v10298_v59  ;;  %v10303_v44 = vsel %vm8301_vm3, 4294967295, %v10302_v44  ;;  %v9852_v32 = vrot.slane %v8252_v39, 1  ;;  %v8308_v59 = vunpack.c.l.b16 %v3874_v20  ;;  %vm10327_vm14 = vmmov %vm10318_vm0 }
 0x24f   : > { %3572 = vmatmul.bf16.gmra.mxu2 %v10301_v17  ;;  %10304 = vst [vmem:[#allocation129_spill] sm:$0xff] %v10303_v44  ;;  %v8310_v0 = vunpack.c.l.b16 %v3875_v42  ;;  %v8312_v56 = vunpack.c.l.b16 %v3952_v30  ;;  %v8314_v34 = vunpack.c.l.b16 %v3953_v15  ;;  %v3699_v25 = vrot.slane %v8306_v22, 7  ;;  %v3113_v17 = vpop.f32.mrf.mxu2  ;;  %v5752_v44 = vld [vmem:[%s6519_s21 + $0x1d0] sm:$0xff] }
 0x250   : > { %10305 = vst [vmem:[#allocation130_spill] sm:$0xff] %v8308_v59  ;;  %v3795_v58 = vrot.slane %v8306_v22, 1  ;;  %v3762_v4 = vsel %vm7018_vm2, 0.0, %v3717_v26  ;;  %v1429_v40 = vrot.slane %v7560_v14, 7  ;;  %v3835_v15 = vsel %vm10309_vm9, %v9852_v32, %v7564_v47  ;;  %3166 = vmatmul.bf16.gmra.mxu3 %v2740_v8  ;;  %v8336_v14 = vld [vmem:[#allocation3 + $0x30] sm:$0xff]  ;;  %v8347_v8 = vld [vmem:[#allocation3] sm:$0xff]  ;;  %v8366_v39 = vpop.f32.mrf.mxu3 }
 0x251   : > { %10306 = vst [vmem:[#allocation131_spill] sm:$0xff] %v8310_v0  ;;  %v8332_v42 = vadd.f32 %v3113_v17, %v8202_v60  ;;  %vm10312_vm2 = vnez %v10311_v50  ;;  %v8341_v30 = vsel %vm8301_vm3, 0.0, %v3835_v15  ;;  %v3938_v20 = vpack.c.bf16 %v3828_v10, %v3828_v10  ;;  %v8350_v17 = vld [vmem:[#allocation3 + $0xa0] sm:$0xff]  ;;  %v10337_v0 = vld [vmem:[#allocation52_spill] sm:$0xff] }
 0x252   : > { %10307 = vst [vmem:[#allocation132_spill] sm:$0xff] %v8312_v56  ;;  %v1702_v26 = vsel %vm10312_vm2, 0.0, %v1618_v27  ;;  %v3716_v53 = vsel %vm10314_vm7, %v3698_v62, %v3699_v25  ;;  %v3890_v47 = vpack.c.bf16 %v3762_v4, %v3762_v4  ;;  %v3812_v60 = vsel %vm10315_vm15, %v3794_v48, %v3795_v58 }
 0x253   : > { %10308 = vst [vmem:[#allocation133_spill] sm:$0xff] %v8314_v34  ;;  %v1575_v27 = vrot.slane %v8347_v8, 1  ;;  %v10316_v32 = vrot.slane %v8254_v35, 1  ;;  %v10317_v22 = vrot.slane %v8128_v45, 1  ;;  %v10319_v15 = vrot.slane %v8254_v35, 7 }
 0x254   : > { %10310 = vst [vmem:[#allocation134_spill] sm:$0xff] %v8332_v42  ;;  %v10320_v62 = vrot.slane %v8128_v45, 7  ;;  %v3891_v4 = vpack.c.bf16 %v3716_v53, %v3716_v53  ;;  %v1897_v56 = vpack.c.b16 %v1878_v38, %v8267_v55  ;;  %v10322_v34 = vrot.slane %v7545_v63, 7  ;;  %v8375_v45 = vpop.f32.mrf.mxu0  ;;  %v10335_v63 = vld [vmem:[#allocation45_spill] sm:$0xff] }
 0x255   : > { %10313 = vst [vmem:[#allocation55_spill] sm:$0xff] %v8341_v30  ;;  %v3827_v10 = vsel %vm10318_vm0, %v10317_v22, %v10316_v32  ;;  %v8364_v30 = vpop.f32.mrf.mxu1  ;;  %v1798_v32 = vpack.c.bf16 %v1702_v26, %v1702_v26  ;;  %v10326_v53 = vrot.slane %v8336_v14, 1  ;;  %v8388_v26 = vunpack.c.l.b16 %v3938_v20  ;;  %v10331_v22 = vld [vmem:[#allocation44_spill] sm:$0xff] }
 0x256   : > { %v3731_v48 = vsel %vm10321_vm10, %v10320_v62, %v10319_v15  ;;  %v1441_v18 = vsel %vm10323_vm13, %v10322_v34, %v1429_v40  ;;  %v3843_v9 = vsel %vm7770_vm1, 0.0, %v3827_v10  ;;  %v8382_v55 = vunpack.c.l.b16 %v3891_v4  ;;  %v8386_v34 = vld [vmem:[#allocation3 + $0x48] sm:$0xff]  ;;  %v10332_v15 = vld [vmem:[#allocation96_spill] sm:$0xff]  ;;  %vm10344_vm10 = vmmov %vm10314_vm7 }
 0x257   : > { %v1616_v62 = vsel %vm10327_vm14, %v1575_v27, %v10326_v53  ;;  %v3939_v7 = vpack.c.bf16 %v3843_v9, %v3843_v9  ;;  %10329 = vst [vmem:[#allocation82_spill] sm:$0xff] %v8388_v26  ;;  %v8390_v10 = vunpack.c.l.b16 %v3890_v47  ;;  %3444 = vmatmul.bf16.gmra.mxu0 %v1897_v56  ;;  %v10333_v1 = vpack.c.b16 %v10331_v22, %v10332_v15  ;;  %v3115_v59 = vpop.f32.mrf.mxu2  ;;  %v10339_v47 = vld [vmem:[#allocation104_spill] sm:$0xff]  ;;  %vm10347_vm13 = vmmov %vm10314_vm7 }
 0x258   : > { %10328 = vst [vmem:[#allocation32_spill] sm:$0xff] %v8382_v55  ;;  %v3700_v53 = vrot.slane %v8386_v34, 7  ;;  %v3796_v9 = vrot.slane %v8386_v34, 1  ;;  %vm10336_vm1 = vnez %v10335_v63  ;;  %vm10338_vm9 = vnez %v10337_v0  ;;  %v10342_v63 = vld [vmem:[#allocation64_spill] sm:$0xff]  ;;  %vm10350_vm14 = vmmov %vm10318_vm0  ;;  %v8444_v22 = vpop.f32.mrf.mxu3 }
 0x259   : > { %10330 = vst [vmem:[#allocation135_spill] sm:$0xff] %v8390_v10  ;;  %3488 = vmatmul.bf16.gmra.mxu1 %v10333_v1  ;;  %v8397_v4 = vunpack.c.l.b16 %v3939_v7  ;;  %v3748_v38 = vsel %vm10336_vm1, 0.0, %v3731_v48  ;;  %v1558_v20 = vsel %vm10338_vm9, 0.0, %v1441_v18  ;;  %v1797_v56 = vpack.c.bf16 %v10339_v47, %v10339_v47 }
 0x25a   : > { %v1767_v15 = vpack.c.bf16 %v8239_v57, %v8239_v57  ;;  %v8410_v34 = vadd.f32 %v3115_v59, %v8285_v54  ;;  %v10341_v7 = vrot.slane %v10325_v61, 7  ;;  %vm10343_vm15 = vnez %v10342_v63  ;;  %v10441_v63 = vld [vmem:[#allocation25_spill] sm:$0xff] }
 0x25b   : > { %10334 = vst [vmem:[#allocation44_spill] sm:$0xff] %v8397_v4  ;;  %v1704_v18 = vsel %vm10343_vm15, 0.0, %v1616_v62  ;;  %v3876_v47 = vpack.c.bf16 %v3748_v38, %v3748_v38  ;;  %v3811_v29 = vsel %vm10318_vm0, %v3795_v58, %v3796_v9  ;;  %v3954_v43 = vpack.c.bf16 %v3812_v60, %v3812_v60  ;;  %v10351_v60 = vld [vmem:[#allocation77_spill] sm:$0xff]  ;;  %v10354_v4 = vld [vmem:[#allocation99_spill] sm:$0xff] }
 0x25c   : > { %10340 = vst [vmem:[#allocation96_spill] sm:$0xff] %v8410_v34  ;;  %v1440_v48 = vsel %vm10314_vm7, %v1429_v40, %v10341_v7  ;;  %v3715_v54 = vsel %vm10344_vm10, %v3699_v25, %v3700_v53  ;;  %v8424_v59 = vunpack.c.l.b16 %v1798_v32  ;;  %v10345_v1 = vrot.slane %v8350_v17, 7  ;;  %vm10358_vm7 = vmmov %vm10318_vm0 }
 0x25d   : > { %v10346_v40 = vrot.slane %v8254_v35, 7  ;;  %v10348_v7 = vrot.slane %v8350_v17, 1  ;;  %v10349_v38 = vrot.slane %v8254_v35, 1  ;;  %vm10352_vm1 = vnez %v10351_v60  ;;  %v8442_v32 = vpop.f32.mrf.mxu1  ;;  %v10353_v35 = vld [vmem:[#allocation51_spill] sm:$0xff]  ;;  %vm10371_vm0 = vmmov %vm10344_vm10 }
 0x25e   : > { %v3859_v25 = vsel %vm10352_vm1, 0.0, %v3811_v29  ;;  %v1751_v10 = vpack.c.bf16 %v1558_v20, %v1558_v20  ;;  %v1768_v55 = vpack.c.bf16 %v8347_v8, %v8347_v8  ;;  %v10355_v34 = vpack.c.b16 %v10353_v35, %v10354_v4  ;;  %v8468_v4 = vpop.f32.mrf.mxu0  ;;  %vm10373_vm10 = vmmov %vm10371_vm0 }
 0x25f   : > { %v3730_v62 = vsel %vm10347_vm13, %v10346_v40, %v10345_v1  ;;  %v8438_v58 = vsel %vm10350_vm14, %v10349_v38, %v10348_v7  ;;  %v8448_v1 = vld [vmem:[#allocation3 + $0x28] sm:$0xff]  ;;  %v3955_v26 = vpack.c.bf16 %v3859_v25, %v3859_v25  ;;  %v1752_v7 = vpack.c.bf16 %v1440_v48, %v1440_v48  ;;  %10363 = vst [vmem:[#allocation77_spill] sm:$0xff] %v8468_v4  ;;  %vm10375_vm13 = vmmov %vm10358_vm7  ;;  %v8628_v4 = vld [vmem:[#allocation3 + $0x100] sm:$0xff] }
 0x260   : > { %v3877_v40 = vpack.c.bf16 %v3730_v62, %v3730_v62  ;;  %3577 = vmatmul.bf16.gmra.mxu2 %v10355_v34  ;;  %v10356_v38 = vld [vmem:[#allocation83_spill] sm:$0xff]  ;;  %v10357_v29 = vrot.slane %v8239_v57, 1  ;;  %v1800_v20 = vpack.c.bf16 %v1704_v18, %v1704_v18  ;;  %v8460_v8 = vunpack.c.l.b16 %v3876_v47  ;;  %v3118_v18 = vpop.f32.mrf.mxu2  ;;  %v10366_v34 = vld [vmem:[#allocation57_spill] sm:$0xff]  ;;  %vm10380_vm14 = vmmov %vm10358_vm7 }
 0x261   : > { %v8464_v62 = vunpack.c.l.b16 %v3954_v43  ;;  %v8466_v25 = vunpack.c.l.b16 %v3955_v26  ;;  %v8474_v47 = vunpack.c.l.b16 %v1768_v55  ;;  %v8481_v35 = vadd.f32 %v3118_v18, %v8366_v39  ;;  %v5746_v55 = vld [vmem:[%s6519_s21 + $0x1a0] sm:$0xff] }
 0x262   : > { %v1617_v3 = vsel %vm10358_vm7, %v10357_v29, %v1575_v27  ;;  %10359 = vst [vmem:[#allocation45_spill] sm:$0xff] %v8460_v8  ;;  %v8462_v51 = vunpack.c.l.b16 %v3877_v40  ;;  %v10365_v29 = vld [vmem:[#allocation58_spill] sm:$0xff]  ;;  %v1880_v27 = vunpack.c.l.b16 %v1752_v7  ;;  %v8486_v42 = vunpack.c.l.b16 %v1797_v56  ;;  %4451 = vmatpush.bf16.msra.mxu3 %v5746_v55  ;;  %vm10383_vm7 = vmmov %vm10371_vm0 }
 0x263   : > { %10361 = vst [vmem:[#allocation104_spill] sm:$0xff] %v8464_v62  ;;  %v1799_v40 = vpack.c.bf16 %v1617_v3, %v1617_v3  ;;  %v10367_v57 = vpack.c.b16 %v10365_v29, %v10366_v34  ;;  %v8488_v48 = vunpack.c.l.b16 %v1767_v15  ;;  %v8491_v3 = vld [vmem:[#allocation3 + $0x68] sm:$0xff]  ;;  %v10369_v43 = vrot.slane %v10356_v38, 7  ;;  %v10376_v29 = vld [vmem:[#allocation101_spill] sm:$0xff] }
 0x264   : > { %10360 = vst [vmem:[#allocation52_spill] sm:$0xff] %v8462_v51  ;;  %v10370_v8 = vrot.slane %v10325_v61, 7  ;;  %v8499_v18 = vunpack.c.l.b16 %v1800_v20  ;;  %v10372_v34 = vrot.slane %v8458_v12, 7  ;;  %v10374_v15 = vrot.slane %v8458_v12, 1  ;;  %v10377_v61 = vld [vmem:[#allocation102_spill] sm:$0xff] }
 0x265   : > { %10362 = vst [vmem:[#allocation64_spill] sm:$0xff] %v8466_v25  ;;  %3171 = vmatmul.bf16.gmra.mxu3 %v10367_v57  ;;  %v1879_v57 = vunpack.c.l.b16 %v1751_v10  ;;  %v1985_v26 = vpack.c.b16 %v10377_v61, %v10376_v29  ;;  %v10378_v20 = vrot.slane %v8448_v1, 1  ;;  %v8527_v10 = vpop.f32.mrf.mxu3  ;;  %v2081_v55 = vpack.c.b16 %v8424_v59, %v8486_v42  ;;  %v8551_v29 = vld [vmem:[#allocation3 + $0xa0] sm:$0xff] }
 0x266   : > { %10364 = vst [vmem:[#allocation51_spill] sm:$0xff] %v8481_v35  ;;  %v1439_v39 = vsel %vm10371_vm0, %v10370_v8, %v10369_v43  ;;  %v3714_v56 = vsel %vm10373_vm10, %v3700_v53, %v10372_v34  ;;  %v8509_v7 = vsel %vm10375_vm13, %v3796_v9, %v10374_v15  ;;  %v10379_v8 = vrot.slane %v8350_v17, 1  ;;  %v8525_v15 = vpop.f32.mrf.mxu1  ;;  %v5754_v35 = vld [vmem:[%s6519_s21 + $0x1e0] sm:$0xff]  ;;  %v8567_v21 = vpop.f32.mrf.mxu0  ;;  %vm10397_vm10 = vmmov %vm10375_vm13 }
 0x267   : > { %10368 = vst [vmem:[#allocation99_spill] sm:$0xff] %v8491_v3  ;;  %v10381_v53 = vrot.slane %v8448_v1, 7  ;;  %v10382_v34 = vrot.slane %v8350_v17, 7  ;;  %v8533_v61 = vunpack.c.l.b16 %v1799_v40  ;;  %v3764_v62 = vsel %vm7046_vm6, 0.0, %v3715_v54  ;;  %4540 = vmatpush.bf16.msra.mxu0 %v5754_v35 }
 0x268   : > { %v3825_v43 = vsel %vm10380_vm14, %v10379_v8, %v10378_v20  ;;  %v8535_v20 = vld [vmem:[#allocation3 + $0xd0] sm:$0xff]  ;;  %v1898_v25 = vpack.c.b16 %v1880_v27, %v1879_v57  ;;  %v3940_v42 = vpack.c.bf16 %v8438_v58, %v8438_v58  ;;  %v8555_v27 = vld [vmem:[#allocation3 + $0x58] sm:$0xff]  ;;  %v3892_v59 = vpack.c.bf16 %v3764_v62, %v3764_v62  ;;  %10389 = vst [vmem:[#allocation58_spill] sm:$0xff] %v8567_v21  ;;  %vm10403_vm14 = vmmov %vm10397_vm10 }
 0x269   : > { %v3729_v9 = vsel %vm10383_vm7, %v10382_v34, %v10381_v53  ;;  %v10385_v34 = vld [vmem:[#allocation56_spill] sm:$0xff]  ;;  %3493 = vmatmul.bf16.gmra.mxu1 %v1985_v26  ;;  %v10387_v8 = vld [vmem:[#allocation23_spill] sm:$0xff]  ;;  %v3120_v53 = vpop.f32.mrf.mxu2  ;;  %v10391_v57 = vrot.slane %v8491_v3, 7  ;;  %v3893_v50 = vpack.c.bf16 %v3714_v56, %v3714_v56  ;;  %v3702_v58 = vrot.slane %v8555_v27, 7 }
 0x26a   : > { %vm10386_vm0 = vnez %v10385_v34  ;;  %3449 = vmatmul.bf16.gmra.mxu0 %v1898_v25  ;;  %vm10388_vm6 = vnez %v10387_v8  ;;  %v8570_v26 = vadd.f32 %v3120_v53, %v8444_v22  ;;  %v5753_v8 = vld [vmem:[%s6519_s21 + $0x1d8] sm:$0xff]  ;;  %v8580_v35 = vunpack.c.l.b16 %v3940_v42 }
 0x26b   : > { %v8542_v51 = vsel %vm10386_vm0, 0.0, %v1439_v39  ;;  %v3845_v39 = vsel %vm10312_vm2, 0.0, %v3825_v43  ;;  %v3750_v40 = vsel %vm10388_vm6, 0.0, %v3729_v9  ;;  %v3798_v43 = vrot.slane %v8555_v27, 1  ;;  %vm10393_vm2 = vmmov %vm10383_vm7  ;;  %4541 = vmatpush.bf16.msra.mxu0 %v5753_v8 }
 0x26c   : > { %v1753_v54 = vpack.c.bf16 %v8542_v51, %v8542_v51  ;;  %v3941_v25 = vpack.c.bf16 %v3845_v39, %v3845_v39  ;;  %10390 = vst [vmem:[#allocation57_spill] sm:$0xff] %v8570_v26  ;;  %v10392_v9 = vrot.slane %v10356_v38, 7  ;;  %v5762_v51 = vld [vmem:[%s6519_s21 + $0x220] sm:$0xff]  ;;  %v3878_v23 = vpack.c.bf16 %v3750_v40, %v3750_v40  ;;  %v8589_v26 = vld [vmem:[#allocation3 + $0x58] sm:$0xff]  ;;  %vm10400_vm13 = vmmov %vm10393_vm2 }
 0x26d   : > { %10394 = vst [vmem:[#allocation101_spill] sm:$0xff] %v8580_v35  ;;  %v10396_v22 = vrot.slane %v8458_v12, 1  ;;  %4629 = vmatpush.bf16.msra.mxu1 %v5762_v51  ;;  %v10401_v42 = vrot.slane %v8535_v20, 1  ;;  %v10402_v40 = vrot.slane %v8448_v1, 1  ;;  %v8611_v5 = vpop.f32.mrf.mxu3  ;;  %v3956_v8 = vpack.c.bf16 %v8509_v7, %v8509_v7  ;;  %vm10412_vm6 = vmmov %vm10393_vm2  ;;  %v10416_v38 = vld [vmem:[#allocation67_spill] sm:$0xff] }
 0x26e   : > { %v1438_v62 = vsel %vm10393_vm2, %v10392_v9, %v10391_v57  ;;  %v8583_v39 = vunpack.c.l.b16 %v3941_v25  ;;  %v10398_v57 = vrot.slane %v8535_v20, 7  ;;  %v10399_v9 = vrot.slane %v8448_v1, 7  ;;  %v8609_v51 = vpop.f32.mrf.mxu1  ;;  %vm10421_vm2 = vmmov %vm10397_vm10 }
 0x26f   : > { %v3809_v53 = vsel %vm10397_vm10, %v10396_v22, %v3798_v43  ;;  %v8603_v27 = vsel %vm10403_vm14, %v10402_v40, %v10401_v42  ;;  %v8605_v25 = vunpack.c.l.b16 %v3892_v59  ;;  %v8607_v22 = vunpack.c.l.b16 %v3893_v50  ;;  %10406 = vst [vmem:[#allocation23_spill] sm:$0xff] %v8609_v51  ;;  %v10407_v40 = vld [vmem:[#allocation27_spill] sm:$0xff]  ;;  %4542 = vmatpush.bf16.msra.mxu0 %v5752_v44  ;;  %vm10423_vm10 = vmmov %vm10421_vm2 }
 0x270   : > { %10395 = vst [vmem:[#allocation102_spill] sm:$0xff] %v8583_v39  ;;  %v3728_v56 = vsel %vm10400_vm13, %v10399_v9, %v10398_v57  ;;  %v8616_v9 = vld [vmem:[#allocation3 + $0x110] sm:$0xff]  ;;  %vm10408_vm7 = vnez %v10407_v40  ;;  %3582 = vmatmul.bf16.gmra.mxu2 %v2081_v55  ;;  %v1754_v50 = vpack.c.bf16 %v1438_v62, %v1438_v62  ;;  %v1433_v57 = vrot.slane %v8589_v26, 7  ;;  %vm10426_vm13 = vmmov %vm10412_vm6 }
 0x271   : > { %10404 = vst [vmem:[#allocation48_spill] sm:$0xff] %v8605_v25  ;;  %v3879_v42 = vpack.c.bf16 %v3728_v56, %v3728_v56  ;;  %v3861_v59 = vsel %vm10408_vm7, 0.0, %v3809_v53  ;;  %v8630_v51 = vunpack.c.l.b16 %v3878_v23  ;;  %v10411_v53 = vrot.slane %v8458_v12, 7  ;;  %v3123_v24 = vpop.f32.mrf.mxu2  ;;  %v10417_v25 = vld [vmem:[#allocation66_spill] sm:$0xff]  ;;  %vm10429_vm14 = vmmov %vm10421_vm2  ;;  %v10437_v39 = vld [vmem:[#allocation72_spill] sm:$0xff] }
 0x272   : > { %10405 = vst [vmem:[#allocation56_spill] sm:$0xff] %v8607_v22  ;;  %v3957_v21 = vpack.c.bf16 %v3861_v59, %v3861_v59  ;;  %v3703_v7 = vrot.slane %v8628_v4, 7  ;;  %v3799_v59 = vrot.slane %v8628_v4, 1  ;;  %v8651_v62 = vadd.f32 %v3123_v24, %v8527_v10 }
 0x273   : > { %10409 = vst [vmem:[#allocation27_spill] sm:$0xff] %v8630_v51  ;;  %v8632_v56 = vunpack.c.l.b16 %v3879_v42  ;;  %v3713_v55 = vsel %vm10412_vm6, %v10411_v53, %v3702_v58  ;;  %v8644_v42 = vunpack.c.l.b16 %v3956_v8  ;;  %v10418_v22 = vpack.c.b16 %v10416_v38, %v10417_v25  ;;  %v5751_v8 = vld [vmem:[%s6519_s21 + $0x1c8] sm:$0xff] }
 0x274   : > { %v8646_v12 = vunpack.c.l.b16 %v3957_v21  ;;  %v3766_v53 = vsel %vm10338_vm9, 0.0, %v3713_v55  ;;  %10415 = vst [vmem:[#allocation139_spill] sm:$0xff] %v8651_v62  ;;  %v1881_v4 = vunpack.c.l.b16 %v1753_v54  ;;  %v1882_v35 = vunpack.c.l.b16 %v1754_v50  ;;  %vm10422_vm9 = vmmov %vm10412_vm6  ;;  %v8671_v54 = vpop.f32.mrf.mxu0  ;;  %4543 = vmatpush.bf16.msra.mxu0 %v5751_v8  ;;  %v10439_v8 = vld [vmem:[#allocation65_spill] sm:$0xff] }
 0x275   : > { %10410 = vst [vmem:[#allocation136_spill] sm:$0xff] %v8632_v56  ;;  %3176 = vmatmul.bf16.gmra.mxu3 %v10418_v22  ;;  %v10419_v44 = vrot.slane %v8613_v28, 1  ;;  %v10420_v23 = vrot.slane %v8551_v29, 1  ;;  %v3712_v24 = vsel %vm10422_vm9, %v3702_v58, %v3703_v7  ;;  %v3894_v10 = vpack.c.bf16 %v3766_v53, %v3766_v53  ;;  %vm10436_vm9 = vmmov %vm10412_vm6 }
 0x276   : > { %10413 = vst [vmem:[#allocation137_spill] sm:$0xff] %v8644_v42  ;;  %v8669_v38 = vsel %vm10423_vm10, %v3798_v43, %v3799_v59  ;;  %v10425_v25 = vrot.slane %v8491_v3, 7  ;;  %v10427_v50 = vrot.slane %v8616_v9, 1  ;;  %v10428_v55 = vrot.slane %v8535_v20, 1  ;;  %v8689_v0 = vpop.f32.mrf.mxu1  ;;  %v8691_v42 = vpop.f32.mrf.mxu3  ;;  %v8722_v3 = vld [vmem:[#allocation3 + $0x78] sm:$0xff] }
 0x277   : > { %10414 = vst [vmem:[#allocation138_spill] sm:$0xff] %v8646_v12  ;;  %v1614_v21 = vsel %vm10421_vm2, %v10420_v23, %v10419_v44  ;;  %v10430_v23 = vrot.slane %v8616_v9, 7  ;;  %v10431_v43 = vrot.slane %v8535_v20, 7  ;;  %v3895_v44 = vpack.c.bf16 %v3712_v24, %v3712_v24 }
 0x278   : > { %10424 = vst [vmem:[#allocation67_spill] sm:$0xff] %v8671_v54  ;;  %v1437_v22 = vsel %vm10426_vm13, %v10425_v25, %v1433_v57  ;;  %v3823_v58 = vsel %vm10429_vm14, %v10428_v55, %v10427_v50  ;;  %v10432_v25 = vpack.c.bf16 %v8551_v29, %v8551_v29  ;;  %v10433_v51 = vrot.slane %v8551_v29, 1  ;;  %vm10450_vm14 = vmmov %vm10421_vm2 }
 0x279   : > { %v3727_v53 = vsel %vm10412_vm6, %v10431_v43, %v10430_v23  ;;  %v10434_v50 = vrot.slane %v8336_v14, 1  ;;  %v8706_v23 = vld [vmem:[#allocation3 + $0xc0] sm:$0xff]  ;;  %v3847_v24 = vsel %vm10343_vm15, 0.0, %v3823_v58  ;;  %v3942_v43 = vpack.c.bf16 %v8603_v27, %v8603_v27 }
 0x27a   : > { %v8696_v12 = vunpack.c.l.b16 %v10432_v25  ;;  %v1899_v56 = vpack.c.b16 %v1882_v35, %v1881_v4  ;;  %v10435_v25 = vld [vmem:[#allocation28_spill] sm:$0xff]  ;;  %vm10438_vm10 = vnez %v10437_v39  ;;  %vm10440_vm13 = vnez %v10439_v8 }
 0x27b   : > { %v8704_v55 = vsel %vm10421_vm2, %v10434_v50, %v10433_v51  ;;  %v1436_v29 = vsel %vm10436_vm9, %v1433_v57, %v10435_v25  ;;  %v8717_v62 = vsel %vm10438_vm10, 0.0, %v1614_v21  ;;  %v5750_v51 = vld [vmem:[%s6519_s21 + $0x1c0] sm:$0xff]  ;;  %v3943_v50 = vpack.c.bf16 %v3847_v24, %v3847_v24  ;;  %v3125_v25 = vpop.f32.mrf.mxu2  ;;  %vm10452_vm2 = vmmov %vm10412_vm6 }
 0x27c   : > { %v1562_v54 = vsel %vm10440_vm13, 0.0, %v1437_v22  ;;  %vm10442_vm15 = vnez %v10441_v63  ;;  %v8726_v27 = vunpack.c.l.b16 %v3894_v10  ;;  %v8728_v35 = vunpack.c.l.b16 %v3895_v44  ;;  %3454 = vmatmul.bf16.gmra.mxu0 %v1899_v56  ;;  %vm10454_vm9 = vmmov %vm10450_vm14 }
 0x27d   : > { %v3752_v58 = vsel %vm10442_vm15, 0.0, %v3727_v53  ;;  %v10445_v57 = vpack.c.b16 %v8474_v47, %v8488_v48  ;;  %v3689_v4 = vrot.slane %v8706_v23, 7  ;;  %v3785_v21 = vrot.slane %v8706_v23, 1  ;;  %4544 = vmatpush.bf16.msra.mxu0 %v5750_v51  ;;  %vm10456_vm15 = vmmov %vm10454_vm9 }
 0x27e   : > { %10443 = vst [vmem:[#allocation66_spill] sm:$0xff] %v8726_v27  ;;  %v3704_v22 = vrot.slane %v8722_v3, 7  ;;  %v1756_v63 = vpack.c.bf16 %v1436_v29, %v1436_v29  ;;  %v8737_v10 = vunpack.c.l.b16 %v3942_v43  ;;  %v8739_v53 = vunpack.c.l.b16 %v3943_v50  ;;  %v3041_v56 = vpop.f32.mrf.mxu3  ;;  %v10459_v27 = vld [vmem:[#allocation31_spill] sm:$0xff] }
 0x27f   : > { %10444 = vst [vmem:[#allocation28_spill] sm:$0xff] %v8728_v35  ;;  %3498 = vmatmul.bf16.gmra.mxu1 %v10445_v57  ;;  %v8744_v48 = vadd.f32 %v3125_v25, %v8611_v5  ;;  %v1755_v47 = vpack.c.bf16 %v1562_v54, %v1562_v54  ;;  %v3880_v44 = vpack.c.bf16 %v3752_v58, %v3752_v58  ;;  %v10449_v29 = vrot.slane %v8722_v3, 1  ;;  %v8780_v35 = vpop.f32.mrf.mxu0 }
 0x280   : > { %10446 = vst [vmem:[#allocation72_spill] sm:$0xff] %v8737_v10  ;;  %v3883_v57 = vpack.c.bf16 %v7997_v37, %v7997_v37  ;;  %v3958_v51 = vpack.c.bf16 %v8669_v38, %v8669_v38  ;;  %v3711_v5 = vsel %vm10412_vm6, %v3703_v7, %v3704_v22  ;;  %v10451_v54 = vrot.slane %v8616_v9, 7 }
 0x281   : > { %10447 = vst [vmem:[#allocation25_spill] sm:$0xff] %v8739_v53  ;;  %v3807_v43 = vsel %vm10450_vm14, %v3799_v59, %v10449_v29  ;;  %v10453_v37 = vrot.slane %v7932_v31, 1  ;;  %v10455_v25 = vrot.slane %v8616_v9, 1  ;;  %v10457_v38 = vrot.slane %v7932_v31, 7  ;;  %vm10458_vm14 = vmmov %vm10452_vm2  ;;  %v8774_v29 = vpop.f32.mrf.mxu1 }
 0x282   : > { %10448 = vst [vmem:[#allocation140_spill] sm:$0xff] %v8744_v48  ;;  %v3726_v50 = vsel %vm10452_vm2, %v10451_v54, %v3689_v4  ;;  %vm10460_vm6 = vnez %v10459_v27  ;;  %v1884_v31 = vunpack.c.l.b16 %v1756_v63  ;;  %v3863_v10 = vsel %vm7720_vm12, 0.0, %v3807_v43  ;;  %v10509_v48 = vld [vmem:[#allocation98_spill] sm:$0xff] }
 0x283   : > { %v3821_v58 = vsel %vm10454_vm9, %v3785_v21, %v10453_v37  ;;  %v3822_v59 = vsel %vm10456_vm15, %v10455_v25, %v3785_v21  ;;  %v3725_v7 = vsel %vm10458_vm14, %v3689_v4, %v10457_v38  ;;  %v3881_v24 = vpack.c.bf16 %v3726_v50, %v3726_v50  ;;  %v8787_v50 = vld [vmem:[#allocation3 + $0x10] sm:$0xff] }
 0x284   : > { %v3849_v54 = vsel %vm10438_vm10, 0.0, %v3821_v58  ;;  %v3944_v8 = vpack.c.bf16 %v3822_v59, %v3822_v59  ;;  %v3754_v37 = vsel %vm10460_vm6, 0.0, %v3725_v7  ;;  %v10461_v21 = vpack.c.b16 %v8499_v18, %v8533_v61  ;;  %10463 = vst [vmem:[#allocation31_spill] sm:$0xff] %v8787_v50  ;;  %vm10482_vm10 = vmmov %vm10454_vm9 }
 0x285   : > { %v3945_v25 = vpack.c.bf16 %v3849_v54, %v3849_v54  ;;  %v3882_v4 = vpack.c.bf16 %v3754_v37, %v3754_v37  ;;  %v8789_v39 = vunpack.c.l.b16 %v3880_v44  ;;  %v8791_v58 = vunpack.c.l.b16 %v3881_v24  ;;  %v3128_v54 = vpop.f32.mrf.mxu2 }
 0x286   : > { %3587 = vmatmul.bf16.gmra.mxu2 %v10461_v21  ;;  %v8793_v27 = vunpack.c.l.b16 %v3944_v8  ;;  %v3959_v59 = vpack.c.bf16 %v3863_v10, %v3863_v10  ;;  %v8798_v61 = vunpack.c.l.b16 %v3883_v57  ;;  %v8800_v63 = vunpack.c.l.b16 %v3958_v51  ;;  %v10473_v10 = vld [vmem:[#allocation76_spill] sm:$0xff]  ;;  %v10474_v21 = vld [vmem:[#allocation75_spill] sm:$0xff] }
 0x287   : > { %10464 = vst [vmem:[#allocation88_spill] sm:$0xff] %v8789_v39  ;;  %v8796_v18 = vunpack.c.l.b16 %v3945_v25  ;;  %v8804_v44 = vunpack.c.l.b16 %v3882_v4  ;;  %v3768_v8 = vsel %vm10386_vm0, 0.0, %v3711_v5  ;;  %v8811_v24 = vadd.f32 %v3128_v54, %v8691_v42  ;;  %v5745_v25 = vld [vmem:[%s6519_s21 + $0x198] sm:$0xff]  ;;  %vm10477_vm0 = vmmov %vm10452_vm2 }
 0x288   : > { %10465 = vst [vmem:[#allocation141_spill] sm:$0xff] %v8791_v58  ;;  %v8806_v37 = vunpack.c.l.b16 %v3959_v59  ;;  %v10475_v57 = vpack.c.b16 %v10473_v10, %v10474_v21  ;;  %v1883_v51 = vunpack.c.l.b16 %v1755_v47  ;;  %v3896_v43 = vpack.c.bf16 %v3768_v8, %v3768_v8  ;;  %4452 = vmatpush.bf16.msra.mxu3 %v5745_v25  ;;  %v3044_v21 = vpop.f32.mrf.mxu3  ;;  %vm10484_vm2 = vmmov %vm10454_vm9 }
 0x289   : > { %10466 = vst [vmem:[#allocation142_spill] sm:$0xff] %v8793_v27  ;;  %v10476_v5 = vrot.slane %v8787_v50, 7  ;;  %v10478_v59 = vpack.c.bf16 %v8336_v14, %v8336_v14  ;;  %v1802_v54 = vpack.c.bf16 %v8717_v62, %v8717_v62  ;;  %v8832_v10 = vpop.f32.mrf.mxu1  ;;  %v8841_v14 = vpop.f32.mrf.mxu0  ;;  %v10490_v27 = vrot.slane %v8613_v28, 1  ;;  %vm10491_vm9 = vmmov %vm10484_vm2 }
 0x28a   : > { %10467 = vst [vmem:[#allocation143_spill] sm:$0xff] %v8796_v18  ;;  %3181 = vmatmul.bf16.gmra.mxu3 %v10475_v57  ;;  %v1801_v57 = vpack.c.bf16 %v8704_v55, %v8704_v55  ;;  %v1900_v34 = vpack.c.b16 %v1884_v31, %v1883_v51  ;;  %v8847_v55 = vld [vmem:[#allocation3 + $0x110] sm:$0xff]  ;;  %v5761_v31 = vld [vmem:[%s6519_s21 + $0x218] sm:$0xff]  ;;  %vm10499_vm15 = vmmov %vm10484_vm2 }
 0x28b   : > { %10468 = vst [vmem:[#allocation144_spill] sm:$0xff] %v8798_v61  ;;  %v3710_v42 = vsel %vm10477_vm0, %v3704_v22, %v10476_v5  ;;  %v1961_v47 = vunpack.c.l.b16 %v10478_v59  ;;  %v8837_v22 = vunpack.c.l.b16 %v3896_v43  ;;  %v2058_v62 = vunpack.c.l.b16 %v1802_v54  ;;  %v5933_v51 = vld [vmem:[#allocation3 + $0xd0] sm:$0xff]  ;;  %4630 = vmatpush.bf16.msra.mxu1 %v5761_v31  ;;  %vm10501_vm14 = vmmov %vm10484_vm2 }
 0x28c   : > { %10469 = vst [vmem:[#allocation145_spill] sm:$0xff] %v8800_v63  ;;  %v3897_v8 = vpack.c.bf16 %v3710_v42, %v3710_v42  ;;  %3459 = vmatmul.bf16.gmra.mxu0 %v1900_v34  ;;  %v2057_v7 = vunpack.c.l.b16 %v1801_v57  ;;  %v8853_v34 = vld [vmem:[#allocation3 + $0x108] sm:$0xff]  ;;  %v1771_v31 = vpack.c.bf16 %v8613_v28, %v8613_v28  ;;  %vm10505_vm0 = vmmov %vm10484_vm2 }
 0x28d   : > { %10470 = vst [vmem:[#allocation146_spill] sm:$0xff] %v8804_v44  ;;  %v1987_v4 = vpack.c.b16 %v8696_v12, %v1961_v47  ;;  %v3130_v42 = vpop.f32.mrf.mxu2  ;;  %v9898_v12 = vrot.slane %v8847_v55, 1  ;;  %v1579_v47 = vrot.slane %v5933_v51, 1  ;;  %v9903_v54 = vrot.slane %v8853_v34, 1 }
 0x28e   : > { %10471 = vst [vmem:[#allocation147_spill] sm:$0xff] %v8806_v37  ;;  %v8839_v5 = vunpack.c.l.b16 %v3897_v8  ;;  %v8845_v59 = vadd.f32 %v3130_v42, %v3041_v56  ;;  %v2083_v43 = vpack.c.b16 %v2058_v62, %v2057_v7  ;;  %v1772_v56 = vpack.c.bf16 %v5933_v51, %v5933_v51  ;;  %v5935_v42 = vld [vmem:[#allocation3 + $0xd8] sm:$0xff] }
 0x28f   : > { %10472 = vst [vmem:[#allocation148_spill] sm:$0xff] %v8811_v24  ;;  %3503 = vmatmul.bf16.gmra.mxu1 %v1987_v4  ;;  %v3901_v57 = vpack.c.bf16 %v5935_v42, %v5935_v42  ;;  %v1612_v25 = vsel %vm10482_vm10, %v1579_v47, %v9898_v12  ;;  %v5936_v7 = vld [vmem:[#allocation3 + $0x18] sm:$0xff]  ;;  %v10488_v12 = vld [vmem:[#allocation22_spill] sm:$0xff]  ;;  %vm10506_vm10 = vmmov %vm10505_vm0 }
 0x290   : > { %10479 = vst [vmem:[#allocation76_spill] sm:$0xff] %v8837_v22  ;;  %v3046_v4 = vpop.f32.mrf.mxu3  ;;  %v2306_v62 = vrot.slane %v5936_v7, 1  ;;  %v1708_v63 = vsel %vm7699_vm8, 0.0, %v1612_v25  ;;  %v10487_v37 = vld [vmem:[#allocation92_spill] sm:$0xff]  ;;  %v1964_v7 = vunpack.c.l.b16 %v1772_v56  ;;  %v1963_v25 = vunpack.c.l.b16 %v1771_v31  ;;  %vm10494_vm8 = vmmov %vm10484_vm2 }
 0x291   : > { %10480 = vst [vmem:[#allocation75_spill] sm:$0xff] %v8839_v5  ;;  %v8851_v8 = vpop.f32.mrf.mxu1  ;;  %v8868_v51 = vpop.f32.mrf.mxu0  ;;  %v10489_v44 = vpack.c.b16 %v10487_v37, %v10488_v12  ;;  %v4093_v61 = vunpack.c.l.b16 %v3901_v57  ;;  %v1613_v5 = vsel %vm10491_vm9, %v10490_v27, %v1579_v47  ;;  %v1804_v18 = vpack.c.bf16 %v1708_v63, %v1708_v63  ;;  %vm10519_vm9 = vmmov %vm10505_vm0 }
 0x292   : > { %10481 = vst [vmem:[#allocation149_spill] sm:$0xff] %v8845_v59  ;;  %v1803_v37 = vpack.c.bf16 %v1613_v5, %v1613_v5  ;;  %v920_v63 = vadd.s32 232, %v6677_v46 }
 0x293   : > { %10485 = vst [vmem:[#allocation34_spill] sm:$0xff] %v8868_v51  ;;  %v2060_v27 = vunpack.c.l.b16 %v1804_v18  ;;  %v8896_v18 = vld [vmem:[#allocation3 + $0xf8] sm:$0xff] }
 0x294   : > { %v2059_v31 = vunpack.c.l.b16 %v1803_v37 }
 0x295   : > { %v3133_v22 = vpop.f32.mrf.mxu2 }
 0x296   : > { %3592 = vmatmul.bf16.gmra.mxu2 %v2083_v43  ;;  %v2334_v43 = vsel %vm10484_vm2, %v2306_v62, %v9903_v54  ;;  %v8870_v42 = vadd.f32 %v3133_v22, %v3044_v21  ;;  %v1988_v22 = vpack.c.b16 %v1964_v7, %v1963_v25  ;;  %v5937_v7 = vld [vmem:[#allocation3 + $0xc0] sm:$0xff]  ;;  %v2084_v58 = vpack.c.b16 %v2060_v27, %v2059_v31  ;;  %v5941_v31 = vld [vmem:[#allocation3 + $0xf0] sm:$0xff]  ;;  %vm10508_vm2 = vmmov %vm10505_vm0 }
 0x297   : > { %v2370_v54 = vsel %vm8009_vm4, 0.0, %v2334_v43  ;;  %v1581_v25 = vrot.slane %v5937_v7, 1 }
 0x298   : > { %10486 = vst [vmem:[#allocation150_spill] sm:$0xff] %v8870_v42  ;;  %v3049_v21 = vpop.f32.mrf.mxu3  ;;  %v4124_v42 = vpack.c.b16 %v4093_v61, %v7647_v49  ;;  %v2466_v56 = vpack.c.bf16 %v2370_v54, %v2370_v54  ;;  %v5938_v61 = vld [vmem:[#allocation3 + $0xe0] sm:$0xff] }
 0x299   : > { %v8881_v39 = vpop.f32.mrf.mxu1  ;;  %v3903_v5 = vpack.c.bf16 %v5938_v61, %v5938_v61  ;;  %v2308_v61 = vrot.slane %v5941_v31, 1 }
 0x29a   : > { %3186 = vmatmul.bf16.gmra.mxu3 %v10489_v44  ;;  %v10492_v44 = vld [vmem:[#allocation86_spill] sm:$0xff]  ;;  %v2722_v49 = vunpack.c.l.b16 %v2466_v56 }
 0x29b   : > { %v10493_v12 = vrot.slane %v10492_v44, 1  ;;  %v8891_v44 = vpop.f32.mrf.mxu0 }
 0x29c   : > { %4545 = vmatmul.bf16.vlgmr.msra.gmra.mxu0 %v4124_v42  ;;  %10496 = vst [vmem:[#allocation22_spill] sm:$0xff] %v8891_v44  ;;  %v5942_v42 = vld [vmem:[#allocation3 + $0xe8] sm:$0xff] }
 0x29d   : > { %v2335_v28 = vsel %vm10494_vm8, %v10493_v12, %v2306_v62  ;;  %v3135_v47 = vpop.f32.mrf.mxu2  ;;  %v8893_v62 = vld [vmem:[#allocation3 + $0xb0] sm:$0xff]  ;;  %v10510_v44 = vld [vmem:[#allocation38_spill] sm:$0xff]  ;;  %vm10521_vm8 = vmmov %vm10505_vm0 }
 0x29e   : > { %v8889_v57 = vadd.f32 %v3135_v47, %v3046_v4  ;;  %v2465_v43 = vpack.c.bf16 %v2335_v28, %v2335_v28  ;;  %v9908_v54 = vrot.slane %v8893_v62, 1  ;;  %v1130_v4 = vand.u32 15, %v920_v63 }
 0x29f   : > { %3508 = vmatmul.bf16.gmra.mxu1 %v1988_v22  ;;  %v8899_v22 = vld [vmem:[#allocation3 + $0xa8] sm:$0xff]  ;;  %v3801_v28 = vrot.slane %v8787_v50, 1  ;;  %v1774_v47 = vpack.c.bf16 %v5937_v7, %v5937_v7  ;;  %v1773_v63 = vpack.c.bf16 %v8847_v55, %v8847_v55  ;;  %v4095_v50 = vunpack.c.l.b16 %v3903_v5 }
 0x2a0   : > { %10495 = vst [vmem:[#allocation92_spill] sm:$0xff] %v8889_v57  ;;  %v3051_v12 = vpop.f32.mrf.mxu3  ;;  %v2721_v56 = vunpack.c.l.b16 %v2465_v43  ;;  %v1610_v27 = vsel %vm10499_vm15, %v1581_v25, %v9908_v54  ;;  %v3902_v57 = vpack.c.bf16 %v5942_v42, %v5942_v42  ;;  %v9910_v59 = vrot.slane %v8899_v22, 1  ;;  %vm10523_vm15 = vmmov %vm10505_vm0 }
 0x2a1   : > { %10497 = vst [vmem:[#allocation86_spill] sm:$0xff] %v8899_v22  ;;  %v8901_v37 = vpop.f32.mrf.mxu1  ;;  %vm8915_vm6 = vcmp.eq.s32.totalorder %v1130_v4, 15  ;;  %v10504_v54 = vrot.slane %v8847_v55, 1  ;;  %v1710_v42 = vsel %vm8009_vm4, 0.0, %v1610_v27  ;;  %v10507_v5 = vrot.slane %v8722_v3, 1  ;;  %vm10513_vm4 = vmmov %vm10505_vm0 }
 0x2a2   : > { %10498 = vst [vmem:[#allocation151_spill] sm:$0xff] %v8901_v37  ;;  %v2745_v53 = vpack.c.b16 %v2722_v49, %v2721_v56  ;;  %v3805_v49 = vsel %vm10506_vm10, %v3801_v28, %v9910_v59  ;;  %v1966_v55 = vunpack.c.l.b16 %v1774_v47  ;;  %v4094_v27 = vunpack.c.l.b16 %v3902_v57  ;;  %vm10553_vm10 = vmmov %vm10505_vm0 }
 0x2a3   : > { %v1611_v24 = vsel %vm10505_vm0, %v10504_v54, %v1581_v25  ;;  %v3806_v4 = vsel %vm10508_vm2, %v10507_v5, %v3801_v28  ;;  %v3865_v25 = vsel %vm8915_vm6, 0.0, %v3805_v49  ;;  %v1965_v54 = vunpack.c.l.b16 %v1773_v63  ;;  %vm10565_vm2 = vmmov %vm10505_vm0 }
 0x2a4   : > { %v3960_v11 = vpack.c.bf16 %v3806_v4, %v3806_v4  ;;  %v3961_v22 = vpack.c.bf16 %v3865_v25, %v3865_v25  ;;  %v3064_v59 = vadd.f32 %v10510_v44, %v10509_v48  ;;  %v1805_v37 = vpack.c.bf16 %v1611_v24, %v1611_v24 }
 0x2a5   : > { %v3138_v31 = vpop.f32.mrf.mxu2  ;;  %v1806_v3 = vpack.c.bf16 %v1710_v42, %v1710_v42  ;;  %v1989_v63 = vpack.c.b16 %v1966_v55, %v1965_v54  ;;  %v4125_v49 = vpack.c.b16 %v4095_v50, %v4094_v27  ;;  %v10512_v48 = vrot.slane %v8853_v34, 1  ;;  %v10514_v42 = vld [vmem:[#allocation91_spill] sm:$0xff]  ;;  %v10515_v34 = vld [vmem:[#allocation105_spill] sm:$0xff] }
 0x2a6   : > { %3597 = vmatmul.bf16.gmra.mxu2 %v2084_v58  ;;  %v10500_v58 = vrot.slane %v8896_v18, 1  ;;  %v8933_v56 = vadd.f32 %v3138_v31, %v3049_v21  ;;  %v8940_v51 = vunpack.c.l.b16 %v3960_v11  ;;  %v8944_v47 = vunpack.c.l.b16 %v3961_v22  ;;  %v8946_v31 = vpop.f32.mrf.mxu0  ;;  %v5760_v50 = vld [vmem:[%s6519_s21 + $0x210] sm:$0xff]  ;;  %v10516_v11 = vld [vmem:[#allocation41_spill] sm:$0xff] }
 0x2a7   : > { %v2333_v24 = vsel %vm10513_vm4, %v10512_v48, %v2308_v61  ;;  %v2061_v22 = vunpack.c.l.b16 %v1805_v37  ;;  %v3066_v54 = vadd.f32 %v10516_v11, %v10515_v34  ;;  %4631 = vmatpush.bf16.msra.mxu1 %v5760_v50  ;;  %v5946_v34 = vld [vmem:[#allocation3 + $0x20] sm:$0xff]  ;;  %vm10575_vm4 = vmmov %vm10505_vm0 }
 0x2a8   : > { %v2332_v43 = vsel %vm10501_vm14, %v2308_v61, %v10500_v58  ;;  %v5744_v58 = vld [vmem:[%s6519_s21 + $0x190] sm:$0xff]  ;;  %10511 = vst [vmem:[#allocation98_spill] sm:$0xff] %v8940_v51  ;;  %v3152_v21 = vpop.f32.mrf.mxu3  ;;  %v2467_v25 = vpack.c.bf16 %v2333_v24, %v2333_v24  ;;  %v3904_v11 = vpack.c.bf16 %v5946_v34, %v5946_v34  ;;  %vm10534_vm14 = vmmov %vm10505_vm0 }
 0x2a9   : > { %4453 = vmatpush.bf16.msra.mxu3 %v5744_v58  ;;  %v3474_v28 = vpop.f32.mrf.mxu1  ;;  %v3153_v57 = vadd.f32 %v3152_v21, %v3064_v59  ;;  %v5943_v21 = vld [vmem:[#allocation3 + $0x18] sm:$0xff] }
 0x2aa   : > { %3191 = vmatmul.bf16.gmra.mxu3 %v2745_v53  ;;  %v2372_v53 = vsel %vm8080_vm11, 0.0, %v2332_v43  ;;  %v2062_v43 = vunpack.c.l.b16 %v1806_v3  ;;  %v1583_v48 = vrot.slane %v5943_v21, 1  ;;  %v1776_v37 = vpack.c.bf16 %v5943_v21, %v5943_v21 }
 0x2ab   : > { %v3386_v5 = vadd.f32 %v10514_v42, %v3153_v57  ;;  %v2468_v4 = vpack.c.bf16 %v2372_v53, %v2372_v53  ;;  %v5944_v53 = vld [vmem:[#allocation3 + $0x50] sm:$0xff] }
 0x2ac   : > { %4550 = vmatmul.bf16.gmra.mxu0 %v4125_v49  ;;  %v2085_v61 = vpack.c.b16 %v2062_v43, %v2061_v22  ;;  %v2723_v49 = vunpack.c.l.b16 %v2467_v25  ;;  %v3905_v24 = vpack.c.bf16 %v5944_v53, %v5944_v53  ;;  %v1775_v43 = vpack.c.bf16 %v8893_v62, %v8893_v62 }
 0x2ad   : > { %v3140_v58 = vpop.f32.mrf.mxu2  ;;  %v3475_v59 = vadd.f32 %v3474_v28, %v3386_v5  ;;  %v2724_v27 = vunpack.c.l.b16 %v2468_v4  ;;  %v10517_v28 = vld [vmem:[#allocation60_spill] sm:$0xff]  ;;  %v8964_v5 = vld [vmem:[#allocation3 + $0x80] sm:$0xff] }
 0x2ae   : > { %v8955_v55 = vadd.f32 %v3140_v58, %v3051_v12  ;;  %v10518_v12 = vrot.slane %v10517_v28, 1  ;;  %v9911_v22 = vrot.slane %v8964_v5, 1  ;;  %v8969_v4 = vpop.f32.mrf.mxu0  ;;  %v10520_v58 = vld [vmem:[#allocation95_spill] sm:$0xff]  ;;  %v4097_v44 = vunpack.c.l.b16 %v3905_v24 }
 0x2af   : > { %3513 = vmatmul.bf16.gmra.mxu1 %v1989_v63  ;;  %v2746_v50 = vpack.c.b16 %v2724_v27, %v2723_v49  ;;  %v10522_v27 = vrot.slane %v8893_v62, 1  ;;  %v1967_v41 = vunpack.c.l.b16 %v1775_v43  ;;  %v10526_v62 = vrot.slane %v8896_v18, 1 }
 0x2b0   : > { %v3154_v57 = vpop.f32.mrf.mxu3  ;;  %v1608_v42 = vsel %vm10519_vm9, %v1583_v48, %v10518_v12  ;;  %vm10578_vm9 = vmmov %vm10505_vm0 }
 0x2b1   : > { %v3476_v63 = vpop.f32.mrf.mxu1  ;;  %v3155_v3 = vadd.f32 %v3154_v57, %v3066_v54  ;;  %v5947_v54 = vld [vmem:[#allocation3 + $0x118] sm:$0xff]  ;;  %v1968_v57 = vunpack.c.l.b16 %v1776_v37  ;;  %v1712_v53 = vsel %vm8080_vm11, 0.0, %v1608_v42  ;;  %v1609_v49 = vsel %vm10523_vm15, %v10522_v27, %v1583_v48  ;;  %v10525_v37 = vld [vmem:[#allocation43_spill] sm:$0xff]  ;;  %vm10527_vm11 = vmmov %vm10505_vm0 }
 0x2b2   : > { %v4096_v42 = vunpack.c.l.b16 %v3904_v11  ;;  %v10528_v27 = vld [vmem:[#allocation100_spill] sm:$0xff]  ;;  %vm10588_vm15 = vmmov %vm10505_vm0 }
 0x2b3   : > { %v3388_v25 = vadd.f32 %v10520_v58, %v3155_v3  ;;  %v10524_v58 = vld [vmem:[#allocation108_spill] sm:$0xff] }
 0x2b4   : > { %v3069_v34 = vadd.f32 %v10525_v37, %v10524_v58 }
 0x2b5   : > { %v3563_v21 = vpop.f32.mrf.mxu2  ;;  %v3477_v28 = vadd.f32 %v3476_v63, %v3388_v25  ;;  %v1808_v63 = vpack.c.bf16 %v1712_v53, %v1712_v53 }
 0x2b6   : > { %3602 = vmatmul.bf16.gmra.mxu2 %v2085_v61  ;;  %v2310_v61 = vrot.slane %v5947_v54, 1  ;;  %v8974_v12 = vadd.f32 %v3563_v21, %v3475_v59  ;;  %v1990_v54 = vpack.c.b16 %v1968_v57, %v1967_v41  ;;  %v4126_v21 = vpack.c.b16 %v4097_v44, %v4096_v42  ;;  %v8993_v58 = vpop.f32.mrf.mxu0 }
 0x2b7   : > { %v2064_v43 = vunpack.c.l.b16 %v1808_v63  ;;  %v5948_v63 = vld [vmem:[#allocation3] sm:$0xff] }
 0x2b8   : > { %v2330_v3 = vsel %vm10521_vm8, %v2310_v61, %v9911_v22  ;;  %v3157_v59 = vpop.f32.mrf.mxu3  ;;  %v1807_v22 = vpack.c.bf16 %v1609_v49, %v1609_v49  ;;  %v2331_v48 = vsel %vm10527_vm11, %v10526_v62, %v2310_v61  ;;  %v10529_v49 = vld [vmem:[#allocation49_spill] sm:$0xff]  ;;  %vm10581_vm8 = vmmov %vm10505_vm0 }
 0x2b9   : > { %v3479_v25 = vpop.f32.mrf.mxu1  ;;  %v2374_v24 = vsel %vm10297_vm5, 0.0, %v2330_v3  ;;  %v2469_v44 = vpack.c.bf16 %v2331_v48, %v2331_v48  ;;  %v3071_v18 = vadd.f32 %v10529_v49, %v8124_v19  ;;  %v5951_v19 = vld [vmem:[#allocation3 + $0x90] sm:$0xff]  ;;  %vm10531_vm5 = vmmov %vm10505_vm0 }
 0x2ba   : > { %3196 = vmatmul.bf16.gmra.mxu3 %v2746_v50  ;;  %v3158_v50 = vadd.f32 %v3157_v59, %v3069_v34  ;;  %v2470_v11 = vpack.c.bf16 %v2374_v24, %v2374_v24  ;;  %v2063_v57 = vunpack.c.l.b16 %v1807_v22  ;;  %v3907_v24 = vpack.c.bf16 %v5948_v63, %v5948_v63  ;;  %vm10589_vm11 = vmmov %vm10505_vm0 }
 0x2bb   : > { %v2725_v59 = vunpack.c.l.b16 %v2469_v44  ;;  %v2312_v62 = vrot.slane %v5951_v19, 1  ;;  %v10532_v44 = vld [vmem:[#allocation53_spill] sm:$0xff] }
 0x2bc   : > { %v3391_v51 = vadd.f32 %v10528_v27, %v3158_v50  ;;  %4555 = vmatmul.bf16.gmra.mxu0 %v4126_v21  ;;  %v2086_v37 = vpack.c.b16 %v2064_v43, %v2063_v57  ;;  %v2726_v34 = vunpack.c.l.b16 %v2470_v11  ;;  %v8999_v50 = vld [vmem:[#allocation3 + $0xc8] sm:$0xff]  ;;  %v4099_v11 = vunpack.c.l.b16 %v3907_v24 }
 0x2bd   : > { %v3565_v53 = vpop.f32.mrf.mxu2  ;;  %v5743_v57 = vld [vmem:[%s6519_s21 + $0x188] sm:$0xff]  ;;  %v3074_v49 = vadd.f32 %v10532_v44, %v8200_v36 }
 0x2be   : > { %v3480_v16 = vadd.f32 %v3479_v25, %v3391_v51  ;;  %v8995_v3 = vadd.f32 %v3565_v53, %v3477_v28  ;;  %v2313_v51 = vrot.slane %v8999_v50, 1  ;;  %v10530_v28 = vld [vmem:[#allocation50_spill] sm:$0xff]  ;;  %v2747_v25 = vpack.c.b16 %v2726_v34, %v2725_v59  ;;  %4454 = vmatpush.bf16.msra.mxu3 %v5743_v57  ;;  %v10547_v50 = vld [vmem:[#allocation63_spill] sm:$0xff] }
 0x2bf   : > { %3518 = vmatmul.bf16.gmra.mxu1 %v1990_v54  ;;  %v5950_v54 = vld [vmem:[#allocation3 + $0x40] sm:$0xff]  ;;  %v10533_v59 = vrot.slane %v8964_v5, 1 }
 0x2c0   : > { %v3159_v61 = vpop.f32.mrf.mxu3  ;;  %v3906_v21 = vpack.c.bf16 %v5950_v54, %v5950_v54  ;;  %v2328_v53 = vsel %vm10531_vm5, %v2312_v62, %v2313_v51  ;;  %v10535_v36 = vld [vmem:[#allocation62_spill] sm:$0xff]  ;;  %vm10591_vm5 = vcmp.lt.s32.totalorder %v6677_v46, 1 }
 0x2c1   : > { %v3481_v41 = vpop.f32.mrf.mxu1  ;;  %v3160_v42 = vadd.f32 %v3159_v61, %v3071_v18  ;;  %v9012_v18 = vpop.f32.mrf.mxu0  ;;  %v2329_v63 = vsel %vm10534_vm14, %v10533_v59, %v2312_v62  ;;  %v5953_v59 = vld [vmem:[#allocation3 + $0x30] sm:$0xff] }
 0x2c2   : > { %v2471_v60 = vpack.c.bf16 %v2329_v63, %v2329_v63  ;;  %v3908_v63 = vpack.c.bf16 %v5953_v59, %v5953_v59 }
 0x2c3   : > { %v3393_v22 = vadd.f32 %v10530_v28, %v3160_v42  ;;  %v10536_v28 = vld [vmem:[#allocation61_spill] sm:$0xff] }
 0x2c5   : > { %v3568_v48 = vpop.f32.mrf.mxu2  ;;  %v3482_v27 = vadd.f32 %v3481_v41, %v3393_v22  ;;  %v10537_v22 = vpack.c.b16 %v10535_v36, %v10536_v28 }
 0x2c6   : > { %3607 = vmatmul.bf16.gmra.mxu2 %v2086_v37  ;;  %v9003_v43 = vadd.f32 %v3568_v48, %v3480_v16  ;;  %v4098_v37 = vunpack.c.l.b16 %v3906_v21  ;;  %v2376_v16 = vsel %vm10352_vm1, 0.0, %v2328_v53  ;;  %v5759_v48 = vld [vmem:[%s6519_s21 + $0x208] sm:$0xff]  ;;  %vm10542_vm1 = vmmov %vm10505_vm0 }
 0x2c7   : > { %4632 = vmatpush.bf16.msra.mxu1 %v5759_v48 }
 0x2c8   : > { %v3162_v34 = vpop.f32.mrf.mxu3  ;;  %v4127_v42 = vpack.c.b16 %v4099_v11, %v4098_v37  ;;  %v10538_v11 = vld [vmem:[#allocation54_spill] sm:$0xff]  ;;  %v10540_v37 = vld [vmem:[#allocation69_spill] sm:$0xff] }
 0x2c9   : > { %v3484_v61 = vpop.f32.mrf.mxu1  ;;  %v3163_v41 = vadd.f32 %v3162_v34, %v3074_v49  ;;  %v3076_v5 = vadd.f32 %v10538_v11, %v8283_v2  ;;  %v10539_v49 = vld [vmem:[#allocation68_spill] sm:$0xff]  ;;  %v4100_v11 = vunpack.c.l.b16 %v3908_v63 }
 0x2ca   : > { %3201 = vmatmul.bf16.gmra.mxu3 %v2747_v25  ;;  %v2472_v25 = vpack.c.bf16 %v2376_v16, %v2376_v16  ;;  %v10541_v34 = vpack.c.b16 %v10539_v49, %v10540_v37  ;;  %v2727_v16 = vunpack.c.l.b16 %v2471_v60  ;;  %v10543_v60 = vld [vmem:[#allocation59_spill] sm:$0xff]  ;;  %v10544_v37 = vld [vmem:[#allocation74_spill] sm:$0xff] }
 0x2cb   : > { %v3396_v24 = vadd.f32 %v8051_v13, %v3163_v41  ;;  %v9029_v13 = vpop.f32.mrf.mxu0  ;;  %v3079_v48 = vadd.f32 %v10543_v60, %v8364_v30  ;;  %v9067_v60 = vld [vmem:[#allocation3 + $0x58] sm:$0xff] }
 0x2cc   : > { %4560 = vmatmul.bf16.gmra.mxu0 %v4127_v42  ;;  %v2728_v53 = vunpack.c.l.b16 %v2472_v25 }
 0x2cd   : > { %v3570_v54 = vpop.f32.mrf.mxu2  ;;  %v3485_v21 = vadd.f32 %v3484_v61, %v3396_v24  ;;  %v9036_v61 = vld [vmem:[#allocation3 + $0x48] sm:$0xff]  ;;  %v5954_v24 = vld [vmem:[#allocation3 + $0x38] sm:$0xff] }
 0x2ce   : > { %v9024_v19 = vadd.f32 %v3570_v54, %v3482_v27  ;;  %v3909_v27 = vpack.c.bf16 %v8350_v17, %v8350_v17  ;;  %v2315_v41 = vrot.slane %v9036_v61, 1  ;;  %v2748_v42 = vpack.c.b16 %v2728_v53, %v2727_v16 }
 0x2cf   : > { %3523 = vmatmul.bf16.gmra.mxu1 %v10537_v22  ;;  %v2314_v36 = vrot.slane %v5954_v24, 1 }
 0x2d0   : > { %v3164_v62 = vpop.f32.mrf.mxu3  ;;  %v4101_v54 = vunpack.c.l.b16 %v3909_v27 }
 0x2d1   : > { %v3486_v57 = vpop.f32.mrf.mxu1  ;;  %v3165_v44 = vadd.f32 %v3164_v62, %v3076_v5  ;;  %v2326_v17 = vsel %vm10542_vm1, %v2314_v36, %v2315_v41 }
 0x2d2   : > { %v2378_v53 = vsel %vm10408_vm7, 0.0, %v2326_v17  ;;  %v3911_v17 = vpack.c.bf16 %v8535_v20, %v8535_v20  ;;  %vm10551_vm7 = vmmov %vm10505_vm0 }
 0x2d3   : > { %v3398_v2 = vadd.f32 %v8133_v6, %v3165_v44  ;;  %v4128_v44 = vpack.c.b16 %v4101_v54, %v4100_v11  ;;  %v2474_v16 = vpack.c.bf16 %v2378_v53, %v2378_v53  ;;  %v3910_v11 = vpack.c.bf16 %v8448_v1, %v8448_v1 }
 0x2d4   : > { %v4103_v20 = vunpack.c.l.b16 %v3911_v17  ;;  %v10558_v17 = vld [vmem:[#allocation71_spill] sm:$0xff] }
 0x2d5   : > { %v3573_v28 = vpop.f32.mrf.mxu2  ;;  %v3487_v22 = vadd.f32 %v3486_v57, %v3398_v2  ;;  %v9052_v57 = vpop.f32.mrf.mxu0  ;;  %v2730_v59 = vunpack.c.l.b16 %v2474_v16 }
 0x2d6   : > { %3612 = vmatmul.bf16.gmra.mxu2 %v10541_v34  ;;  %v9040_v25 = vadd.f32 %v3573_v28, %v3485_v21  ;;  %v2327_v21 = vsel %vm10505_vm0, %v2313_v51, %v2314_v36  ;;  %v10545_v34 = vld [vmem:[#allocation73_spill] sm:$0xff]  ;;  %v10548_v36 = vld [vmem:[#allocation79_spill] sm:$0xff] }
 0x2d7   : > { %v10546_v30 = vpack.c.b16 %v10544_v37, %v10545_v34  ;;  %v2473_v2 = vpack.c.bf16 %v2327_v21, %v2327_v21  ;;  %v5742_v37 = vld [vmem:[%s6519_s21 + $0x180] sm:$0xff] }
 0x2d8   : > { %v3167_v5 = vpop.f32.mrf.mxu3  ;;  %4455 = vmatpush.bf16.msra.mxu3 %v5742_v37 }
 0x2d9   : > { %v3489_v6 = vpop.f32.mrf.mxu1  ;;  %v3168_v62 = vadd.f32 %v3167_v5, %v3079_v48  ;;  %v2729_v54 = vunpack.c.l.b16 %v2473_v2  ;;  %v5956_v5 = vld [vmem:[#allocation3 + $0x68] sm:$0xff] }
 0x2da   : > { %3206 = vmatmul.bf16.gmra.mxu3 %v2748_v42  ;;  %v3081_v42 = vadd.f32 %v10547_v50, %v8442_v32 }
 0x2db   : > { %v3401_v49 = vadd.f32 %v8211_v52, %v3168_v62  ;;  %v10549_v52 = vld [vmem:[#allocation40_spill] sm:$0xff]  ;;  %v2749_v32 = vpack.c.b16 %v2730_v59, %v2729_v54  ;;  %v10557_v54 = vld [vmem:[#allocation23_spill] sm:$0xff] }
 0x2dc   : > { %4565 = vmatmul.bf16.gmra.mxu0 %v4128_v44  ;;  %v10550_v28 = vpack.c.b16 %v10548_v36, %v10549_v52  ;;  %v10554_v59 = vld [vmem:[#allocation80_spill] sm:$0xff] }
 0x2dd   : > { %v3575_v27 = vpop.f32.mrf.mxu2  ;;  %v3490_v40 = vadd.f32 %v3489_v6, %v3401_v49  ;;  %v2316_v6 = vrot.slane %v5956_v5, 1  ;;  %v9073_v62 = vpop.f32.mrf.mxu0  ;;  %v10559_v5 = vld [vmem:[#allocation84_spill] sm:$0xff] }
 0x2de   : > { %v9058_v61 = vadd.f32 %v3575_v27, %v3487_v22  ;;  %v2317_v22 = vrot.slane %v9067_v60, 1  ;;  %v3086_v60 = vadd.f32 %v10558_v17, %v10557_v54  ;;  %v10566_v54 = vld [vmem:[#allocation58_spill] sm:$0xff] }
 0x2df   : > { %3528 = vmatmul.bf16.gmra.mxu1 %v10546_v30  ;;  %v4102_v30 = vunpack.c.l.b16 %v3910_v11  ;;  %v2325_v50 = vsel %vm10553_vm10, %v2315_v41, %v2316_v6 }
 0x2e0   : > { %v3169_v51 = vpop.f32.mrf.mxu3  ;;  %v2324_v49 = vsel %vm10551_vm7, %v2316_v6, %v2317_v22  ;;  %v2475_v38 = vpack.c.bf16 %v2325_v50, %v2325_v50  ;;  %v10560_v6 = vld [vmem:[#allocation85_spill] sm:$0xff]  ;;  %v10564_v50 = vld [vmem:[#allocation78_spill] sm:$0xff] }
 0x2e1   : > { %v3491_v63 = vpop.f32.mrf.mxu1  ;;  %v3170_v24 = vadd.f32 %v3169_v51, %v3081_v42  ;;  %v2380_v27 = vsel %vm7720_vm12, 0.0, %v2324_v49  ;;  %v10555_v51 = vld [vmem:[#allocation81_spill] sm:$0xff]  ;;  %vm10563_vm12 = vmmov %vm10505_vm0 }
 0x2e2   : > { %v9104_v49 = vld [vmem:[#allocation3 + $0x78] sm:$0xff] }
 0x2e3   : > { %v3403_v48 = vadd.f32 %v8295_v33, %v3170_v24  ;;  %v10552_v33 = vld [vmem:[#allocation70_spill] sm:$0xff]  ;;  %v2319_v37 = vrot.slane %v9104_v49, 1 }
 0x2e4   : > { %v3084_v34 = vadd.f32 %v10552_v33, %v8525_v15  ;;  %v2476_v15 = vpack.c.bf16 %v2380_v27, %v2380_v27  ;;  %v10562_v33 = vld [vmem:[#allocation77_spill] sm:$0xff] }
 0x2e5   : > { %v3578_v53 = vpop.f32.mrf.mxu2  ;;  %v3492_v44 = vadd.f32 %v3491_v63, %v3403_v48  ;;  %v10556_v63 = vpack.c.b16 %v10554_v59, %v10555_v51  ;;  %v9097_v48 = vpop.f32.mrf.mxu0 }
 0x2e6   : > { %3617 = vmatmul.bf16.gmra.mxu2 %v10550_v28  ;;  %v9075_v21 = vadd.f32 %v3578_v53, %v3490_v40  ;;  %v4129_v40 = vpack.c.b16 %v4103_v20, %v4102_v30  ;;  %v5758_v28 = vld [vmem:[%s6519_s21 + $0x200] sm:$0xff]  ;;  %v2732_v41 = vunpack.c.l.b16 %v2476_v15  ;;  %v10561_v53 = vpack.c.b16 %v10559_v5, %v10560_v6 }
 0x2e7   : > { %4633 = vmatpush.bf16.msra.mxu1 %v5758_v28  ;;  %v2731_v20 = vunpack.c.l.b16 %v2475_v38  ;;  %v1594_v5 = vrot.slane %v8589_v26, 1  ;;  %v10570_v6 = vld [vmem:[#allocation26_spill] sm:$0xff] }
 0x2e8   : > { %v3172_v1 = vpop.f32.mrf.mxu3 }
 0x2e9   : > { %v3494_v16 = vpop.f32.mrf.mxu1  ;;  %v3173_v2 = vadd.f32 %v3172_v1, %v3084_v34  ;;  %v2750_v30 = vpack.c.b16 %v2732_v41, %v2731_v20  ;;  %v3912_v1 = vpack.c.bf16 %v8616_v9, %v8616_v9  ;;  %v10568_v41 = vld [vmem:[#allocation89_spill] sm:$0xff] }
 0x2ea   : > { %3211 = vmatmul.bf16.gmra.mxu3 %v2749_v32 }
 0x2eb   : > { %v3406_v42 = vadd.f32 %v8375_v45, %v3173_v2  ;;  %v4104_v59 = vunpack.c.l.b16 %v3912_v1 }
 0x2ec   : > { %4570 = vmatmul.bf16.gmra.mxu0 %v4129_v40 }
 0x2ed   : > { %v3580_v24 = vpop.f32.mrf.mxu2  ;;  %v9090_v36 = vadd.f32 %v3494_v16, %v3406_v42  ;;  %v9110_v16 = vld [vmem:[#allocation3 + $0x100] sm:$0xff]  ;;  %v3089_v42 = vadd.f32 %v10564_v50, %v8689_v0  ;;  %v9124_v15 = vpop.f32.mrf.mxu0 }
 0x2ee   : > { %v9092_v52 = vadd.f32 %v3580_v24, %v3492_v44  ;;  %v3913_v44 = vpack.c.bf16 %v8706_v23, %v8706_v23  ;;  %v9113_v27 = vrot.slane %v9110_v16, 1 }
 0x2ef   : > { %3533 = vmatmul.bf16.gmra.mxu1 %v10556_v63 }
 0x2f0   : > { %v3174_v45 = vpop.f32.mrf.mxu3  ;;  %v4105_v40 = vunpack.c.l.b16 %v3913_v44  ;;  %v2322_v23 = vsel %vm10563_vm12, %v9113_v27, %v2319_v37  ;;  %v2323_v28 = vsel %vm10565_vm2, %v2317_v22, %v9113_v27  ;;  %v10571_v44 = vld [vmem:[#allocation99_spill] sm:$0xff] }
 0x2f1   : > { %v3496_v32 = vpop.f32.mrf.mxu1  ;;  %v3175_v11 = vadd.f32 %v3174_v45, %v3086_v60  ;;  %v2382_v9 = vsel %vm8915_vm6, 0.0, %v2322_v23  ;;  %v10567_v60 = vld [vmem:[#allocation90_spill] sm:$0xff]  ;;  %v1593_v49 = vrot.slane %v10571_v44, 1  ;;  %v10573_v23 = vld [vmem:[#allocation93_spill] sm:$0xff] }
 0x2f2   : > { %v4130_v38 = vpack.c.b16 %v4105_v40, %v4104_v59  ;;  %v10569_v45 = vpack.c.b16 %v10567_v60, %v10568_v41  ;;  %v2478_v0 = vpack.c.bf16 %v2382_v9, %v2382_v9  ;;  %v10572_v40 = vld [vmem:[#allocation94_spill] sm:$0xff]  ;;  %v5962_v60 = vld [vmem:[#allocation3 + $0xb0] sm:$0xff] }
 0x2f3   : > { %v3408_v34 = vadd.f32 %v10562_v33, %v3175_v11  ;;  %v10574_v50 = vpack.c.b16 %v10572_v40, %v10573_v23  ;;  %v3914_v41 = vpack.c.bf16 %v5962_v60, %v5962_v60 }
 0x2f4   : > { %v2734_v20 = vunpack.c.l.b16 %v2478_v0 }
 0x2f5   : > { %v9115_v2 = vadd.f32 %v3496_v32, %v3408_v34  ;;  %v2477_v32 = vpack.c.bf16 %v2323_v28, %v2323_v28  ;;  %v9148_v9 = vpop.f32.mrf.mxu0  ;;  %v4106_v7 = vunpack.c.l.b16 %v3914_v41 }
 0x2f6   : > { %3622 = vmatmul.bf16.gmra.mxu2 %v10561_v53  ;;  %v3091_v53 = vadd.f32 %v10570_v6, %v8774_v29  ;;  %v1598_v29 = vsel %vm10575_vm4, %v1593_v49, %v1594_v5 }
 0x2f7   : > { %v2733_v34 = vunpack.c.l.b16 %v2477_v32 }
 0x2f8   : > { %v3177_v51 = vpop.f32.mrf.mxu3 }
 0x2f9   : > { %v3178_v24 = vadd.f32 %v3177_v51, %v3089_v42  ;;  %v5959_v42 = vld [vmem:[#allocation3 + $0x18] sm:$0xff]  ;;  %v5960_v51 = vld [vmem:[#allocation3 + $0x10] sm:$0xff]  ;;  %v2751_v28 = vpack.c.b16 %v2734_v20, %v2733_v34 }
 0x2fa   : > { %3216 = vmatmul.bf16.gmra.mxu3 %v2750_v30  ;;  %v1786_v30 = vpack.c.bf16 %v10571_v44, %v10571_v44  ;;  %v3915_v59 = vpack.c.bf16 %v5959_v42, %v5959_v42  ;;  %v10582_v34 = vld [vmem:[#allocation87_spill] sm:$0xff] }
 0x2fb   : > { %v3411_v17 = vadd.f32 %v10566_v54, %v3178_v24  ;;  %v10576_v24 = vld [vmem:[#allocation67_spill] sm:$0xff] }
 0x2fc   : > { %v3499_v63 = vpop.f32.mrf.mxu1  ;;  %4575 = vmatmul.bf16.gmra.mxu0 %v4130_v38  ;;  %v5961_v54 = vld [vmem:[#allocation3 + $0x48] sm:$0xff]  ;;  %v1978_v32 = vunpack.c.l.b16 %v1786_v30  ;;  %v4107_v6 = vunpack.c.l.b16 %v3915_v59 }
 0x2fd   : > { %v9133_v11 = vadd.f32 %v3499_v63, %v3411_v17  ;;  %v2320_v63 = vrot.slane %v5960_v51, 1  ;;  %v1785_v17 = vpack.c.bf16 %v5961_v54, %v5961_v54  ;;  %v9169_v60 = vpop.f32.mrf.mxu0 }
 0x2ff   : > { %3538 = vmatmul.bf16.gmra.mxu1 %v10569_v45  ;;  %v1722_v45 = vsel %vm8915_vm6, 0.0, %v1598_v29  ;;  %v1977_v23 = vunpack.c.l.b16 %v1785_v17  ;;  %vm10583_vm6 = vmmov %vm10505_vm0 }
 0x300   : > { %v3179_v22 = vpop.f32.mrf.mxu3  ;;  %v2321_v30 = vsel %vm10583_vm6, %v2319_v37, %v2320_v63  ;;  %v10585_v37 = vld [vmem:[#allocation33_spill] sm:$0xff] }
 0x301   : > { %v3180_v1 = vadd.f32 %v3179_v22, %v3091_v53  ;;  %v10577_v53 = vld [vmem:[#allocation37_spill] sm:$0xff]  ;;  %v10579_v22 = vld [vmem:[#allocation83_spill] sm:$0xff]  ;;  %v2479_v54 = vpack.c.bf16 %v2321_v30, %v2321_v30 }
 0x302   : > { %v2352_v44 = vsel %vm10578_vm9, %v2320_v63, %v10577_v53  ;;  %v10580_v40 = vrot.slane %v10579_v22, 1  ;;  %v3096_v63 = vadd.f32 %v10585_v37, %v8851_v8 }
 0x303   : > { %v3413_v38 = vadd.f32 %v10576_v24, %v3180_v1  ;;  %v3094_v1 = vadd.f32 %v10582_v34, %v8832_v10  ;;  %v2384_v29 = vsel %vm8301_vm3, 0.0, %v2352_v44  ;;  %v1995_v24 = vpack.c.b16 %v1978_v32, %v1977_v23  ;;  %v10586_v23 = vld [vmem:[#allocation24_spill] sm:$0xff] }
 0x304   : > { %v3501_v33 = vpop.f32.mrf.mxu1  ;;  %v1599_v20 = vsel %vm10581_vm8, %v10580_v40, %v1593_v49  ;;  %v2480_v17 = vpack.c.bf16 %v2384_v29, %v2384_v29  ;;  %v2735_v44 = vunpack.c.l.b16 %v2479_v54  ;;  %v5963_v40 = vld [vmem:[#allocation3 + $0xf0] sm:$0xff]  ;;  %v1787_v34 = vpack.c.bf16 %v8589_v26, %v8589_v26  ;;  %v5965_v29 = vld [vmem:[#allocation3 + $0x108] sm:$0xff]  ;;  %v10592_v26 = vld [vmem:[#allocation97_spill] sm:$0xff] }
 0x305   : > { %v9153_v0 = vadd.f32 %v3501_v33, %v3413_v38  ;;  %v4131_v38 = vpack.c.b16 %v4107_v6, %v4106_v7  ;;  %v10587_v7 = vrot.slane %v10586_v23, 1  ;;  %v10590_v54 = vld [vmem:[#allocation35_spill] sm:$0xff] }
 0x306   : > { %3627 = vmatmul.bf16.gmra.mxu2 %v10574_v50  ;;  %v1818_v50 = vpack.c.bf16 %v1722_v45, %v1722_v45  ;;  %v2736_v32 = vunpack.c.l.b16 %v2480_v17  ;;  %v3099_v17 = vadd.f32 %v10592_v26, %v8881_v39  ;;  %v10598_v39 = vld [vmem:[#allocation34_spill] sm:$0xff]  ;;  %v5966_v26 = vld [vmem:[#allocation3 + $0x118] sm:$0xff] }
 0x307   : > { %v1628_v8 = vsel %vm10588_vm15, %v9113_v27, %v10587_v7 }
 0x308   : > { %v2074_v10 = vunpack.c.l.b16 %v1818_v50  ;;  %v9184_v50 = vld [vmem:[#allocation3 + $0x60] sm:$0xff]  ;;  %v2752_v30 = vpack.c.b16 %v2736_v32, %v2735_v44 }
 0x30a   : > { %3221 = vmatmul.bf16.gmra.mxu3 %v2751_v28  ;;  %v1817_v28 = vpack.c.bf16 %v1599_v20, %v1599_v20 }
 0x30c   : > { %v3504_v42 = vpop.f32.mrf.mxu1  ;;  %4580 = vmatmul.bf16.gmra.mxu0 %v4131_v38  ;;  %v2073_v45 = vunpack.c.l.b16 %v1817_v28  ;;  %v1979_v28 = vunpack.c.l.b16 %v1787_v34 }
 0x30d   : > { %v3182_v33 = vpop.f32.mrf.mxu3 }
 0x30e   : > { %v3183_v51 = vadd.f32 %v3182_v33, %v3094_v1  ;;  %v2091_v53 = vpack.c.b16 %v2074_v10, %v2073_v45  ;;  %v1788_v1 = vpack.c.bf16 %v9110_v16, %v9110_v16  ;;  %v3707_v33 = vrot.slane %v9184_v50, 7  ;;  %v9204_v45 = vpop.f32.mrf.mxu0 }
 0x30f   : > { %3543 = vmatmul.bf16.gmra.mxu1 %v1995_v24  ;;  %v1597_v16 = vsel %vm10589_vm11, %v1594_v5, %v9113_v27  ;;  %v1724_v24 = vsel %vm8301_vm3, 0.0, %v1628_v8  ;;  %vm10595_vm3 = vmmov %vm10591_vm5 }
 0x310   : > { %v3416_v49 = vadd.f32 %v8780_v35, %v3183_v51  ;;  %v3917_v35 = vpack.c.bf16 %v5963_v40, %v5963_v40  ;;  %v3916_v51 = vpack.c.bf16 %v5965_v29, %v5965_v29  ;;  %v1819_v5 = vpack.c.bf16 %v1597_v16, %v1597_v16  ;;  %v10600_v29 = vld [vmem:[#allocation103_spill] sm:$0xff]  ;;  %vm10699_vm11 = vmmov %vm10595_vm3 }
 0x311   : > { %v1820_v59 = vpack.c.bf16 %v1724_v24, %v1724_v24 }
 0x312   : > { %v9171_v41 = vadd.f32 %v3504_v42, %v3416_v49  ;;  %v1980_v49 = vunpack.c.l.b16 %v1788_v1  ;;  %v4109_v10 = vunpack.c.l.b16 %v3917_v35  ;;  %v4108_v27 = vunpack.c.l.b16 %v3916_v51  ;;  %v10596_v35 = vld [vmem:[#allocation29_spill] sm:$0xff] }
 0x313   : > { %vm10597_vm14 = vnez %v10596_v35  ;;  %v2075_v1 = vunpack.c.l.b16 %v1819_v5  ;;  %v2076_v23 = vunpack.c.l.b16 %v1820_v59 }
 0x314   : > { %v3506_v22 = vpop.f32.mrf.mxu1  ;;  %v4132_v40 = vpack.c.b16 %v4109_v10, %v4108_v27  ;;  %v10601_v27 = vld [vmem:[#allocation22_spill] sm:$0xff] }
 0x315   : > { %v3184_v6 = vpop.f32.mrf.mxu3  ;;  %v2092_v16 = vpack.c.b16 %v2076_v23, %v2075_v1  ;;  %v10603_v1 = vld [vmem:[#allocation106_spill] sm:$0xff]  ;;  %v10604_v23 = vld [vmem:[#allocation39_spill] sm:$0xff] }
 0x316   : > { %v3185_v20 = vadd.f32 %v3184_v6, %v3096_v63  ;;  %3632 = vmatmul.bf16.gmra.mxu2 %v2091_v53  ;;  %v10593_v53 = vld [vmem:[#allocation46_spill] sm:$0xff] }
 0x317   : > { %v10594_v44 = vrot.slane %v10593_v53, 7 }
 0x318   : > { %v3418_v42 = vadd.f32 %v8841_v14, %v3185_v20  ;;  %v3739_v14 = vsel %vm10591_vm5, %v3707_v33, %v10590_v54  ;;  %vm10703_vm5 = vmmov %vm10595_vm3 }
 0x319   : > { %v3738_v32 = vsel %vm10595_vm3, %v10590_v54, %v10594_v44  ;;  %v3740_v20 = vsel %vm10597_vm14, 0.0, %v3739_v14  ;;  %v9218_v54 = vpop.f32.mrf.mxu0 }
 0x31a   : > { %v9195_v38 = vadd.f32 %v3506_v22, %v3418_v42  ;;  %3226 = vmatmul.bf16.gmra.mxu3 %v2752_v30  ;;  %v1996_v22 = vpack.c.b16 %v1980_v49, %v1979_v28  ;;  %v3869_v7 = vpack.c.bf16 %v3738_v32, %v3738_v32  ;;  %v3868_v8 = vpack.c.bf16 %v3740_v20, %v3740_v20  ;;  %v10599_v30 = vld [vmem:[#allocation151_spill] sm:$0xff] }
 0x31b   : > { %v3101_v51 = vadd.f32 %v10600_v29, %v10599_v30 }
 0x31c   : > { %v3509_v63 = vpop.f32.mrf.mxu1  ;;  %4585 = vmatmul.bf16.gmra.mxu0 %v4132_v40  ;;  %v3997_v24 = vunpack.c.l.b16 %v3869_v7  ;;  %v3996_v10 = vunpack.c.l.b16 %v3868_v8  ;;  %v10602_v40 = vld [vmem:[#allocation47_spill] sm:$0xff]  ;;  %v10605_v7 = vpack.c.b16 %v10603_v1, %v10604_v23 }
 0x31d   : > { %v3187_v37 = vpop.f32.mrf.mxu3 }
 0x31e   : > { %v3188_v6 = vadd.f32 %v3187_v37, %v3099_v17  ;;  %v3919_v17 = vpack.c.bf16 %v5966_v26, %v5966_v26  ;;  %v4028_v59 = vpack.c.b16 %v3997_v24, %v3996_v10  ;;  %v5967_v37 = vld [vmem:[#allocation3 + $0xf8] sm:$0xff]  ;;  %v5968_v24 = vld [vmem:[#allocation3 + $0x90] sm:$0xff] }
 0x31f   : > { %3548 = vmatmul.bf16.gmra.mxu1 %v1996_v22 }
 0x320   : > { %v3421_v34 = vadd.f32 %v10598_v39, %v3188_v6  ;;  %v4111_v44 = vunpack.c.l.b16 %v3919_v17  ;;  %v10607_v17 = vld [vmem:[#allocation30_spill] sm:$0xff] }
 0x321   : > { %v9224_v39 = vpop.f32.mrf.mxu0 }
 0x322   : > { %v9214_v42 = vadd.f32 %v3509_v63, %v3421_v34  ;;  %v3918_v63 = vpack.c.bf16 %v5967_v37, %v5967_v37 }
 0x324   : > { %v3511_v49 = vpop.f32.mrf.mxu1  ;;  %v4110_v32 = vunpack.c.l.b16 %v3918_v63 }
 0x325   : > { %v3189_v28 = vpop.f32.mrf.mxu3 }
 0x326   : > { %v3190_v14 = vadd.f32 %v3189_v28, %v3101_v51  ;;  %3637 = vmatmul.bf16.gmra.mxu2 %v2092_v16  ;;  %v4133_v20 = vpack.c.b16 %v4111_v44, %v4110_v32  ;;  %v10606_v51 = vld [vmem:[#allocation112_spill] sm:$0xff]  ;;  %v3921_v28 = vpack.c.bf16 %v5968_v24, %v5968_v24  ;;  %v10610_v32 = vld [vmem:[#allocation121_spill] sm:$0xff] }
 0x328   : > { %v3423_v5 = vadd.f32 %v10601_v27, %v3190_v14  ;;  %v10608_v27 = vld [vmem:[#allocation107_spill] sm:$0xff] }
 0x329   : > { %v9241_v14 = vpop.f32.mrf.mxu0 }
 0x32a   : > { %v9221_v53 = vadd.f32 %v3511_v49, %v3423_v5  ;;  %4456 = vmatmul.bf16.vlgmr.msra.gmra.mxu3 %v4028_v59  ;;  %v5969_v49 = vld [vmem:[#allocation3 + $0x80] sm:$0xff]  ;;  %v10609_v5 = vpack.c.b16 %v10607_v17, %v10608_v27  ;;  %v4113_v59 = vunpack.c.l.b16 %v3921_v28  ;;  %v5971_v28 = vld [vmem:[#allocation3 + $0xc8] sm:$0xff] }
 0x32b   : > { %v3920_v10 = vpack.c.bf16 %v5969_v49, %v5969_v49  ;;  %v10615_v49 = vld [vmem:[#allocation116_spill] sm:$0xff] }
 0x32c   : > { %v3514_v22 = vpop.f32.mrf.mxu1  ;;  %4590 = vmatmul.bf16.gmra.mxu0 %v4133_v20 }
 0x32d   : > { %v3192_v6 = vpop.f32.mrf.mxu3  ;;  %v4112_v37 = vunpack.c.l.b16 %v3920_v10  ;;  %v10616_v10 = vld [vmem:[#allocation115_spill] sm:$0xff] }
 0x32e   : > { %v3193_v35 = vadd.f32 %v3192_v6, %v10602_v40  ;;  %v10617_v17 = vpack.c.b16 %v10615_v49, %v10616_v10  ;;  %v10623_v49 = vld [vmem:[#allocation131_spill] sm:$0xff]  ;;  %v10624_v10 = vld [vmem:[#allocation130_spill] sm:$0xff] }
 0x32f   : > { %4634 = vmatmul.bf16.vlgmr.msra.gmra.mxu1 %v10605_v7 }
 0x330   : > { %v3426_v34 = vadd.f32 %v8946_v31, %v3193_v35  ;;  %v10612_v35 = vld [vmem:[#allocation110_spill] sm:$0xff] }
 0x331   : > { %v9255_v1 = vpop.f32.mrf.mxu0 }
 0x332   : > { %v9230_v8 = vadd.f32 %v3514_v22, %v3426_v34  ;;  %v4134_v22 = vpack.c.b16 %v4113_v59, %v4112_v37 }
 0x334   : > { %v3516_v29 = vpop.f32.mrf.mxu1 }
 0x335   : > { %v3194_v30 = vpop.f32.mrf.mxu3 }
 0x336   : > { %v3195_v16 = vadd.f32 %v3194_v30, %v10606_v51  ;;  %v10614_v30 = vld [vmem:[#allocation127_spill] sm:$0xff]  ;;  %v5970_v51 = vld [vmem:[#allocation3 + $0x38] sm:$0xff] }
 0x338   : > { %v3428_v31 = vadd.f32 %v8969_v4, %v3195_v16  ;;  %v10611_v4 = vld [vmem:[#allocation111_spill] sm:$0xff]  ;;  %v3923_v16 = vpack.c.bf16 %v5970_v51, %v5970_v51 }
 0x339   : > { %v10613_v20 = vpack.c.b16 %v10611_v4, %v10612_v35 }
 0x33a   : > { %v9243_v26 = vadd.f32 %v3516_v29, %v3428_v31  ;;  %4461 = vmatmul.bf16.gmra.mxu3 %v10609_v5  ;;  %v3922_v31 = vpack.c.bf16 %v5971_v28, %v5971_v28  ;;  %v4115_v27 = vunpack.c.l.b16 %v3923_v16  ;;  %v5973_v28 = vld [vmem:[#allocation3 + $0x48] sm:$0xff] }
 0x33c   : > { %v3519_v44 = vpop.f32.mrf.mxu1  ;;  %4595 = vmatmul.bf16.gmra.mxu0 %v4134_v22  ;;  %v4114_v5 = vunpack.c.l.b16 %v3922_v31  ;;  %v3924_v31 = vpack.c.bf16 %v5973_v28, %v5973_v28 }
 0x33d   : > { %v3197_v63 = vpop.f32.mrf.mxu3 }
 0x33e   : > { %v3198_v6 = vadd.f32 %v3197_v63, %v10610_v32  ;;  %v9264_v63 = vpop.f32.mrf.mxu0 }
 0x33f   : > { %4639 = vmatmul.bf16.gmra.mxu1 %v10613_v20 }
 0x340   : > { %v3431_v40 = vadd.f32 %v8993_v58, %v3198_v6  ;;  %v4135_v6 = vpack.c.b16 %v4115_v27, %v4114_v5  ;;  %v4116_v5 = vunpack.c.l.b16 %v3924_v31  ;;  %v5975_v31 = vld [vmem:[#allocation3 + $0x58] sm:$0xff] }
 0x342   : > { %v9253_v34 = vadd.f32 %v3519_v44, %v3431_v40  ;;  %v10618_v44 = vld [vmem:[#allocation134_spill] sm:$0xff] }
 0x343   : > { %v10620_v40 = vld [vmem:[#allocation42_spill] sm:$0xff] }
 0x344   : > { %v3521_v7 = vpop.f32.mrf.mxu1 }
 0x345   : > { %v3199_v23 = vpop.f32.mrf.mxu3 }
 0x346   : > { %v3200_v29 = vadd.f32 %v3199_v23, %v10614_v30  ;;  %v9274_v16 = vpop.f32.mrf.mxu0 }
 0x348   : > { %v3433_v24 = vadd.f32 %v9012_v18, %v3200_v29  ;;  %v10619_v18 = vld [vmem:[#allocation124_spill] sm:$0xff]  ;;  %v5972_v29 = vld [vmem:[#allocation3 + $0x68] sm:$0xff] }
 0x349   : > { %v10621_v4 = vpack.c.b16 %v10619_v18, %v10620_v40  ;;  %v3925_v51 = vpack.c.bf16 %v5972_v29, %v5972_v29  ;;  %v10627_v18 = vld [vmem:[#allocation44_spill] sm:$0xff] }
 0x34a   : > { %v9259_v58 = vadd.f32 %v3521_v7, %v3433_v24  ;;  %4466 = vmatmul.bf16.gmra.mxu3 %v10617_v17  ;;  %v10622_v7 = vld [vmem:[#allocation96_spill] sm:$0xff]  ;;  %v10625_v17 = vpack.c.b16 %v10623_v49, %v10624_v10  ;;  %v3926_v49 = vpack.c.bf16 %v5975_v31, %v5975_v31 }
 0x34b   : > { %v4117_v27 = vunpack.c.l.b16 %v3925_v51  ;;  %v5974_v51 = vld [vmem:[#allocation3 + $0x100] sm:$0xff]  ;;  %v10631_v10 = vld [vmem:[#allocation52_spill] sm:$0xff] }
 0x34c   : > { %v3524_v37 = vpop.f32.mrf.mxu1  ;;  %4600 = vmatmul.bf16.gmra.mxu0 %v4135_v6  ;;  %v5976_v31 = vld [vmem:[#allocation3 + $0x10] sm:$0xff] }
 0x34d   : > { %v3202_v59 = vpop.f32.mrf.mxu3  ;;  %v4136_v6 = vpack.c.b16 %v4117_v27, %v4116_v5 }
 0x34e   : > { %v3203_v32 = vadd.f32 %v3202_v59, %v10618_v44  ;;  %v10626_v44 = vld [vmem:[#allocation51_spill] sm:$0xff] }
 0x34f   : > { %4644 = vmatmul.bf16.gmra.mxu1 %v10621_v4  ;;  %v9287_v4 = vpop.f32.mrf.mxu0 }
 0x350   : > { %v3436_v22 = vadd.f32 %v9029_v13, %v3203_v32 }
 0x352   : > { %v9271_v35 = vadd.f32 %v3524_v37, %v3436_v22 }
 0x354   : > { %v3526_v23 = vpop.f32.mrf.mxu1 }
 0x355   : > { %v3204_v20 = vpop.f32.mrf.mxu3 }
 0x356   : > { %v3205_v30 = vadd.f32 %v3204_v20, %v10622_v7 }
 0x358   : > { %v3438_v24 = vadd.f32 %v9052_v57, %v3205_v30  ;;  %v10628_v57 = vld [vmem:[#allocation82_spill] sm:$0xff]  ;;  %v10630_v30 = vld [vmem:[#allocation57_spill] sm:$0xff] }
 0x359   : > { %v10629_v40 = vpack.c.b16 %v10627_v18, %v10628_v57 }
 0x35a   : > { %v9277_v13 = vadd.f32 %v3526_v23, %v3438_v24  ;;  %4471 = vmatmul.bf16.gmra.mxu3 %v10625_v17  ;;  %v3927_v24 = vpack.c.bf16 %v5974_v51, %v5974_v51  ;;  %v10632_v17 = vld [vmem:[#allocation45_spill] sm:$0xff] }
 0x35b   : > { %v10633_v27 = vpack.c.b16 %v10631_v10, %v10632_v17  ;;  %v5977_v17 = vld [vmem:[#allocation3 + $0x78] sm:$0xff] }
 0x35c   : > { %v3529_v37 = vpop.f32.mrf.mxu1  ;;  %4605 = vmatmul.bf16.gmra.mxu0 %v4136_v6  ;;  %v4119_v5 = vunpack.c.l.b16 %v3927_v24  ;;  %v10634_v6 = vld [vmem:[#allocation139_spill] sm:$0xff]  ;;  %v10638_v24 = vld [vmem:[#allocation140_spill] sm:$0xff] }
 0x35d   : > { %v3207_v59 = vpop.f32.mrf.mxu3 }
 0x35e   : > { %v3208_v32 = vadd.f32 %v3207_v59, %v10626_v44  ;;  %v9298_v59 = vpop.f32.mrf.mxu0 }
 0x35f   : > { %4649 = vmatmul.bf16.gmra.mxu1 %v10629_v40  ;;  %v10636_v40 = vld [vmem:[#allocation101_spill] sm:$0xff] }
 0x360   : > { %v3441_v22 = vadd.f32 %v9073_v62, %v3208_v32 }
 0x362   : > { %v9289_v20 = vadd.f32 %v3529_v37, %v3441_v22  ;;  %v4118_v37 = vunpack.c.l.b16 %v3926_v49  ;;  %v3929_v49 = vpack.c.bf16 %v5976_v31, %v5976_v31 }
 0x364   : > { %v3531_v7 = vpop.f32.mrf.mxu1  ;;  %v4137_v18 = vpack.c.b16 %v4119_v5, %v4118_v37  ;;  %v10639_v5 = vld [vmem:[#allocation136_spill] sm:$0xff]  ;;  %v10640_v37 = vld [vmem:[#allocation27_spill] sm:$0xff] }
 0x365   : > { %v3209_v23 = vpop.f32.mrf.mxu3 }
 0x366   : > { %v3210_v29 = vadd.f32 %v3209_v23, %v10630_v30  ;;  %v9307_v51 = vpop.f32.mrf.mxu0 }
 0x368   : > { %v3443_v28 = vadd.f32 %v9097_v48, %v3210_v29  ;;  %v10635_v48 = vld [vmem:[#allocation102_spill] sm:$0xff] }
 0x369   : > { %v10637_v23 = vpack.c.b16 %v10635_v48, %v10636_v40 }
 0x36a   : > { %v9293_v62 = vadd.f32 %v3531_v7, %v3443_v28  ;;  %4476 = vmatmul.bf16.gmra.mxu3 %v10633_v27  ;;  %v3928_v27 = vpack.c.bf16 %v5977_v17, %v5977_v17 }
 0x36c   : > { %v3534_v32 = vpop.f32.mrf.mxu1  ;;  %4610 = vmatmul.bf16.gmra.mxu0 %v4137_v18 }
 0x36d   : > { %v3212_v44 = vpop.f32.mrf.mxu3 }
 0x36e   : > { %v3213_v22 = vadd.f32 %v3212_v44, %v10634_v6  ;;  %v10641_v44 = vpack.c.b16 %v10639_v5, %v10640_v37  ;;  %v4120_v6 = vunpack.c.l.b16 %v3928_v27  ;;  %v10647_v37 = vld [vmem:[#allocation141_spill] sm:$0xff] }
 0x36f   : > { %4654 = vmatmul.bf16.gmra.mxu1 %v10637_v23  ;;  %v9317_v23 = vpop.f32.mrf.mxu0 }
 0x370   : > { %v3446_v57 = vadd.f32 %v9124_v15, %v3213_v22 }
 0x372   : > { %v9305_v7 = vadd.f32 %v3534_v32, %v3446_v57  ;;  %v4121_v32 = vunpack.c.l.b16 %v3929_v49  ;;  %v10642_v57 = vld [vmem:[#allocation148_spill] sm:$0xff]  ;;  %v10646_v49 = vld [vmem:[#allocation149_spill] sm:$0xff] }
 0x374   : > { %v3536_v29 = vpop.f32.mrf.mxu1  ;;  %v4138_v40 = vpack.c.b16 %v4121_v32, %v4120_v6 }
 0x375   : > { %v3214_v30 = vpop.f32.mrf.mxu3 }
 0x376   : > { %v3215_v28 = vadd.f32 %v3214_v30, %v10638_v24  ;;  %v10644_v24 = vld [vmem:[#allocation72_spill] sm:$0xff] }
 0x378   : > { %v3448_v10 = vadd.f32 %v9148_v9, %v3215_v28  ;;  %v10643_v9 = vld [vmem:[#allocation25_spill] sm:$0xff] }
 0x37a   : > { %v9311_v15 = vadd.f32 %v3536_v29, %v3448_v10  ;;  %4481 = vmatmul.bf16.gmra.mxu3 %v10641_v44  ;;  %v10645_v29 = vpack.c.b16 %v10643_v9, %v10644_v24  ;;  %v10648_v44 = vld [vmem:[#allocation88_spill] sm:$0xff] }
 0x37b   : > { %v10649_v32 = vpack.c.b16 %v10647_v37, %v10648_v44 }
 0x37c   : > { %v3539_v18 = vpop.f32.mrf.mxu1  ;;  %4615 = vmatmul.bf16.gmra.mxu0 %v4138_v40  ;;  %v10652_v40 = vld [vmem:[#allocation142_spill] sm:$0xff] }
 0x37d   : > { %v3217_v22 = vpop.f32.mrf.mxu3 }
 0x37e   : > { %v3218_v48 = vadd.f32 %v3217_v22, %v10642_v57  ;;  %v10650_v22 = vld [vmem:[#allocation150_spill] sm:$0xff] }
 0x37f   : > { %4659 = vmatmul.bf16.gmra.mxu1 %v10645_v29  ;;  %v10654_v29 = vld [vmem:[#allocation92_spill] sm:$0xff] }
 0x380   : > { %v3451_v30 = vadd.f32 %v9169_v60, %v3218_v48 }
 0x382   : > { %v9323_v28 = vadd.f32 %v3539_v18, %v3451_v30  ;;  %v10651_v18 = vld [vmem:[#allocation143_spill] sm:$0xff] }
 0x383   : > { %v10653_v30 = vpack.c.b16 %v10651_v18, %v10652_v40 }
 0x384   : > { %v3541_v10 = vpop.f32.mrf.mxu1 }
 0x385   : > { %v3219_v31 = vpop.f32.mrf.mxu3 }
 0x386   : > { %v3220_v17 = vadd.f32 %v3219_v31, %v10646_v49 }
 0x388   : > { %v3453_v27 = vadd.f32 %v9204_v45, %v3220_v17  ;;  %v10655_v17 = vld [vmem:[#allocation144_spill] sm:$0xff] }
 0x38a   : > { %v9327_v5 = vadd.f32 %v3541_v10, %v3453_v27  ;;  %4486 = vmatmul.bf16.gmra.mxu3 %v10649_v32  ;;  %v10656_v27 = vld [vmem:[#allocation146_spill] sm:$0xff] }
 0x38b   : > { %v10657_v37 = vpack.c.b16 %v10655_v17, %v10656_v27 }
 0x38c   : > { %v3544_v6 = vpop.f32.mrf.mxu1 }
 0x38d   : > { %v3222_v60 = vpop.f32.mrf.mxu3 }
 0x38e   : > { %v3223_v57 = vadd.f32 %v3222_v60, %v10650_v22  ;;  %v10659_v22 = vld [vmem:[#allocation36_spill] sm:$0xff] }
 0x38f   : > { %4664 = vmatmul.bf16.gmra.mxu1 %v10653_v30 }
 0x390   : > { %v3456_v48 = vadd.f32 %v9218_v54, %v3223_v57 }
 0x392   : > { %v9337_v9 = vadd.f32 %v3544_v6, %v3456_v48  ;;  %v10658_v6 = vld [vmem:[#allocation109_spill] sm:$0xff] }
 0x393   : > { %v10660_v57 = vpack.c.b16 %v10658_v6, %v10659_v22 }
 0x394   : > { %v3546_v45 = vpop.f32.mrf.mxu1 }
 0x395   : > { %v3224_v24 = vpop.f32.mrf.mxu3 }
 0x396   : > { %v3225_v31 = vadd.f32 %v3224_v24, %v10654_v29  ;;  %v10662_v29 = vld [vmem:[#allocation114_spill] sm:$0xff] }
 0x398   : > { %v3458_v10 = vadd.f32 %v9224_v39, %v3225_v31 }
 0x39a   : > { %v9341_v49 = vadd.f32 %v3546_v45, %v3458_v10  ;;  %4491 = vmatmul.bf16.gmra.mxu3 %v10657_v37  ;;  %v10661_v45 = vld [vmem:[#allocation113_spill] sm:$0xff] }
 0x39b   : > { %v9364_v37 = vld [vmem:[%s9236_s10] ss:$0 sm:$0xff] }
 0x39c   : > { %v3549_v54 = vpop.f32.mrf.mxu1 }
 0x39d   : > { %v3227_v44 = vpop.f32.mrf.mxu3 }
 0x39e   : > { %v3228_v32 = vadd.f32 %v3227_v44, %v8933_v56  ;;  %v10663_v56 = vpack.c.b16 %v10661_v45, %v10662_v29  ;;  %v10664_v44 = vld [vmem:[#allocation118_spill] sm:$0xff]  ;;  %v10667_v29 = vld [vmem:[#allocation120_spill] sm:$0xff] }
 0x39f   : > { %4669 = vmatmul.bf16.gmra.mxu1 %v10660_v57 }
 0x3a0   : > { %v3461_v60 = vadd.f32 %v9241_v14, %v3228_v32  ;;  %v9360_v14 = vpop.f32.mrf.mxu0  ;;  %v9372_v32 = vld [vmem:[%s4784_s22] ss:$0 sm:$0xff] }
 0x3a2   : > { %v9351_v48 = vadd.f32 %v3549_v54, %v3461_v60  ;;  %v10665_v54 = vld [vmem:[#allocation117_spill] sm:$0xff] }
 0x3a4   : > { %v3551_v18 = vpop.f32.mrf.mxu1 }
 0x3a5   : > { %v3229_v39 = vpop.f32.mrf.mxu3 }
 0x3a6   : > { %v3230_v40 = vadd.f32 %v3229_v39, %v8955_v55  ;;  %v10666_v55 = vpack.c.b16 %v10664_v44, %v10665_v54  ;;  %v9384_v54 = vpop.f32.mrf.mxu2 }
 0x3a8   : > { %v3463_v30 = vadd.f32 %v9255_v1, %v3230_v40  ;;  %v9375_v57 = vpop.f32.mrf.mxu0  ;;  %v4917_v40 = vld [vmem:[#allocation2 + $0xb0] sm:$0xff] }
 0x3aa   : > { %v9355_v24 = vadd.f32 %v3551_v18, %v3463_v30  ;;  %4496 = vmatmul.bf16.gmra.mxu3 %v10663_v56  ;;  %v10668_v56 = vld [vmem:[#allocation119_spill] sm:$0xff] }
 0x3ac   : > { %v4635_v10 = vpop.f32.mrf.mxu1 }
 0x3ad   : > { %v4457_v31 = vpop.f32.mrf.mxu3 }
 0x3ae   : > { %v4547_v17 = vadd.f32 %v9264_v63, %v4457_v31  ;;  %v10669_v31 = vpack.c.b16 %v10667_v29, %v10668_v56 }
 0x3af   : > { %4674 = vmatmul.bf16.gmra.mxu1 %v10666_v55 }
 0x3b0   : > { %v4636_v27 = vadd.f32 %v4635_v10, %v4547_v17 }
 0x3b2   : > { %v4715_v1 = vadd.f32 %v4636_v27, %v8974_v12 }
 0x3b4   : > { %v4752_v60 = vmul.f32 %v9364_v37, %v4715_v1  ;;  %v4637_v22 = vpop.f32.mrf.mxu1  ;;  %v9388_v1 = vpop.f32.mrf.mxu0 }
 0x3b5   : > { %v4459_v6 = vpop.f32.mrf.mxu3 }
 0x3b6   : > { %v4789_v63 = vadd.f32 %v9372_v32, %v4752_v60  ;;  %v4549_v39 = vadd.f32 %v9274_v16, %v4459_v6  ;;  %v4918_v60 = vld [vmem:[#allocation2] sm:$0xff] }
 0x3b8   : > { %vm4821_vm1 = vcmp.ge.f32.partialorder %v4789_v63, 0.0  ;;  %v4853_v18 = vmul.f32 0.1015625, %v4789_v63  ;;  %v4638_v30 = vadd.f32 %v4637_v22, %v4549_v39  ;;  %v10670_v22 = vld [vmem:[#allocation123_spill] sm:$0xff] }
 0x3ba   : > { %v4885_v45 = vsel %vm4821_vm1, %v4789_v63, %v4853_v18  ;;  %v4716_v12 = vadd.f32 %v4638_v30, %v8995_v3  ;;  %4501 = vmatmul.bf16.gmra.mxu3 %v10669_v31  ;;  %v10671_v63 = vld [vmem:[#allocation122_spill] sm:$0xff]  ;;  %v9397_v31 = vpop.f32.mrf.mxu2 }
 0x3bb   : > { %v4949_v10 = vadd.f32 %v4917_v40, %v4885_v45  ;;  %v10672_v39 = vpack.c.b16 %v10670_v22, %v10671_v63 }
 0x3bc   : > { %v4753_v17 = vmul.f32 %v9364_v37, %v4716_v12  ;;  %v4640_v44 = vpop.f32.mrf.mxu1 }
 0x3bd   : > { %4981 = vst [vmem:[#allocation2 + $0xb0] sm:$0xff] %v4949_v10  ;;  %v4462_v27 = vpop.f32.mrf.mxu3 }
 0x3be   : > { %v4790_v16 = vadd.f32 %v9372_v32, %v4753_v17  ;;  %v4552_v55 = vadd.f32 %v9287_v4, %v4462_v27  ;;  %v4919_v17 = vld [vmem:[#allocation2 + $0xd8] sm:$0xff] }
 0x3bf   : > { %4679 = vmatmul.bf16.gmra.mxu1 %v10672_v39 }
 0x3c0   : > { %vm4822_vm0 = vcmp.ge.f32.partialorder %v4790_v16, 0.0  ;;  %v4854_v3 = vmul.f32 0.1015625, %v4790_v16  ;;  %v4641_v6 = vadd.f32 %v4640_v44, %v4552_v55  ;;  %v9399_v44 = vpop.f32.mrf.mxu0  ;;  %v10673_v55 = vld [vmem:[#allocation126_spill] sm:$0xff] }
 0x3c2   : > { %v4886_v18 = vsel %vm4822_vm0, %v4790_v16, %v4854_v3  ;;  %v4717_v40 = vadd.f32 %v4641_v6, %v9003_v43  ;;  %v10674_v3 = vld [vmem:[#allocation125_spill] sm:$0xff] }
 0x3c3   : > { %v4950_v30 = vadd.f32 %v4918_v60, %v4886_v18  ;;  %v10675_v60 = vpack.c.b16 %v10673_v55, %v10674_v3 }
 0x3c4   : > { %v4754_v45 = vmul.f32 %v9364_v37, %v4717_v40  ;;  %v4642_v29 = vpop.f32.mrf.mxu1 }
 0x3c5   : > { %4982 = vst [vmem:[#allocation2] sm:$0xff] %v4950_v30  ;;  %v4464_v12 = vpop.f32.mrf.mxu3  ;;  %v4920_v30 = vld [vmem:[#allocation2 + $0x18] sm:$0xff] }
 0x3c6   : > { %v4791_v4 = vadd.f32 %v9372_v32, %v4754_v45  ;;  %v4554_v56 = vadd.f32 %v9298_v59, %v4464_v12  ;;  %v10676_v12 = vld [vmem:[#allocation133_spill] sm:$0xff] }
 0x3c8   : > { %vm4823_vm7 = vcmp.ge.f32.partialorder %v4791_v4, 0.0  ;;  %v4855_v10 = vmul.f32 0.1015625, %v4791_v4  ;;  %v4643_v27 = vadd.f32 %v4642_v29, %v4554_v56 }
 0x3ca   : > { %v4887_v16 = vsel %vm4823_vm7, %v4791_v4, %v4855_v10  ;;  %v4718_v43 = vadd.f32 %v4643_v27, %v9024_v19  ;;  %4506 = vmatmul.bf16.gmra.mxu3 %v10675_v60  ;;  %v10677_v19 = vld [vmem:[#allocation132_spill] sm:$0xff]  ;;  %v9411_v4 = vpop.f32.mrf.mxu2  ;;  %v9414_v27 = vpop.f32.mrf.mxu0 }
 0x3cb   : > { %v4951_v6 = vadd.f32 %v4919_v17, %v4887_v16  ;;  %v10678_v29 = vpack.c.b16 %v10676_v12, %v10677_v19 }
 0x3cc   : > { %v4755_v22 = vmul.f32 %v9364_v37, %v4718_v43  ;;  %v4645_v63 = vpop.f32.mrf.mxu1 }
 0x3cd   : > { %4983 = vst [vmem:[#allocation2 + $0xd8] sm:$0xff] %v4951_v6  ;;  %v4467_v59 = vpop.f32.mrf.mxu3  ;;  %v4921_v6 = vld [vmem:[#allocation2 + $0x50] sm:$0xff] }
 0x3ce   : > { %v4792_v39 = vadd.f32 %v9372_v32, %v4755_v22  ;;  %v4557_v18 = vadd.f32 %v9307_v51, %v4467_v59 }
 0x3cf   : > { %4684 = vmatmul.bf16.gmra.mxu1 %v10678_v29 }
 0x3d0   : > { %vm4824_vm10 = vcmp.ge.f32.partialorder %v4792_v39, 0.0  ;;  %v4856_v40 = vmul.f32 0.1015625, %v4792_v39  ;;  %v4646_v45 = vadd.f32 %v4645_v63, %v4557_v18 }
 0x3d2   : > { %v4888_v56 = vsel %vm4824_vm10, %v4792_v39, %v4856_v40  ;;  %v4719_v10 = vadd.f32 %v4646_v45, %v9040_v25  ;;  %v10679_v25 = vld [vmem:[#allocation32_spill] sm:$0xff]  ;;  %v10680_v39 = vld [vmem:[#allocation135_spill] sm:$0xff] }
 0x3d3   : > { %v4952_v17 = vadd.f32 %v4920_v30, %v4888_v56  ;;  %v10681_v18 = vpack.c.b16 %v10679_v25, %v10680_v39  ;;  %v9423_v30 = vpop.f32.mrf.mxu2 }
 0x3d4   : > { %v4756_v16 = vmul.f32 %v9364_v37, %v4719_v10  ;;  %v4647_v43 = vpop.f32.mrf.mxu1  ;;  %v4922_v10 = vld [vmem:[#allocation2 + $0x68] sm:$0xff] }
 0x3d5   : > { %4984 = vst [vmem:[#allocation2 + $0x18] sm:$0xff] %v4952_v17  ;;  %v4469_v51 = vpop.f32.mrf.mxu3 }
 0x3d6   : > { %v4793_v55 = vadd.f32 %v9372_v32, %v4756_v16  ;;  %v4559_v3 = vadd.f32 %v9317_v23, %v4469_v51  ;;  %v9426_v23 = vpop.f32.mrf.mxu0  ;;  %v10682_v16 = vld [vmem:[#allocation64_spill] sm:$0xff] }
 0x3d7   : > { %v10683_v51 = vld [vmem:[#allocation104_spill] sm:$0xff] }
 0x3d8   : > { %vm4825_vm12 = vcmp.ge.f32.partialorder %v4793_v55, 0.0  ;;  %v4857_v60 = vmul.f32 0.1015625, %v4793_v55  ;;  %v4648_v22 = vadd.f32 %v4647_v43, %v4559_v3  ;;  %v10684_v43 = vpack.c.b16 %v10682_v16, %v10683_v51 }
 0x3da   : > { %v4889_v59 = vsel %vm4825_vm12, %v4793_v55, %v4857_v60  ;;  %v4720_v63 = vadd.f32 %v4648_v22, %v9058_v61  ;;  %4511 = vmatmul.bf16.gmra.mxu3 %v10681_v18 }
 0x3db   : > { %v4953_v40 = vadd.f32 %v4921_v6, %v4889_v59 }
 0x3dc   : > { %v4757_v45 = vmul.f32 %v9364_v37, %v4720_v63  ;;  %v4650_v19 = vpop.f32.mrf.mxu1  ;;  %v9435_v63 = vpop.f32.mrf.mxu2 }
 0x3dd   : > { %4985 = vst [vmem:[#allocation2 + $0x50] sm:$0xff] %v4953_v40  ;;  %v4472_v12 = vpop.f32.mrf.mxu3  ;;  %v4923_v40 = vld [vmem:[#allocation2 + $0x30] sm:$0xff] }
 0x3de   : > { %v4794_v29 = vadd.f32 %v9372_v32, %v4757_v45  ;;  %v4562_v56 = vadd.f32 %v9360_v14, %v4472_v12  ;;  %v9439_v39 = vpop.f32.mrf.mxu0 }
 0x3df   : > { %4689 = vmatmul.bf16.gmra.mxu1 %v10684_v43  ;;  %v3584_v43 = vadd.f32 %v9384_v54, %v9090_v36 }
 0x3e0   : > { %vm4826_vm2 = vcmp.ge.f32.partialorder %v4794_v29, 0.0  ;;  %v4858_v61 = vmul.f32 0.1015625, %v4794_v29  ;;  %v4651_v17 = vadd.f32 %v4650_v19, %v4562_v56  ;;  %v10685_v19 = vld [vmem:[#allocation56_spill] sm:$0xff] }
 0x3e2   : > { %v4890_v55 = vsel %vm4826_vm2, %v4794_v29, %v4858_v61  ;;  %v4721_v3 = vadd.f32 %v4651_v17, %v9075_v21  ;;  %v10686_v29 = vld [vmem:[#allocation48_spill] sm:$0xff] }
 0x3e3   : > { %v4954_v60 = vadd.f32 %v4922_v10, %v4890_v55  ;;  %v10687_v56 = vpack.c.b16 %v10685_v19, %v10686_v29  ;;  %v4925_v29 = vld [vmem:[#allocation2 + $0x80] sm:$0xff] }
 0x3e4   : > { %v4758_v6 = vmul.f32 %v9364_v37, %v4721_v3  ;;  %v4652_v59 = vpop.f32.mrf.mxu1  ;;  %v9450_v55 = vpop.f32.mrf.mxu2  ;;  %v4924_v3 = vld [vmem:[#allocation2 + $0x48] sm:$0xff] }
 0x3e5   : > { %4986 = vst [vmem:[#allocation2 + $0x68] sm:$0xff] %v4954_v60  ;;  %v4474_v22 = vpop.f32.mrf.mxu3 }
 0x3e6   : > { %v4795_v14 = vadd.f32 %v9372_v32, %v4758_v6  ;;  %v4564_v25 = vadd.f32 %v9375_v57, %v4474_v22  ;;  %v10688_v6 = vld [vmem:[#allocation138_spill] sm:$0xff]  ;;  %v10689_v22 = vld [vmem:[#allocation137_spill] sm:$0xff] }
 0x3e8   : > { %vm4827_vm4 = vcmp.ge.f32.partialorder %v4795_v14, 0.0  ;;  %v4859_v18 = vmul.f32 0.1015625, %v4795_v14  ;;  %v4653_v45 = vadd.f32 %v4652_v59, %v4564_v25  ;;  %v10690_v59 = vpack.c.b16 %v10688_v6, %v10689_v22 }
 0x3e9   : > { %v3589_v6 = vadd.f32 %v9411_v4, %v9133_v11  ;;  %v3931_v4 = vpack.c.bf16 %v9184_v50, %v9184_v50  ;;  %v3594_v50 = vadd.f32 %v9435_v63, %v9171_v41 }
 0x3ea   : > { %v4891_v12 = vsel %vm4827_vm4, %v4795_v14, %v4859_v18  ;;  %v4722_v21 = vadd.f32 %v4653_v45, %v9092_v52  ;;  %4516 = vmatmul.bf16.gmra.mxu3 %v10687_v56  ;;  %v9455_v14 = vpop.f32.mrf.mxu0 }
 0x3eb   : > { %v4955_v61 = vadd.f32 %v4923_v40, %v4891_v12 }
 0x3ec   : > { %v4759_v10 = vmul.f32 %v9364_v37, %v4722_v21  ;;  %v4655_v16 = vpop.f32.mrf.mxu1  ;;  %v3586_v21 = vadd.f32 %v9397_v31, %v9115_v2 }
 0x3ed   : > { %4987 = vst [vmem:[#allocation2 + $0x30] sm:$0xff] %v4955_v61  ;;  %v4477_v17 = vpop.f32.mrf.mxu3  ;;  %v9462_v61 = vpop.f32.mrf.mxu2 }
 0x3ee   : > { %v4796_v57 = vadd.f32 %v9372_v32, %v4759_v10  ;;  %v4567_v51 = vadd.f32 %v9388_v1, %v4477_v17 }
 0x3ef   : > { %4694 = vmatmul.bf16.gmra.mxu1 %v10690_v59  ;;  %v4926_v59 = vld [vmem:[#allocation2 + $0x88] sm:$0xff] }
 0x3f0   : > { %vm4828_vm9 = vcmp.ge.f32.partialorder %v4796_v57, 0.0  ;;  %v4860_v52 = vmul.f32 0.1015625, %v4796_v57  ;;  %v4656_v60 = vadd.f32 %v4655_v16, %v4567_v51  ;;  %v10691_v16 = vld [vmem:[#allocation28_spill] sm:$0xff] }
 0x3f2   : > { %v4892_v25 = vsel %vm4828_vm9, %v4796_v57, %v4860_v52  ;;  %v4723_v18 = vadd.f32 %v4656_v60, %v3584_v43  ;;  %v10692_v57 = vld [vmem:[#allocation66_spill] sm:$0xff]  ;;  %v9467_v52 = vpop.f32.mrf.mxu0 }
 0x3f3   : > { %v4956_v40 = vadd.f32 %v4924_v3, %v4892_v25  ;;  %v10693_v51 = vpack.c.b16 %v10691_v16, %v10692_v57 }
 0x3f4   : > { %v4760_v1 = vmul.f32 %v9364_v37, %v4723_v18  ;;  %v4657_v36 = vpop.f32.mrf.mxu1  ;;  %v10694_v18 = vld [vmem:[#allocation147_spill] sm:$0xff] }
 0x3f5   : > { %4988 = vst [vmem:[#allocation2 + $0x48] sm:$0xff] %v4956_v40  ;;  %v4479_v45 = vpop.f32.mrf.mxu3  ;;  %v10695_v40 = vld [vmem:[#allocation145_spill] sm:$0xff] }
 0x3f6   : > { %v4797_v54 = vadd.f32 %v9372_v32, %v4760_v1  ;;  %v4569_v12 = vadd.f32 %v9399_v44, %v4479_v45  ;;  %v10696_v1 = vpack.c.b16 %v10694_v18, %v10695_v40  ;;  %v10700_v18 = vld [vmem:[#allocation75_spill] sm:$0xff]  ;;  %v10701_v40 = vld [vmem:[#allocation76_spill] sm:$0xff] }
 0x3f8   : > { %vm4829_vm8 = vcmp.ge.f32.partialorder %v4797_v54, 0.0  ;;  %v4861_v19 = vmul.f32 0.1015625, %v4797_v54  ;;  %v4658_v56 = vadd.f32 %v4657_v36, %v4569_v12  ;;  %v9477_v12 = vpop.f32.mrf.mxu2 }
 0x3fa   : > { %v4893_v10 = vsel %vm4829_vm8, %v4797_v54, %v4861_v19  ;;  %v4724_v17 = vadd.f32 %v4658_v56, %v3586_v21  ;;  %4521 = vmatmul.bf16.gmra.mxu3 %v10693_v51  ;;  %v4123_v51 = vunpack.c.l.b16 %v3931_v4 }
 0x3fb   : > { %v4957_v43 = vadd.f32 %v4925_v29, %v4893_v10  ;;  %v5978_v29 = vld [vmem:[#allocation3 + $0xa8] sm:$0xff]  ;;  %v9482_v10 = vpop.f32.mrf.mxu0 }
 0x3fc   : > { %v4761_v44 = vmul.f32 %v9364_v37, %v4724_v17  ;;  %v4660_v2 = vpop.f32.mrf.mxu1  ;;  %v3930_v11 = vpack.c.bf16 %v5978_v29, %v5978_v29  ;;  %v3706_v56 = vrot.slane %v5978_v29, 7 }
 0x3fd   : > { %4989 = vst [vmem:[#allocation2 + $0x80] sm:$0xff] %v4957_v43  ;;  %v4482_v3 = vpop.f32.mrf.mxu3  ;;  %v3591_v43 = vadd.f32 %v9423_v30, %v9153_v0 }
 0x3fe   : > { %v4798_v31 = vadd.f32 %v9372_v32, %v4761_v44  ;;  %v4572_v60 = vadd.f32 %v9414_v27, %v4482_v3  ;;  %v4122_v57 = vunpack.c.l.b16 %v3930_v11  ;;  %v4927_v3 = vld [vmem:[#allocation2 + $0xe8] sm:$0xff]  ;;  %v3708_v30 = vsel %vm10703_vm5, %v3706_v56, %v3707_v33 }
 0x3ff   : > { %4699 = vmatmul.bf16.gmra.mxu1 %v10696_v1  ;;  %v3899_v4 = vpack.c.bf16 %v3708_v30, %v3708_v30  ;;  %v3596_v30 = vadd.f32 %v9450_v55, %v9195_v38 }
 0x400   : > { %vm4830_vm6 = vcmp.ge.f32.partialorder %v4798_v31, 0.0  ;;  %v4862_v22 = vmul.f32 0.1015625, %v4798_v31  ;;  %v4661_v25 = vadd.f32 %v4660_v2, %v4572_v60  ;;  %v10697_v60 = vld [vmem:[#allocation31_spill] sm:$0xff] }
 0x402   : > { %v4894_v45 = vsel %vm4830_vm6, %v4798_v31, %v4862_v22  ;;  %v4725_v36 = vadd.f32 %v4661_v25, %v3589_v6  ;;  %v4139_v31 = vpack.c.b16 %v4123_v51, %v4122_v57  ;;  %v10698_v6 = vrot.slane %v10697_v60, 7  ;;  %v10705_v57 = vld [vmem:[#allocation98_spill] sm:$0xff] }
 0x403   : > { %v4958_v54 = vadd.f32 %v4926_v59, %v4894_v45  ;;  %v10706_v51 = vpack.c.b16 %v8944_v47, %v10705_v57  ;;  %v3599_v57 = vadd.f32 %v9462_v61, %v9214_v42  ;;  %v3601_v42 = vadd.f32 %v9477_v12, %v9221_v53 }
 0x404   : > { %v4762_v21 = vmul.f32 %v9364_v37, %v4725_v36  ;;  %v4662_v19 = vpop.f32.mrf.mxu1  ;;  %v3709_v22 = vsel %vm10699_vm11, %v10698_v6, %v3706_v56  ;;  %4620 = vmatmul.bf16.gmra.mxu0 %v4139_v31  ;;  %v4928_v56 = vld [vmem:[#allocation2 + $0xb8] sm:$0xff]  ;;  %v10709_v6 = vld [vmem:[#allocation86_spill] sm:$0xff] }
 0x405   : > { %4990 = vst [vmem:[#allocation2 + $0x88] sm:$0xff] %v4958_v54  ;;  %v4484_v27 = vpop.f32.mrf.mxu3  ;;  %v3770_v36 = vsel %vm10440_vm13, 0.0, %v3709_v22  ;;  %v10707_v31 = vld [vmem:[#allocation128_spill] sm:$0xff]  ;;  %v10710_v22 = vrot.slane %v10709_v6, 1  ;;  %vm10711_vm13 = vcmp.lt.s32.totalorder %v6677_v46, 7 }
 0x406   : > { %v4799_v17 = vadd.f32 %v9372_v32, %v4762_v21  ;;  %v4574_v16 = vadd.f32 %v9426_v23, %v4484_v27  ;;  %v10702_v23 = vpack.c.b16 %v10700_v18, %v10701_v40  ;;  %v9502_v27 = vpop.f32.mrf.mxu2  ;;  %v3898_v11 = vpack.c.bf16 %v3770_v36, %v3770_v36  ;;  %v4929_v36 = vld [vmem:[#allocation2 + $0x60] sm:$0xff] }
 0x407   : > { %v10708_v60 = vrot.slane %v10707_v31, 1  ;;  %v3604_v53 = vadd.f32 %v9502_v27, %v9230_v8 }
 0x408   : > { %vm4831_vm15 = vcmp.ge.f32.partialorder %v4799_v17, 0.0  ;;  %v4863_v44 = vmul.f32 0.1015625, %v4799_v17  ;;  %v4663_v2 = vadd.f32 %v4662_v19, %v4574_v16 }
 0x409   : > { %v3804_v41 = vsel %vm10711_vm13, %v10710_v22, %v10708_v60 }
 0x40a   : > { %v4895_v59 = vsel %vm4831_vm15, %v4799_v17, %v4863_v44  ;;  %v4726_v25 = vadd.f32 %v4663_v2, %v3591_v43  ;;  %4526 = vmatmul.bf16.gmra.mxu3 %v10702_v23  ;;  %v9508_v17 = vpop.f32.mrf.mxu0  ;;  %v4026_v2 = vunpack.c.l.b16 %v3898_v11  ;;  %v3962_v40 = vpack.c.bf16 %v3804_v41, %v3804_v41  ;;  %v10712_v23 = vld [vmem:[#allocation55_spill] sm:$0xff] }
 0x40b   : > { %v4959_v1 = vadd.f32 %v4927_v3, %v4895_v59 }
 0x40c   : > { %v4763_v0 = vmul.f32 %v9364_v37, %v4726_v25  ;;  %v4665_v21 = vpop.f32.mrf.mxu1  ;;  %v4218_v11 = vunpack.c.l.b16 %v3962_v40 }
 0x40d   : > { %4991 = vst [vmem:[#allocation2 + $0xe8] sm:$0xff] %v4959_v1  ;;  %v4487_v54 = vpop.f32.mrf.mxu3  ;;  %v3963_v1 = vpack.c.bf16 %v10712_v23, %v10712_v23 }
 0x40e   : > { %v4800_v19 = vadd.f32 %v9372_v32, %v4763_v0  ;;  %v4577_v29 = vadd.f32 %v9439_v39, %v4487_v54  ;;  %v4027_v39 = vunpack.c.l.b16 %v3899_v4  ;;  %v9526_v45 = vpop.f32.mrf.mxu2 }
 0x40f   : > { %4704 = vmatmul.bf16.gmra.mxu1 %v10706_v51 }
 0x410   : > { %vm4832_vm3 = vcmp.ge.f32.partialorder %v4800_v19, 0.0  ;;  %v4864_v33 = vmul.f32 0.1015625, %v4800_v19  ;;  %v4666_v16 = vadd.f32 %v4665_v21, %v4577_v29  ;;  %v4043_v0 = vpack.c.b16 %v4027_v39, %v4026_v2 }
 0x412   : > { %v4896_v43 = vsel %vm4832_vm3, %v4800_v19, %v4864_v33  ;;  %v4727_v44 = vadd.f32 %v4666_v16, %v3594_v50  ;;  %v4588_v21 = vpop.f32.mrf.mxu0 }
 0x413   : > { %v4960_v3 = vadd.f32 %v4928_v56, %v4896_v43  ;;  %v4930_v43 = vld [vmem:[#allocation2 + $0xf0] sm:$0xff] }
 0x414   : > { %v4764_v63 = vmul.f32 %v9364_v37, %v4727_v44  ;;  %v4667_v25 = vpop.f32.mrf.mxu1 }
 0x415   : > { %4992 = vst [vmem:[#allocation2 + $0xb8] sm:$0xff] %v4960_v3  ;;  %v4489_v59 = vpop.f32.mrf.mxu3 }
 0x416   : > { %v4801_v47 = vadd.f32 %v9372_v32, %v4764_v63  ;;  %v4579_v18 = vadd.f32 %v9455_v14, %v4489_v59  ;;  %v4219_v14 = vunpack.c.l.b16 %v3963_v1  ;;  %v3608_v3 = vpop.f32.mrf.mxu2  ;;  %v4931_v59 = vld [vmem:[#allocation2 + $0x8] sm:$0xff] }
 0x418   : > { %vm4833_vm14 = vcmp.ge.f32.partialorder %v4801_v47, 0.0  ;;  %v4865_v46 = vmul.f32 0.1015625, %v4801_v47  ;;  %v4668_v54 = vadd.f32 %v4667_v25, %v4579_v18  ;;  %v4235_v16 = vpack.c.b16 %v4219_v14, %v4218_v11 }
 0x41a   : > { %v4897_v19 = vsel %vm4833_vm14, %v4801_v47, %v4865_v46  ;;  %v4728_v29 = vadd.f32 %v4668_v54, %v3596_v30  ;;  %4531 = vmatmul.bf16.gmra.mxu3 %v4043_v0  ;;  %v4591_v60 = vpop.f32.mrf.mxu0  ;;  %v4932_v54 = vld [vmem:[#allocation2 + $0x78] sm:$0xff] }
 0x41b   : > { %v4961_v4 = vadd.f32 %v4929_v36, %v4897_v19 }
 0x41c   : > { %v4765_v50 = vmul.f32 %v9364_v37, %v4728_v29  ;;  %v4670_v56 = vpop.f32.mrf.mxu1 }
 0x41d   : > { %4993 = vst [vmem:[#allocation2 + $0x60] sm:$0xff] %v4961_v4  ;;  %v4492_v33 = vpop.f32.mrf.mxu3 }
 0x41e   : > { %v4802_v38 = vadd.f32 %v9372_v32, %v4765_v50  ;;  %v4582_v55 = vadd.f32 %v9467_v52, %v4492_v33  ;;  %v3610_v23 = vpop.f32.mrf.mxu2 }
 0x41f   : > { %4709 = vmatmul.bf16.gmra.mxu1 %v4235_v16  ;;  %v4933_v16 = vld [vmem:[#allocation2 + $0x38] sm:$0xff] }
 0x420   : > { %vm4834_vm1 = vcmp.ge.f32.partialorder %v4802_v38, 0.0  ;;  %v4866_v51 = vmul.f32 0.1015625, %v4802_v38  ;;  %v4671_v44 = vadd.f32 %v4670_v56, %v4582_v55 }
 0x422   : > { %v4898_v2 = vsel %vm4834_vm1, %v4802_v38, %v4866_v51  ;;  %v4729_v39 = vadd.f32 %v4671_v44, %v3599_v57  ;;  %v4593_v46 = vpop.f32.mrf.mxu0 }
 0x423   : > { %v4962_v31 = vadd.f32 %v4930_v43, %v4898_v2 }
 0x424   : > { %v4766_v6 = vmul.f32 %v9364_v37, %v4729_v39  ;;  %v4672_v41 = vpop.f32.mrf.mxu1 }
 0x425   : > { %4994 = vst [vmem:[#allocation2 + $0xf0] sm:$0xff] %v4962_v31  ;;  %v4494_v22 = vpop.f32.mrf.mxu3 }
 0x426   : > { %v4803_v52 = vadd.f32 %v9372_v32, %v4766_v6  ;;  %v4584_v63 = vadd.f32 %v9482_v10, %v4494_v22  ;;  %v3613_v56 = vpop.f32.mrf.mxu2 }
 0x428   : > { %vm4835_vm0 = vcmp.ge.f32.partialorder %v4803_v52, 0.0  ;;  %v4867_v61 = vmul.f32 0.1015625, %v4803_v52  ;;  %v4673_v25 = vadd.f32 %v4672_v41, %v4584_v63 }
 0x42a   : > { %v4899_v47 = vsel %vm4835_vm0, %v4803_v52, %v4867_v61  ;;  %v4730_v18 = vadd.f32 %v4673_v25, %v3601_v42  ;;  %v4596_v8 = vpop.f32.mrf.mxu0 }
 0x42b   : > { %v4963_v40 = vadd.f32 %v4931_v59, %v4899_v47 }
 0x42c   : > { %v4767_v1 = vmul.f32 %v9364_v37, %v4730_v18  ;;  %v4675_v30 = vpop.f32.mrf.mxu1 }
 0x42d   : > { %4995 = vst [vmem:[#allocation2 + $0x8] sm:$0xff] %v4963_v40  ;;  %v4497_v0 = vpop.f32.mrf.mxu3 }
 0x42e   : > { %v4804_v36 = vadd.f32 %v9372_v32, %v4767_v1  ;;  %v4587_v10 = vadd.f32 %v9508_v17, %v4497_v0  ;;  %v3606_v17 = vadd.f32 %v9526_v45, %v9243_v26  ;;  %v3615_v41 = vpop.f32.mrf.mxu2  ;;  %v4934_v45 = vld [vmem:[#allocation2 + $0x58] sm:$0xff] }
 0x430   : > { %vm4836_vm7 = vcmp.ge.f32.partialorder %v4804_v36, 0.0  ;;  %v4868_v12 = vmul.f32 0.1015625, %v4804_v36  ;;  %v4676_v19 = vadd.f32 %v4675_v30, %v4587_v10 }
 0x432   : > { %v4900_v29 = vsel %vm4836_vm7, %v4804_v36, %v4868_v12  ;;  %v4731_v11 = vadd.f32 %v4676_v19, %v3604_v53  ;;  %v4598_v63 = vpop.f32.mrf.mxu0 }
 0x433   : > { %v4964_v14 = vadd.f32 %v4932_v54, %v4900_v29 }
 0x434   : > { %v4768_v4 = vmul.f32 %v9364_v37, %v4731_v11  ;;  %v4677_v33 = vpop.f32.mrf.mxu1 }
 0x435   : > { %4996 = vst [vmem:[#allocation2 + $0x78] sm:$0xff] %v4964_v14  ;;  %v4499_v50 = vpop.f32.mrf.mxu3 }
 0x436   : > { %v4805_v38 = vadd.f32 %v9372_v32, %v4768_v4  ;;  %v4589_v55 = vadd.f32 %v4588_v21, %v4499_v50  ;;  %v3609_v21 = vadd.f32 %v3608_v3, %v9253_v34  ;;  %v4935_v3 = vld [vmem:[#allocation2 + $0x40] sm:$0xff]  ;;  %v3618_v30 = vpop.f32.mrf.mxu2 }
 0x438   : > { %vm4837_vm10 = vcmp.ge.f32.partialorder %v4805_v38, 0.0  ;;  %v4869_v27 = vmul.f32 0.1015625, %v4805_v38  ;;  %v4678_v57 = vadd.f32 %v4677_v33, %v4589_v55 }
 0x43a   : > { %v4901_v51 = vsel %vm4837_vm10, %v4805_v38, %v4869_v27  ;;  %v4732_v43 = vadd.f32 %v4678_v57, %v3606_v17  ;;  %v4601_v12 = vpop.f32.mrf.mxu0 }
 0x43b   : > { %v4965_v44 = vadd.f32 %v4933_v16, %v4901_v51 }
 0x43c   : > { %v4769_v2 = vmul.f32 %v9364_v37, %v4732_v43  ;;  %v4680_v31 = vpop.f32.mrf.mxu1 }
 0x43d   : > { %4997 = vst [vmem:[#allocation2 + $0x38] sm:$0xff] %v4965_v44  ;;  %v4502_v39 = vpop.f32.mrf.mxu3 }
 0x43e   : > { %v4806_v6 = vadd.f32 %v9372_v32, %v4769_v2  ;;  %v4592_v22 = vadd.f32 %v4591_v60, %v4502_v39  ;;  %v3611_v60 = vadd.f32 %v3610_v23, %v9259_v58  ;;  %v4936_v23 = vld [vmem:[#allocation2 + $0xc8] sm:$0xff]  ;;  %v3620_v55 = vpop.f32.mrf.mxu2 }
 0x440   : > { %vm4838_vm12 = vcmp.ge.f32.partialorder %v4806_v6, 0.0  ;;  %v4870_v26 = vmul.f32 0.1015625, %v4806_v6  ;;  %v4681_v52 = vadd.f32 %v4680_v31, %v4592_v22 }
 0x442   : > { %v4902_v42 = vsel %vm4838_vm12, %v4806_v6, %v4870_v26  ;;  %v4733_v61 = vadd.f32 %v4681_v52, %v3609_v21  ;;  %v4603_v57 = vpop.f32.mrf.mxu0 }
 0x443   : > { %v4966_v59 = vadd.f32 %v4934_v45, %v4902_v42 }
 0x444   : > { %v4770_v25 = vmul.f32 %v9364_v37, %v4733_v61  ;;  %v4682_v18 = vpop.f32.mrf.mxu1 }
 0x445   : > { %4998 = vst [vmem:[#allocation2 + $0x58] sm:$0xff] %v4966_v59  ;;  %v4504_v47 = vpop.f32.mrf.mxu3 }
 0x446   : > { %v4807_v40 = vadd.f32 %v9372_v32, %v4770_v25  ;;  %v4594_v1 = vadd.f32 %v4593_v46, %v4504_v47  ;;  %v3614_v46 = vadd.f32 %v3613_v56, %v9271_v35  ;;  %v4937_v56 = vld [vmem:[#allocation2 + $0xe0] sm:$0xff]  ;;  %v3623_v26 = vpop.f32.mrf.mxu2 }
 0x448   : > { %vm4839_vm2 = vcmp.ge.f32.partialorder %v4807_v40, 0.0  ;;  %v4871_v34 = vmul.f32 0.1015625, %v4807_v40  ;;  %v4683_v0 = vadd.f32 %v4682_v18, %v4594_v1 }
 0x44a   : > { %v4903_v36 = vsel %vm4839_vm2, %v4807_v40, %v4871_v34  ;;  %v4734_v10 = vadd.f32 %v4683_v0, %v3611_v60  ;;  %v4606_v42 = vpop.f32.mrf.mxu0 }
 0x44b   : > { %v4967_v53 = vadd.f32 %v4935_v3, %v4903_v36  ;;  %v3621_v3 = vadd.f32 %v3620_v55, %v9293_v62 }
 0x44c   : > { %v4771_v54 = vmul.f32 %v9364_v37, %v4734_v10  ;;  %v4685_v29 = vpop.f32.mrf.mxu1 }
 0x44d   : > { %4999 = vst [vmem:[#allocation2 + $0x40] sm:$0xff] %v4967_v53  ;;  %v4507_v19 = vpop.f32.mrf.mxu3 }
 0x44e   : > { %v4808_v11 = vadd.f32 %v9372_v32, %v4771_v54  ;;  %v4597_v14 = vadd.f32 %v4596_v8, %v4507_v19  ;;  %v3616_v8 = vadd.f32 %v3615_v41, %v9277_v13  ;;  %v4938_v41 = vld [vmem:[#allocation2 + $0x90] sm:$0xff]  ;;  %v3625_v0 = vpop.f32.mrf.mxu2 }
 0x450   : > { %vm4840_vm4 = vcmp.ge.f32.partialorder %v4808_v11, 0.0  ;;  %v4872_v58 = vmul.f32 0.1015625, %v4808_v11  ;;  %v4686_v4 = vadd.f32 %v4685_v29, %v4597_v14 }
 0x452   : > { %v4904_v50 = vsel %vm4840_vm4, %v4808_v11, %v4872_v58  ;;  %v4735_v33 = vadd.f32 %v4686_v4, %v3614_v46  ;;  %v4608_v10 = vpop.f32.mrf.mxu0  ;;  %v3624_v58 = vadd.f32 %v3623_v26, %v9305_v7 }
 0x453   : > { %v4968_v38 = vadd.f32 %v4936_v23, %v4904_v50  ;;  %v4940_v23 = vld [vmem:[#allocation2 + $0xc0] sm:$0xff] }
 0x454   : > { %v4772_v17 = vmul.f32 %v9364_v37, %v4735_v33  ;;  %v4687_v16 = vpop.f32.mrf.mxu1 }
 0x455   : > { %5000 = vst [vmem:[#allocation2 + $0xc8] sm:$0xff] %v4968_v38  ;;  %v4509_v27 = vpop.f32.mrf.mxu3 }
 0x456   : > { %v4809_v51 = vadd.f32 %v9372_v32, %v4772_v17  ;;  %v4599_v43 = vadd.f32 %v4598_v63, %v4509_v27  ;;  %v3619_v63 = vadd.f32 %v3618_v30, %v9289_v20  ;;  %v4939_v30 = vld [vmem:[#allocation2 + $0x70] sm:$0xff]  ;;  %v3628_v50 = vpop.f32.mrf.mxu2 }
 0x458   : > { %vm4841_vm9 = vcmp.ge.f32.partialorder %v4809_v51, 0.0  ;;  %v4873_v35 = vmul.f32 0.1015625, %v4809_v51  ;;  %v4688_v44 = vadd.f32 %v4687_v16, %v4599_v43 }
 0x45a   : > { %v4905_v2 = vsel %vm4841_vm9, %v4809_v51, %v4873_v35  ;;  %v4736_v39 = vadd.f32 %v4688_v44, %v3616_v8  ;;  %v4611_v17 = vpop.f32.mrf.mxu0  ;;  %v3626_v8 = vadd.f32 %v3625_v0, %v9311_v15  ;;  %v4941_v35 = vld [vmem:[#allocation2 + $0xa8] sm:$0xff] }
 0x45b   : > { %v4969_v31 = vadd.f32 %v4937_v56, %v4905_v2 }
 0x45c   : > { %v4773_v6 = vmul.f32 %v9364_v37, %v4736_v39  ;;  %v4690_v21 = vpop.f32.mrf.mxu1 }
 0x45d   : > { %5001 = vst [vmem:[#allocation2 + $0xe0] sm:$0xff] %v4969_v31  ;;  %v4512_v22 = vpop.f32.mrf.mxu3 }
 0x45e   : > { %v4810_v45 = vadd.f32 %v9372_v32, %v4773_v6  ;;  %v4602_v52 = vadd.f32 %v4601_v12, %v4512_v22  ;;  %v3630_v31 = vpop.f32.mrf.mxu2 }
 0x460   : > { %vm4842_vm8 = vcmp.ge.f32.partialorder %v4810_v45, 0.0  ;;  %v4874_v13 = vmul.f32 0.1015625, %v4810_v45  ;;  %v4691_v61 = vadd.f32 %v4690_v21, %v4602_v52 }
 0x462   : > { %v4906_v59 = vsel %vm4842_vm8, %v4810_v45, %v4874_v13  ;;  %v4737_v25 = vadd.f32 %v4691_v61, %v3619_v63  ;;  %v4613_v52 = vpop.f32.mrf.mxu0  ;;  %v3629_v63 = vadd.f32 %v3628_v50, %v9323_v28 }
 0x463   : > { %v4970_v47 = vadd.f32 %v4938_v41, %v4906_v59 }
 0x464   : > { %v4774_v18 = vmul.f32 %v9364_v37, %v4737_v25  ;;  %v4692_v1 = vpop.f32.mrf.mxu1 }
 0x465   : > { %5002 = vst [vmem:[#allocation2 + $0x90] sm:$0xff] %v4970_v47  ;;  %v4514_v40 = vpop.f32.mrf.mxu3 }
 0x466   : > { %v4811_v60 = vadd.f32 %v9372_v32, %v4774_v18  ;;  %v4604_v34 = vadd.f32 %v4603_v57, %v4514_v40  ;;  %v3633_v40 = vpop.f32.mrf.mxu2 }
 0x468   : > { %vm4843_vm6 = vcmp.ge.f32.partialorder %v4811_v60, 0.0  ;;  %v4875_v20 = vmul.f32 0.1015625, %v4811_v60  ;;  %v4693_v36 = vadd.f32 %v4692_v1, %v4604_v34  ;;  %v3631_v34 = vadd.f32 %v3630_v31, %v9327_v5 }
 0x46a   : > { %v4907_v53 = vsel %vm4843_vm6, %v4811_v60, %v4875_v20  ;;  %v4738_v12 = vadd.f32 %v4693_v36, %v3621_v3  ;;  %v4943_v3 = vld [vmem:[#allocation2 + $0x10] sm:$0xff]  ;;  %v4616_v20 = vpop.f32.mrf.mxu0 }
 0x46b   : > { %v4971_v54 = vadd.f32 %v4939_v30, %v4907_v53 }
 0x46c   : > { %v4775_v19 = vmul.f32 %v9364_v37, %v4738_v12  ;;  %v4695_v11 = vpop.f32.mrf.mxu1 }
 0x46d   : > { %5003 = vst [vmem:[#allocation2 + $0x70] sm:$0xff] %v4971_v54  ;;  %v4517_v29 = vpop.f32.mrf.mxu3 }
 0x46e   : > { %v4812_v14 = vadd.f32 %v9372_v32, %v4775_v19  ;;  %v4607_v46 = vadd.f32 %v4606_v42, %v4517_v29  ;;  %v4942_v42 = vld [vmem:[#allocation2 + $0xd0] sm:$0xff] }
 0x470   : > { %vm4844_vm15 = vcmp.ge.f32.partialorder %v4812_v14, 0.0  ;;  %v4876_v62 = vmul.f32 0.1015625, %v4812_v14  ;;  %v4696_v4 = vadd.f32 %v4695_v11, %v4607_v46  ;;  %v3634_v11 = vadd.f32 %v3633_v40, %v9337_v9  ;;  %v4944_v46 = vld [vmem:[#allocation2 + $0x28] sm:$0xff] }
 0x472   : > { %v4908_v33 = vsel %vm4844_vm15, %v4812_v14, %v4876_v62  ;;  %v4739_v38 = vadd.f32 %v4696_v4, %v3624_v58  ;;  %v3635_v14 = vpop.f32.mrf.mxu2  ;;  %v4618_v4 = vpop.f32.mrf.mxu0 }
 0x473   : > { %v4972_v55 = vadd.f32 %v4940_v23, %v4908_v33 }
 0x474   : > { %v4776_v27 = vmul.f32 %v9364_v37, %v4739_v38  ;;  %v4697_v57 = vpop.f32.mrf.mxu1 }
 0x475   : > { %5004 = vst [vmem:[#allocation2 + $0xc0] sm:$0xff] %v4972_v55  ;;  %v4519_v16 = vpop.f32.mrf.mxu3 }
 0x476   : > { %v4813_v51 = vadd.f32 %v9372_v32, %v4776_v27  ;;  %v4609_v43 = vadd.f32 %v4608_v10, %v4519_v16  ;;  %v3636_v16 = vadd.f32 %v3635_v14, %v9341_v49 }
 0x478   : > { %vm4845_vm11 = vcmp.ge.f32.partialorder %v4813_v51, 0.0  ;;  %v4877_v7 = vmul.f32 0.1015625, %v4813_v51  ;;  %v4698_v56 = vadd.f32 %v4697_v57, %v4609_v43  ;;  %v4945_v57 = vld [vmem:[#allocation2 + $0xa0] sm:$0xff] }
 0x47a   : > { %v4909_v44 = vsel %vm4845_vm11, %v4813_v51, %v4877_v7  ;;  %v4740_v2 = vadd.f32 %v4698_v56, %v3626_v8  ;;  %v3638_v43 = vpop.f32.mrf.mxu2 }
 0x47b   : > { %v4973_v39 = vadd.f32 %v4941_v35, %v4909_v44 }
 0x47c   : > { %v4777_v6 = vmul.f32 %v9364_v37, %v4740_v2  ;;  %v4700_v21 = vpop.f32.mrf.mxu1 }
 0x47d   : > { %5005 = vst [vmem:[#allocation2 + $0xa8] sm:$0xff] %v4973_v39  ;;  %v4522_v22 = vpop.f32.mrf.mxu3 }
 0x47e   : > { %v4814_v26 = vadd.f32 %v9372_v32, %v4777_v6  ;;  %v4612_v45 = vadd.f32 %v4611_v17, %v4522_v22  ;;  %v3639_v22 = vadd.f32 %v3638_v43, %v9351_v48 }
 0x480   : > { %vm4846_vm5 = vcmp.ge.f32.partialorder %v4814_v26, 0.0  ;;  %v4878_v15 = vmul.f32 0.1015625, %v4814_v26  ;;  %v4701_v13 = vadd.f32 %v4700_v21, %v4612_v45  ;;  %v4946_v21 = vld [vmem:[#allocation2 + $0xf8] sm:$0xff] }
 0x481   : > { %v4621_v56 = vpop.f32.mrf.mxu0 }
 0x482   : > { %v4910_v41 = vsel %vm4846_vm5, %v4814_v26, %v4878_v15  ;;  %v4741_v61 = vadd.f32 %v4701_v13, %v3629_v63  ;;  %v3640_v15 = vpop.f32.mrf.mxu2 }
 0x483   : > { %v4974_v59 = vadd.f32 %v4942_v42, %v4910_v41  ;;  %v3641_v48 = vadd.f32 %v3640_v15, %v9355_v24 }
 0x484   : > { %v4778_v25 = vmul.f32 %v9364_v37, %v4741_v61  ;;  %v4702_v18 = vpop.f32.mrf.mxu1 }
 0x485   : > { %5006 = vst [vmem:[#allocation2 + $0xd0] sm:$0xff] %v4974_v59  ;;  %v4524_v47 = vpop.f32.mrf.mxu3 }
 0x486   : > { %v4815_v1 = vadd.f32 %v9372_v32, %v4778_v25  ;;  %v4614_v60 = vadd.f32 %v4613_v52, %v4524_v47 }
 0x488   : > { %vm4847_vm3 = vcmp.ge.f32.partialorder %v4815_v1, 0.0  ;;  %v4879_v28 = vmul.f32 0.1015625, %v4815_v1  ;;  %v4703_v0 = vadd.f32 %v4702_v18, %v4614_v60  ;;  %v4947_v18 = vld [vmem:[#allocation2 + $0x20] sm:$0xff] }
 0x489   : > { %v4623_v13 = vpop.f32.mrf.mxu0 }
 0x48a   : > { %v4911_v30 = vsel %vm4847_vm3, %v4815_v1, %v4879_v28  ;;  %v4742_v36 = vadd.f32 %v4703_v0, %v3631_v34  ;;  %v5979_v28 = vld [vmem:[%s9236_s10] ss:$0 sm:$0xff] }
 0x48b   : > { %v4975_v10 = vadd.f32 %v4943_v3, %v4911_v30 }
 0x48c   : > { %v4779_v53 = vmul.f32 %v9364_v37, %v4742_v36  ;;  %v4705_v54 = vpop.f32.mrf.mxu1 }
 0x48d   : > { %5007 = vst [vmem:[#allocation2 + $0x10] sm:$0xff] %v4975_v10  ;;  %v4527_v12 = vpop.f32.mrf.mxu3 }
 0x48e   : > { %v4816_v19 = vadd.f32 %v9372_v32, %v4779_v53  ;;  %v4617_v29 = vadd.f32 %v4616_v20, %v4527_v12 }
 0x490   : > { %vm4848_vm13 = vcmp.ge.f32.partialorder %v4816_v19, 0.0  ;;  %v4880_v5 = vmul.f32 0.1015625, %v4816_v19  ;;  %v4706_v58 = vadd.f32 %v4705_v54, %v4617_v29 }
 0x492   : > { %v4912_v62 = vsel %vm4848_vm13, %v4816_v19, %v4880_v5  ;;  %v4743_v23 = vadd.f32 %v4706_v58, %v3634_v11 }
 0x493   : > { %v4976_v50 = vadd.f32 %v4944_v46, %v4912_v62 }
 0x494   : > { %v4780_v33 = vmul.f32 %v9364_v37, %v4743_v23  ;;  %v4707_v55 = vpop.f32.mrf.mxu1 }
 0x495   : > { %5008 = vst [vmem:[#allocation2 + $0x28] sm:$0xff] %v4976_v50  ;;  %v4529_v38 = vpop.f32.mrf.mxu3 }
 0x496   : > { %v4817_v17 = vadd.f32 %v9372_v32, %v4780_v33  ;;  %v4619_v27 = vadd.f32 %v4618_v4, %v4529_v38 }
 0x498   : > { %vm4849_vm14 = vcmp.ge.f32.partialorder %v4817_v17, 0.0  ;;  %v4881_v9 = vmul.f32 0.1015625, %v4817_v17  ;;  %v4708_v51 = vadd.f32 %v4707_v55, %v4619_v27 }
 0x49a   : > { %v4913_v8 = vsel %vm4849_vm14, %v4817_v17, %v4881_v9  ;;  %v4744_v7 = vadd.f32 %v4708_v51, %v3636_v16 }
 0x49b   : > { %v4977_v35 = vadd.f32 %v4945_v57, %v4913_v8 }
 0x49c   : > { %v4781_v44 = vmul.f32 %v9364_v37, %v4744_v7  ;;  %v4710_v39 = vpop.f32.mrf.mxu1 }
 0x49d   : > { %5009 = vst [vmem:[#allocation2 + $0xa0] sm:$0xff] %v4977_v35  ;;  %v4532_v2 = vpop.f32.mrf.mxu3 }
 0x49e   : > { %v4818_v31 = vadd.f32 %v9372_v32, %v4781_v44  ;;  %v4622_v6 = vadd.f32 %v4621_v56, %v4532_v2 }
 0x4a0   : > { %vm4850_vm1 = vcmp.ge.f32.partialorder %v4818_v31, 0.0  ;;  %v4882_v49 = vmul.f32 0.1015625, %v4818_v31  ;;  %v4711_v26 = vadd.f32 %v4710_v39, %v4622_v6 }
 0x4a2   : > { %v4914_v45 = vsel %vm4850_vm1, %v4818_v31, %v4882_v49  ;;  %v4745_v52 = vadd.f32 %v4711_v26, %v3639_v22 }
 0x4a3   : > { %v4978_v63 = vadd.f32 %v4946_v21, %v4914_v45 }
 0x4a4   : > { %v4782_v42 = vmul.f32 %v9364_v37, %v4745_v52  ;;  %v4712_v25 = vpop.f32.mrf.mxu1  ;;  %v5980_v37 = vld [vmem:[%s4784_s22] ss:$0 sm:$0xff] }
 0x4a5   : > { %5010 = vst [vmem:[#allocation2 + $0xf8] sm:$0xff] %v4978_v63  ;;  %v4534_v41 = vpop.f32.mrf.mxu3 }
 0x4a6   : > { %v4819_v61 = vadd.f32 %v9372_v32, %v4782_v42  ;;  %v4624_v59 = vadd.f32 %v4623_v13, %v4534_v41  ;;  %v4948_v32 = vld [vmem:[#allocation2 + $0x98] sm:$0xff] }
 0x4a8   : > { %vm4851_vm0 = vcmp.ge.f32.partialorder %v4819_v61, 0.0  ;;  %v4883_v47 = vmul.f32 0.1015625, %v4819_v61  ;;  %v4713_v40 = vadd.f32 %v4712_v25, %v4624_v59 }
 0x4aa   : > { %v4915_v1 = vsel %vm4851_vm0, %v4819_v61, %v4883_v47  ;;  %v4746_v60 = vadd.f32 %v4713_v40, %v3641_v48 }
 0x4ab   : > { %v4979_v34 = vadd.f32 %v4947_v18, %v4915_v1 }
 0x4ac   : > { %v4783_v3 = vmul.f32 %v5979_v28, %v4746_v60 }
 0x4ad   : > { %5011 = vst [vmem:[#allocation2 + $0x20] sm:$0xff] %v4979_v34 }
 0x4ae   : > { %v4820_v0 = vadd.f32 %v5980_v37, %v4783_v3 }
 0x4b0   : > { %vm4852_vm7 = vcmp.ge.f32.partialorder %v4820_v0, 0.0  ;;  %v4884_v20 = vmul.f32 0.1015625, %v4820_v0 }
 0x4b1   : > { %5016 = sbr.rel (%p5677_p1) target bundleno = 1239 (0x4d7), region = 76 }
 0x4b2   : > { %v4916_v30 = vsel %vm4852_vm7, %v4820_v0, %v4884_v20 }
 0x4b3   : > { %v4980_v36 = vadd.f32 %v4948_v32, %v4916_v30 }
 0x4b5   : > { %5012 = vst [vmem:[#allocation2 + $0x98] sm:$0xff] %v4980_v36 }
 0x4b6   : > { %v5017_v24 = vld [vmem:[#allocation2 + $0xb0] sm:$0xff]  ;;  %vm5049_vm10 = vcmask 130048   ;;  %v5018_v10 = vld [vmem:[#allocation2] sm:$0xff]  ;;  %v5019_v53 = vld [vmem:[#allocation2 + $0xd8] sm:$0xff] }
 0x4b7   : > { %5050 = vst.msk [vmem:[%s6445_s2] sm:$0xff] %vm5049_vm10, %v5017_v24  ;;  %v5020_v12 = vld [vmem:[#allocation2 + $0x18] sm:$0xff]  ;;  %v5021_v54 = vld [vmem:[#allocation2 + $0x50] sm:$0xff]  ;;  %v5022_v19 = vld [vmem:[#allocation2 + $0x68] sm:$0xff] }
 0x4b8   : > { %5051 = vst.msk [vmem:[%s6445_s2 + $0x8] sm:$0xff] %vm5049_vm10, %v5018_v10  ;;  %v5023_v29 = vld [vmem:[#allocation2 + $0x30] sm:$0xff]  ;;  %v5024_v11 = vld [vmem:[#allocation2 + $0x48] sm:$0xff]  ;;  %v5025_v14 = vld [vmem:[#allocation2 + $0x80] sm:$0xff] }
 0x4b9   : > { %5052 = vst.msk [vmem:[%s6445_s2 + $0x10] sm:$0xff] %vm5049_vm10, %v5019_v53  ;;  %v5026_v5 = vld [vmem:[#allocation2 + $0x88] sm:$0xff]  ;;  %v5028_v58 = vld [vmem:[#allocation2 + $0xb8] sm:$0xff]  ;;  %v5029_v62 = vld [vmem:[#allocation2 + $0x60] sm:$0xff] }
 0x4ba   : > { %5053 = vst.msk [vmem:[%s6445_s2 + $0x18] sm:$0xff] %vm5049_vm10, %v5020_v12  ;;  %v5027_v46 = vld [vmem:[#allocation2 + $0xe8] sm:$0xff]  ;;  %v5030_v23 = vld [vmem:[#allocation2 + $0xf0] sm:$0xff]  ;;  %v5032_v50 = vld [vmem:[#allocation2 + $0x78] sm:$0xff] }
 0x4bb   : > { %5054 = vst.msk [vmem:[%s6445_s2 + $0x20] sm:$0xff] %vm5049_vm10, %v5021_v54  ;;  %v5031_v4 = vld [vmem:[#allocation2 + $0x8] sm:$0xff]  ;;  %v5033_v33 = vld [vmem:[#allocation2 + $0x38] sm:$0xff]  ;;  %v5035_v55 = vld [vmem:[#allocation2 + $0x40] sm:$0xff] }
 0x4bc   : > { %5055 = vst.msk [vmem:[%s6445_s2 + $0x28] sm:$0xff] %vm5049_vm10, %v5022_v19  ;;  %v5034_v38 = vld [vmem:[#allocation2 + $0x58] sm:$0xff]  ;;  %v5036_v17 = vld [vmem:[#allocation2 + $0xc8] sm:$0xff]  ;;  %v5037_v27 = vld [vmem:[#allocation2 + $0xe0] sm:$0xff] }
 0x4bd   : > { %5056 = vst.msk [vmem:[%s6445_s2 + $0x30] sm:$0xff] %vm5049_vm10, %v5023_v29  ;;  %v5038_v16 = vld [vmem:[#allocation2 + $0x90] sm:$0xff]  ;;  %v5040_v57 = vld [vmem:[#allocation2 + $0xc0] sm:$0xff]  ;;  %v5041_v51 = vld [vmem:[#allocation2 + $0xa8] sm:$0xff] }
 0x4be   : > { %5057 = vst.msk [vmem:[%s6445_s2 + $0x38] sm:$0xff] %vm5049_vm10, %v5024_v11  ;;  %v5039_v9 = vld [vmem:[#allocation2 + $0x70] sm:$0xff]  ;;  %v5044_v7 = vld [vmem:[#allocation2 + $0x28] sm:$0xff]  ;;  %v5045_v35 = vld [vmem:[#allocation2 + $0xa0] sm:$0xff] }
 0x4bf   : > { %5058 = vst.msk [vmem:[%s6445_s2 + $0x40] sm:$0xff] %vm5049_vm10, %v5025_v14  ;;  %v5042_v43 = vld [vmem:[#allocation2 + $0xd0] sm:$0xff]  ;;  %v5046_v56 = vld [vmem:[#allocation2 + $0xf8] sm:$0xff]  ;;  %v5047_v44 = vld [vmem:[#allocation2 + $0x20] sm:$0xff] }
 0x4c0   : > { %5059 = vst.msk [vmem:[%s6445_s2 + $0x48] sm:$0xff] %vm5049_vm10, %v5026_v5  ;;  %v5043_v8 = vld [vmem:[#allocation2 + $0x10] sm:$0xff]  ;;  %v5048_v2 = vld [vmem:[#allocation2 + $0x98] sm:$0xff] }
 0x4c1   : > { %5060 = vst.msk [vmem:[%s6445_s2 + $0x50] sm:$0xff] %vm5049_vm10, %v5027_v46 }
 0x4c2   : > { %5061 = vst.msk [vmem:[%s6445_s2 + $0x58] sm:$0xff] %vm5049_vm10, %v5028_v58 }
 0x4c3   : > { %5062 = vst.msk [vmem:[%s6445_s2 + $0x60] sm:$0xff] %vm5049_vm10, %v5029_v62 }
 0x4c4   : > { %5063 = vst.msk [vmem:[%s6445_s2 + $0x68] sm:$0xff] %vm5049_vm10, %v5030_v23 }
 0x4c5   : > { %5064 = vst.msk [vmem:[%s6445_s2 + $0x70] sm:$0xff] %vm5049_vm10, %v5031_v4 }
 0x4c6   : > { %5065 = vst.msk [vmem:[%s6445_s2 + $0x78] sm:$0xff] %vm5049_vm10, %v5032_v50 }
 0x4c7   : > { %5066 = vst.msk [vmem:[%s6445_s2 + $0x80] sm:$0xff] %vm5049_vm10, %v5033_v33 }
 0x4c8   : > { %5067 = vst.msk [vmem:[%s6445_s2 + $0x88] sm:$0xff] %vm5049_vm10, %v5034_v38 }
 0x4c9   : > { %5068 = vst.msk [vmem:[%s6445_s2 + $0x90] sm:$0xff] %vm5049_vm10, %v5035_v55 }
 0x4ca   : > { %5069 = vst.msk [vmem:[%s6445_s2 + $0x98] sm:$0xff] %vm5049_vm10, %v5036_v17 }
 0x4cb   : > { %5070 = vst.msk [vmem:[%s6445_s2 + $0xa0] sm:$0xff] %vm5049_vm10, %v5037_v27 }
 0x4cc   : > { %5071 = vst.msk [vmem:[%s6445_s2 + $0xa8] sm:$0xff] %vm5049_vm10, %v5038_v16 }
 0x4cd   : > { %5072 = vst.msk [vmem:[%s6445_s2 + $0xb0] sm:$0xff] %vm5049_vm10, %v5039_v9 }
 0x4ce   : > { %5073 = vst.msk [vmem:[%s6445_s2 + $0xb8] sm:$0xff] %vm5049_vm10, %v5040_v57 }
 0x4cf   : > { %5074 = vst.msk [vmem:[%s6445_s2 + $0xc0] sm:$0xff] %vm5049_vm10, %v5041_v51 }
 0x4d0   : > { %5075 = vst.msk [vmem:[%s6445_s2 + $0xc8] sm:$0xff] %vm5049_vm10, %v5042_v43 }
 0x4d1   : > { %5076 = vst.msk [vmem:[%s6445_s2 + $0xd0] sm:$0xff] %vm5049_vm10, %v5043_v8 }
 0x4d2   : > { %5077 = vst.msk [vmem:[%s6445_s2 + $0xd8] sm:$0xff] %vm5049_vm10, %v5044_v7 }
 0x4d3   : > { %5078 = vst.msk [vmem:[%s6445_s2 + $0xe0] sm:$0xff] %vm5049_vm10, %v5045_v35 }
 0x4d4   : > { %5079 = vst.msk [vmem:[%s6445_s2 + $0xe8] sm:$0xff] %vm5049_vm10, %v5046_v56 }
 0x4d5   : > { %5080 = vst.msk [vmem:[%s6445_s2 + $0xf0] sm:$0xff] %vm5049_vm10, %v5047_v44 }
 0x4d6   : > { %5081 = vst.msk [vmem:[%s6445_s2 + $0xf8] sm:$0xff] %vm5049_vm10, %v5048_v2 }
 0x4d7 PF: > { %s5766_s27 = sshll.u32 %s6225_s28, 8  ;;  %s5095_s29 = sshll.u32 %s6445_s2, 4  ;;  %s5096_s29 = int_to_ptr.vmem [resolvable:$true] %s5095_s29 }
 0x4d8   : > { %s5094_s6 = scalar_lea.hbm %s9708_s7, %s5766_s27  ;;  %s5083_s13 = scalar_lea.sflag [#allocation6], %s6427_s17 }
 0x4d9   : > { %s5097_s11 = sshll.u32 %s5094_s6, 4  ;;  %s6151_s28 = scalar_lea.hbm %s9708_s7, 512  ;;  %s5098_s11 = int_to_ptr.hbm [resolvable:$true] %s5097_s11 }
 0x4da   : > { %s6145_s18 = sshra.s32 %s5098_s11, 4  ;;  %s6146_s18 = int_to_ptr.hbm [resolvable:$true] %s6145_s18 }
 0x4db   : > { %s6147_s15 = scalar_lea.hbm %s6146_s18, 256  ;;  %p6152_p12 = scmp.lt.s32.totalorder %s6146_s18, %s9708_s7 }
 0x4dc   : > { %p6148_p4 = scmp.ne.s32.totalorder %s6146_s18, %s6147_s15  ;;  %p6153_p13 = scmp.lt.s32.totalorder %s6151_s28, %s6147_s15 }
 0x4de   : > { %p6149_p10 = pnand %p6148_p4, %p6403_p3  ;;  %p6154_p0 = por %p6153_p13, %p6152_p12 }
 0x4e0   : > { %p6150_p11 = pneg %p6149_p10 }
 0x4e2   : > { %p6155_p5 = pnand %p6154_p0, %p6150_p11 }
 0x4e4   : > { %6158 = shalt.err (!%p6155_p5)
}
 0x4e5   : > { %s6250_s17 = smov 128   ;;  %s6251_s2 = smov 8  }
 0x4e6   : > { %5801 = dma.vmem_to_hbm [thread:$0]  (%p6403_p3), %s5096_s29, 4096, %s5098_s11, %s5083_s13, %s6250_s17, %s6250_s17, %s6251_s2  }
 0x4e7 PF: > { %s10713_s12 = sld [smem:[#allocation18_spill]]  ;;  %p5833_p7 = scmp.ge.s32.totalorder %s6237_s8, 2 }
 0x4e9   : > { %p5821_p9 = pnand %p5833_p7, %p6351_p6 }
 0x4eb   : > { %p5822_p2 = pneg %p5821_p9 }
 0x4ed   : > { %s5112_s10 = sand.u32 1, %s10713_s12  }
 0x4ee   : > { %s5113_s22 = scalar_lea.sflag [#allocation6], %s5112_s10 }
 0x4ef   : > { %6204 = dma.done.wait (%p5822_p2), %s5113_s22, 4096  }
 0x4f0   : > { %6206 = vsyncadd (%p5822_p2), %s5113_s22, 4294963200  ;;  %s25_s8 = sadd.s32 1, %s6237_s8   ;;  %s10715_s27 = sld [smem:[#allocation19_spill]] }
 0x4f1   : > { %p22_p8 = scmp.ge.s32.totalorder %s25_s8, 6   ;;  %s10716_s29 = sld [smem:[#allocation21_spill]] }
 0x4f2   : > { %s10717_s24 = smov %s6213_s25  ;;  %s10718_s25 = smov %s6217_s26 }
 0x4f3   : > { %s10719_s26 = smov %s6418_s4  ;;  %s10720_s28 = smov %s6233_s30 }
 0x4f4   : > { %s10721_s30 = smov %s10727_s19  ;;  %24 = sbr.rel (!%p22_p8) target bundleno = 14 (0xe), region = 128 }
 0x4f9   :  { %5119 = vsyncpa [#allocation5], 1 }
 0x4fa   :  { %5121 = vsyncpa [#allocation5 + $0x1], 1 }
 0x4fb   :  { %5122 = vsyncpa [#allocation8], 1 }
 0x4fc   :  { %5123 = vsyncpa [#allocation11], 1 }
 0x4fd   :  { %5124 = vsyncpa [#allocation6], 1 }
 0x4fe   :  { %5126 = vsyncpa [#allocation6 + $0x1], 1 }

</bundles_post_ra>
